<compile_context>
chip_gen: v6e
topology: v6e:2x2x1
jax: 0.10.0
libtpu: 0.0.40
codegen_flags: <defaults>
</compile_context>

<pallas_src>
import functools

import jax
import jax.numpy as jnp
from jax.experimental import pallas as pl
from jax.experimental.pallas import tpu as pltpu


# --------------------------------------------------------------------------
# Fused kernel: ResidualBlock + AttentionBlock for one batch element.
# All activations are channels-first (C, HW): HW on the 128-lane axis.
# --------------------------------------------------------------------------
def _up_fused_kernel(
    # per-batch data
    y_ref,                   # (1, out, HW)  bf16  ConvTranspose2d output
    skip_ref,                # (1, skip, HW) f32   skip connection
    emb_ref,                 # (1, t+c, 1)   f32   concat(t_emb, c_emb) column
    # constants / weights (grid-invariant, full blocks)
    masks_ref,               # (8, HW)  f32  conv boundary masks (non-center taps)
    n1w_ref, n1b_ref,        # (res_in, 1)
    a1_ref,                  # (res_in, res_in) group-avg matrix (incl. 1/(gs*HW))
    w1_ref, b1_ref,          # (9*out, res_in) bf16, (out, 1)
    embw_ref, embb_ref,      # (out, t+c) bf16, (out, 1)
    n2w_ref, n2b_ref,        # (out, 1)
    a2_ref,                  # (out, out)
    w2_ref, b2_ref,          # (9*out, out) bf16, (out, 1)
    scw_ref, scb_ref,        # (out, res_in) bf16, (out, 1)
    anw_ref, anb_ref,        # (out, 1)
    qkvw_ref, qkvb_ref,      # (3*out, out) bf16 (q rows pre-scaled), (3*out, 1)
    prw_ref, prb_ref,        # (out, out) bf16, (out, 1)
    # output
    o_ref,                   # (1, out, HW) f32  channels-first (lane-dense store)
    # scratch
    h0_scr,                  # (res_in, HW) f32  in-kernel concat buffer
    *, W, eps):
  f32 = jnp.float32
  bf16 = jnp.bfloat16
  HW = o_ref.shape[2]
  cup = y_ref.shape[1]
  cout = o_ref.shape[1]

  def groupnorm(x, gamma_ref, beta_ref, a_ref, silu):
    # x: (C, HW) f32.  a_ref is a (C, C) block-averaging matrix, so each
    # statistic needs a single small dot (instead of two chained matvecs).
    xs = jnp.sum(x, axis=1, keepdims=True)                          # (C, 1)
    mean = jnp.dot(a_ref[...], xs, preferred_element_type=f32)      # (C, 1)
    xc = x - mean
    vs = jnp.sum(xc * xc, axis=1, keepdims=True)                    # (C, 1)
    var = jnp.dot(a_ref[...], vs, preferred_element_type=f32)       # (C, 1)
    y = xc * (jax.lax.rsqrt(var + eps) * gamma_ref[...]) + beta_ref[...]
    if silu:
      y = y * jax.nn.sigmoid(y)
    return y

  def conv3x3(x, w_ref, b_ref):
    # 3x3 conv, padding=1: one bf16 GEMM against (9*Cout, Cin), then per-tap
    # roll on the lane (HW) axis + boundary mask + accumulate.  Tap slices are
    # sublane-aligned (multiples of Cout), so no lane relayouts per tap.
    nco = w_ref.shape[0] // 9
    taps = jnp.dot(w_ref[...], x.astype(bf16),
                   preferred_element_type=f32)                      # (9*Cout, HW)
    acc = taps[4 * nco:5 * nco, :]                                  # center tap
    m = 0
    for t in range(9):
      if t == 4:
        continue
      dy, dx = t // 3 - 1, t % 3 - 1
      p = taps[t * nco:(t + 1) * nco, :]
      # out[:, n] needs the tap value of source pixel n + dy*W + dx.
      p = pltpu.roll(p, shift=(-(dy * W + dx)) % HW, axis=1)
      acc = acc + p * masks_ref[m:m + 1, :]
      m += 1
    return acc + b_ref[...]

  # ---- in-kernel channel concat of up(x) and skip (no HBM round trip) ----
  h0_scr[0:cup, :] = y_ref[0].astype(f32)
  h0_scr[cup:, :] = skip_ref[0]
  h0 = h0_scr[...]                                                  # (res_in, HW)

  # ---------------- ResidualBlock ----------------
  h = groupnorm(h0, n1w_ref, n1b_ref, a1_ref, silu=True)
  h = conv3x3(h, w1_ref, b1_ref)                                    # (out, HW)
  emb = jnp.dot(embw_ref[...], emb_ref[0].astype(bf16),
                preferred_element_type=f32) + embb_ref[...]         # (out, 1)
  h = h + emb                                                       # lane broadcast
  h = groupnorm(h, n2w_ref, n2b_ref, a2_ref, silu=True)
  h = conv3x3(h, w2_ref, b2_ref)
  shortcut = jnp.dot(scw_ref[...], h0.astype(bf16),
                     preferred_element_type=f32) + scb_ref[...]     # 1x1 res_conv
  h = h + shortcut                                                  # (out, HW)

  # ---------------- AttentionBlock ----------------
  # TODO(synk): for large feature maps (HW >~ 4096) the (HW, HW) score matrix
  # should be flash-tiled over K/V blocks to fit v7x's 64 MiB VMEM; at HW=256
  # it is 256 KiB f32 so it is kept whole here.
  hn = groupnorm(h, anw_ref, anb_ref, a2_ref, silu=False)
  qkv = jnp.dot(qkvw_ref[...], hn.astype(bf16),
                preferred_element_type=f32) + qkvb_ref[...]         # (3*out, HW)
  q = qkv[0:cout, :]                                                # scale pre-folded
  k = qkv[cout:2 * cout, :]
  v = qkv[2 * cout:, :]
  s = jax.lax.dot_general(q.astype(bf16), k.astype(bf16),
                          (((0,), (0,)), ((), ())),
                          preferred_element_type=f32)               # (HW, HW)
  mx = jnp.max(s, axis=-1, keepdims=True)
  e = jnp.exp(s - mx)
  p = e * pl.reciprocal(jnp.sum(e, axis=-1, keepdims=True), approx=True)
  att = jax.lax.dot_general(v.astype(bf16), p.astype(bf16),
                            (((1,), (1,)), ((), ())),
                            preferred_element_type=f32)             # (out, HW)
  proj = jnp.dot(prw_ref[...], att.astype(bf16),
                 preferred_element_type=f32) + prb_ref[...]
  o_ref[0] = h + proj                                               # lane-dense store


# --------------------------------------------------------------------------
# Wrapper: weight prep + tiny XLA prologue + single fused pallas_call.
# --------------------------------------------------------------------------
def _group_avg_matrix(c, groups, hw):
  gs = c // groups
  gid = jnp.arange(c) // gs
  return (gid[:, None] == gid[None, :]).astype(jnp.float32) / float(gs * hw)


def _conv3x3_wmat(w):
  # PyTorch (Cout, Cin, 3, 3) -> (9*Cout, Cin), rows ordered (ky, kx, cout).
  co, ci = w.shape[0], w.shape[1]
  return jnp.transpose(w, (2, 3, 0, 1)).reshape(9 * co, ci).astype(jnp.bfloat16)


def _tap_masks(h, w):
  # Boundary masks for the 8 non-center taps, precomputed once (shared by both
  # convolutions) so no iota / integer divide runs inside the grid body.
  hw = h * w
  ii = jnp.arange(hw, dtype=jnp.int32) // w
  jj = jnp.arange(hw, dtype=jnp.int32) % w
  rows = []
  for t in range(9):
    if t == 4:
      continue
    dy, dx = t // 3 - 1, t % 3 - 1
    rows.append(((ii + dy >= 0) & (ii + dy < h) &
                 (jj + dx >= 0) & (jj + dx < w)).astype(jnp.float32))
  return jnp.stack(rows)                                            # (8, hw)


def up_forward(params, x, skip, t_emb, c_emb, *, num_groups=8, eps=1e-5):
  """Matches PyTorch Up.forward.  x: (B,in_ch,H,W); skip: (B,skip_ch,2H,2W)."""
  B, in_ch, H, W = x.shape
  out_ch = params['up_w'].shape[1]
  skip_ch = skip.shape[1]
  H2, W2 = 2 * H, 2 * W
  HW = H2 * W2
  res_in = out_ch + skip_ch
  bf16 = jnp.bfloat16

  # ---- XLA prologue: ConvTranspose2d(k=2, s=2), channels-first bf16. ----
  # TODO(synk): the 2x2 pixel-shuffle scatter of the transposed conv has no
  # layout-friendly in-kernel form; its GEMM is <2% of the block's FLOPs so it
  # stays in XLA.  Everything downstream is one fused Pallas kernel, and the
  # skip tensor is passed through with a free reshape (no copy, no transpose).
  y = jnp.einsum('bchw,cokl->bohkwl', x, params['up_w'])
  y = y.reshape(B, out_ch, H2, W2) + params['up_b'][None, :, None, None]
  y_cf = y.reshape(B, out_ch, HW).astype(bf16)                      # (B,out,HW)
  skip_cf = skip.reshape(B, skip_ch, HW)                            # f32, free reshape
  emb_in = jnp.concatenate([t_emb, c_emb], axis=-1)[:, :, None]     # (B, t+c, 1)

  # ---- weight prep: channels-first, bf16 GEMM operands, scale folded ----
  scale = float(out_ch) ** -0.5
  qw = params['q_w'].reshape(out_ch, out_ch) * scale                # fold attn scale
  kw = params['k_w'].reshape(out_ch, out_ch)
  vw = params['v_w'].reshape(out_ch, out_ch)
  qb = params['q_b'] * scale

  wlist = [
      _tap_masks(H2, W2),
      params['n1_w'].reshape(res_in, 1), params['n1_b'].reshape(res_in, 1),
      _group_avg_matrix(res_in, num_groups, HW),
      _conv3x3_wmat(params['conv1_w']), params['conv1_b'].reshape(out_ch, 1),
      jnp.concatenate([params['time_w'], params['cond_w']], axis=1).astype(bf16),
      (params['time_b'] + params['cond_b']).reshape(out_ch, 1),
      params['n2_w'].reshape(out_ch, 1), params['n2_b'].reshape(out_ch, 1),
      _group_avg_matrix(out_ch, num_groups, HW),
      _conv3x3_wmat(params['conv2_w']), params['conv2_b'].reshape(out_ch, 1),
      params['sc_w'].reshape(out_ch, res_in).astype(bf16),
      params['sc_b'].reshape(out_ch, 1),
      params['an_w'].reshape(out_ch, 1), params['an_b'].reshape(out_ch, 1),
      jnp.concatenate([qw, kw, vw], axis=0).astype(bf16),
      jnp.concatenate([qb, params['k_b'], params['v_b']]).reshape(3 * out_ch, 1),
      params['proj_w'].reshape(out_ch, out_ch).astype(bf16),
      params['proj_b'].reshape(out_ch, 1),
  ]

  kern = functools.partial(_up_fused_kernel, W=W2, eps=eps)

  def _full(a):
    # Grid-invariant weights: same (0,..) block every step (negligible VMEM at
    # these channel widths; single-buffering them only matters at large C).
    return pl.BlockSpec(a.shape, lambda b, nd=a.ndim: (0,) * nd)

  in_specs = ([pl.BlockSpec((1, out_ch, HW), lambda b: (b, 0, 0)),
               pl.BlockSpec((1, skip_ch, HW), lambda b: (b, 0, 0)),
               pl.BlockSpec((1, emb_in.shape[1], 1), lambda b: (b, 0, 0))]
              + [_full(a) for a in wlist])

  out = pl.pallas_call(
      kern,
      out_shape=jax.ShapeDtypeStruct((B, out_ch, HW), jnp.float32),
      grid=(B,),
      in_specs=in_specs,
      out_specs=pl.BlockSpec((1, out_ch, HW), lambda b: (b, 0, 0)),
      scratch_shapes=[pltpu.VMEM((res_in, HW), jnp.float32)],
      compiler_params=pltpu.CompilerParams(
          dimension_semantics=("parallel",)),     # v7x: shard batch over 2 TCs
  )(y_cf, skip_cf, emb_in, *wlist)

  return out.reshape(B, out_ch, H2, W2)           # channels-first -> NCHW for free


# --------------------------------------------------------------------------
# Deterministic synthetic parameters (shapes follow the PyTorch __init__)
# --------------------------------------------------------------------------
def init_up_params(key, in_ch, skip_ch, out_ch, t_dim, c_dim):
  res_in = out_ch + skip_ch
  keys = iter(jax.random.split(key, 26))

  def w(shape, scale=0.1):
    return (scale * jax.random.normal(next(keys), shape)).astype(jnp.float32)

  return {
      'up_w': w((in_ch, out_ch, 2, 2)), 'up_b': w((out_ch,)),
      'n1_w': 1.0 + w((res_in,)), 'n1_b': w((res_in,)),
      'conv1_w': w((out_ch, res_in, 3, 3)), 'conv1_b': w((out_ch,)),
      'n2_w': 1.0 + w((out_ch,)), 'n2_b': w((out_ch,)),
      'conv2_w': w((out_ch, out_ch, 3, 3)), 'conv2_b': w((out_ch,)),
      'time_w': w((out_ch, t_dim)), 'time_b': w((out_ch,)),
      'cond_w': w((out_ch, c_dim)), 'cond_b': w((out_ch,)),
      'sc_w': w((out_ch, res_in, 1, 1)), 'sc_b': w((out_ch,)),
      'an_w': 1.0 + w((out_ch,)), 'an_b': w((out_ch,)),
      'q_w': w((out_ch, out_ch, 1, 1)), 'q_b': w((out_ch,)),
      'k_w': w((out_ch, out_ch, 1, 1)), 'k_b': w((out_ch,)),
      'v_w': w((out_ch, out_ch, 1, 1)), 'v_b': w((out_ch,)),
      'proj_w': w((out_ch, out_ch, 1, 1)), 'proj_b': w((out_ch,)),
  }


if __name__ == "__main__":
  B, in_ch, skip_ch, out_ch = 2, 16, 8, 16
  t_dim, c_dim = 32, 32
  H = W = 8                                      # upsampled to 16x16

  key = jax.random.PRNGKey(0)
  kx, ks, kt, kc, kp = jax.random.split(key, 5)
  x = jax.random.normal(kx, (B, in_ch, H, W), jnp.float32)
  skip = jax.random.normal(ks, (B, skip_ch, 2 * H, 2 * W), jnp.float32)
  t_emb = jax.random.normal(kt, (B, t_dim), jnp.float32)
  c_emb = jax.random.normal(kc, (B, c_dim), jnp.float32)
  params = init_up_params(kp, in_ch, skip_ch, out_ch, t_dim, c_dim)

  out = jax.jit(up_forward)(params, x, skip, t_emb, c_emb)
  out = jax.block_until_ready(out)
  assert out.shape == (B, out_ch, 2 * H, 2 * W)
  assert jnp.all(jnp.isfinite(out))
  print("KERNEL_OK")
</pallas_src>

<mosaic_0001>
module attributes {stable_mosaic.version = 11 : i64} {
  func.func @_up_fused_kernel(%arg0: i32, %arg1: memref<1x16x256xbf16, #tpu.memory_space<vmem>>, %arg2: memref<1x8x256xf32, #tpu.memory_space<vmem>>, %arg3: memref<1x64x1xf32, #tpu.memory_space<vmem>>, %arg4: memref<8x256xf32, #tpu.memory_space<vmem>>, %arg5: memref<24x1xf32, #tpu.memory_space<vmem>>, %arg6: memref<24x1xf32, #tpu.memory_space<vmem>>, %arg7: memref<24x24xf32, #tpu.memory_space<vmem>>, %arg8: memref<144x24xbf16, #tpu.memory_space<vmem>>, %arg9: memref<16x1xf32, #tpu.memory_space<vmem>>, %arg10: memref<16x64xbf16, #tpu.memory_space<vmem>>, %arg11: memref<16x1xf32, #tpu.memory_space<vmem>>, %arg12: memref<16x1xf32, #tpu.memory_space<vmem>>, %arg13: memref<16x1xf32, #tpu.memory_space<vmem>>, %arg14: memref<16x16xf32, #tpu.memory_space<vmem>>, %arg15: memref<144x16xbf16, #tpu.memory_space<vmem>>, %arg16: memref<16x1xf32, #tpu.memory_space<vmem>>, %arg17: memref<16x24xbf16, #tpu.memory_space<vmem>>, %arg18: memref<16x1xf32, #tpu.memory_space<vmem>>, %arg19: memref<16x1xf32, #tpu.memory_space<vmem>>, %arg20: memref<16x1xf32, #tpu.memory_space<vmem>>, %arg21: memref<48x16xbf16, #tpu.memory_space<vmem>>, %arg22: memref<48x1xf32, #tpu.memory_space<vmem>>, %arg23: memref<16x16xbf16, #tpu.memory_space<vmem>>, %arg24: memref<16x1xf32, #tpu.memory_space<vmem>>, %arg25: memref<1x16x256xf32, #tpu.memory_space<vmem>>, %arg26: memref<24x256xf32, #tpu.memory_space<vmem>>) attributes {dimension_semantics = [#tpu.dimension_semantics<parallel>], iteration_bounds = array<i64: 2>, scalar_prefetch = 0 : i64, scratch_operands = 1 : i64, tpu.core_type = #tpu.core_type<tc>, window_params = [{transform_indices = @transform_0, window_bounds = array<i64: 1, 16, 256>}, {transform_indices = @transform_1, window_bounds = array<i64: 1, 8, 256>}, {transform_indices = @transform_2, window_bounds = array<i64: 1, 64, 1>}, {pipeline_mode = #tpu.pipeline_mode<synchronous>, transform_indices = @transform_3, window_bounds = array<i64: 8, 256>}, {pipeline_mode = #tpu.pipeline_mode<synchronous>, transform_indices = @transform_4, window_bounds = array<i64: 24, 1>}, {pipeline_mode = #tpu.pipeline_mode<synchronous>, transform_indices = @transform_5, window_bounds = array<i64: 24, 1>}, {pipeline_mode = #tpu.pipeline_mode<synchronous>, transform_indices = @transform_6, window_bounds = array<i64: 24, 24>}, {pipeline_mode = #tpu.pipeline_mode<synchronous>, transform_indices = @transform_7, window_bounds = array<i64: 144, 24>}, {pipeline_mode = #tpu.pipeline_mode<synchronous>, transform_indices = @transform_8, window_bounds = array<i64: 16, 1>}, {pipeline_mode = #tpu.pipeline_mode<synchronous>, transform_indices = @transform_9, window_bounds = array<i64: 16, 64>}, {pipeline_mode = #tpu.pipeline_mode<synchronous>, transform_indices = @transform_10, window_bounds = array<i64: 16, 1>}, {pipeline_mode = #tpu.pipeline_mode<synchronous>, transform_indices = @transform_11, window_bounds = array<i64: 16, 1>}, {pipeline_mode = #tpu.pipeline_mode<synchronous>, transform_indices = @transform_12, window_bounds = array<i64: 16, 1>}, {pipeline_mode = #tpu.pipeline_mode<synchronous>, transform_indices = @transform_13, window_bounds = array<i64: 16, 16>}, {pipeline_mode = #tpu.pipeline_mode<synchronous>, transform_indices = @transform_14, window_bounds = array<i64: 144, 16>}, {pipeline_mode = #tpu.pipeline_mode<synchronous>, transform_indices = @transform_15, window_bounds = array<i64: 16, 1>}, {pipeline_mode = #tpu.pipeline_mode<synchronous>, transform_indices = @transform_16, window_bounds = array<i64: 16, 24>}, {pipeline_mode = #tpu.pipeline_mode<synchronous>, transform_indices = @transform_17, window_bounds = array<i64: 16, 1>}, {pipeline_mode = #tpu.pipeline_mode<synchronous>, transform_indices = @transform_18, window_bounds = array<i64: 16, 1>}, {pipeline_mode = #tpu.pipeline_mode<synchronous>, transform_indices = @transform_19, window_bounds = array<i64: 16, 1>}, {pipeline_mode = #tpu.pipeline_mode<synchronous>, transform_indices = @transform_20, window_bounds = array<i64: 48, 16>}, {pipeline_mode = #tpu.pipeline_mode<synchronous>, transform_indices = @transform_21, window_bounds = array<i64: 48, 1>}, {pipeline_mode = #tpu.pipeline_mode<synchronous>, transform_indices = @transform_22, window_bounds = array<i64: 16, 16>}, {pipeline_mode = #tpu.pipeline_mode<synchronous>, transform_indices = @transform_23, window_bounds = array<i64: 16, 1>}, {transform_indices = @transform_24, window_bounds = array<i64: 1, 16, 256>}]} {
    %c0 = arith.constant 0 : index
    %c0_0 = arith.constant 0 : index
    %c0_1 = arith.constant 0 : index
    %0 = vector.load %arg1[%c0, %c0_0, %c0_1] : memref<1x16x256xbf16, #tpu.memory_space<vmem>>, vector<1x16x256xbf16>
    %1 = vector.shape_cast %0 : vector<1x16x256xbf16> to vector<16x256xbf16>
    %2 = arith.extf %1 : vector<16x256xbf16> to vector<16x256xf32>
    %c0_2 = arith.constant 0 : index
    %c0_3 = arith.constant 0 : index
    %3 = vector.load %arg26[%c0_2, %c0_3] : memref<24x256xf32, #tpu.memory_space<vmem>>, vector<16x256xf32>
    tpu.vector_store %arg26[%c0_2, %c0_3], %2 {strides = array<i32>} : memref<24x256xf32, #tpu.memory_space<vmem>>, vector<16x256xf32>,
    %c0_4 = arith.constant 0 : index
    %c0_5 = arith.constant 0 : index
    %c0_6 = arith.constant 0 : index
    %4 = vector.load %arg2[%c0_4, %c0_5, %c0_6] : memref<1x8x256xf32, #tpu.memory_space<vmem>>, vector<1x8x256xf32>
    %5 = vector.shape_cast %4 : vector<1x8x256xf32> to vector<8x256xf32>
    %c16 = arith.constant 16 : index
    %c0_7 = arith.constant 0 : index
    %6 = vector.load %arg26[%c16, %c0_7] : memref<24x256xf32, #tpu.memory_space<vmem>>, vector<8x256xf32>
    tpu.vector_store %arg26[%c16, %c0_7], %5 {strides = array<i32>} : memref<24x256xf32, #tpu.memory_space<vmem>>, vector<8x256xf32>,
    %c0_8 = arith.constant 0 : index
    %c0_9 = arith.constant 0 : index
    %7 = vector.load %arg26[%c0_8, %c0_9] : memref<24x256xf32, #tpu.memory_space<vmem>>, vector<24x256xf32>
    %cst = arith.constant dense<0.000000e+00> : vector<24xf32>
    %8 = vector.multi_reduction <add>, %7, %cst [1] : vector<24x256xf32> to vector<24xf32>
    %9 = vector.shape_cast %8 : vector<24xf32> to vector<24x1xf32>
    %c0_10 = arith.constant 0 : index
    %c0_11 = arith.constant 0 : index
    %10 = vector.load %arg7[%c0_10, %c0_11] : memref<24x24xf32, #tpu.memory_space<vmem>>, vector<24x24xf32>
    %cst_12 = arith.constant dense<0.000000e+00> : vector<24x1xf32>
    %11 = tpu.matmul %10, %9, %cst_12 {dimension_numbers = #tpu.dot_dimension_numbers<[1], [0], [0], [1], [0, 0, 1, 1], [], []>} : vector<24x24xf32>, vector<24x1xf32>, vector<24x1xf32> -> vector<24x1xf32>
    %12 = vector.broadcast %11 : vector<24x1xf32> to vector<24x256xf32>
    %13 = arith.subf %7, %12 : vector<24x256xf32>
    %14 = arith.mulf %13, %13 : vector<24x256xf32>
    %cst_13 = arith.constant dense<0.000000e+00> : vector<24xf32>
    %15 = vector.multi_reduction <add>, %14, %cst_13 [1] : vector<24x256xf32> to vector<24xf32>
    %16 = vector.shape_cast %15 : vector<24xf32> to vector<24x1xf32>
    %c0_14 = arith.constant 0 : index
    %c0_15 = arith.constant 0 : index
    %17 = vector.load %arg7[%c0_14, %c0_15] : memref<24x24xf32, #tpu.memory_space<vmem>>, vector<24x24xf32>
    %cst_16 = arith.constant dense<0.000000e+00> : vector<24x1xf32>
    %18 = tpu.matmul %17, %16, %cst_16 {dimension_numbers = #tpu.dot_dimension_numbers<[1], [0], [0], [1], [0, 0, 1, 1], [], []>} : vector<24x24xf32>, vector<24x1xf32>, vector<24x1xf32> -> vector<24x1xf32>
    %cst_17 = arith.constant 9.99999974E-6 : f32
    %19 = vector.broadcast %cst_17 : f32 to vector<24x1xf32>
    %20 = arith.addf %18, %19 : vector<24x1xf32>
    %21 = math.rsqrt %20 : vector<24x1xf32>
    %c0_18 = arith.constant 0 : index
    %c0_19 = arith.constant 0 : index
    %22 = vector.load %arg5[%c0_18, %c0_19] : memref<24x1xf32, #tpu.memory_space<vmem>>, vector<24x1xf32>
    %23 = arith.mulf %21, %22 : vector<24x1xf32>
    %24 = vector.broadcast %23 : vector<24x1xf32> to vector<24x256xf32>
    %25 = arith.mulf %13, %24 : vector<24x256xf32>
    %c0_20 = arith.constant 0 : index
    %c0_21 = arith.constant 0 : index
    %26 = vector.load %arg6[%c0_20, %c0_21] : memref<24x1xf32, #tpu.memory_space<vmem>>, vector<24x1xf32>
    %27 = vector.broadcast %26 : vector<24x1xf32> to vector<24x256xf32>
    %28 = arith.addf %25, %27 : vector<24x256xf32>
    %29 = arith.negf %28 : vector<24x256xf32>
    %30 = math.exp %29 : vector<24x256xf32>
    %cst_22 = arith.constant 1.000000e+00 : f32
    %31 = vector.broadcast %cst_22 : f32 to vector<24x256xf32>
    %32 = arith.addf %31, %30 : vector<24x256xf32>
    %33 = arith.divf %31, %32 : vector<24x256xf32>
    %34 = arith.mulf %28, %33 : vector<24x256xf32>
    %c0_23 = arith.constant 0 : index
    %c0_24 = arith.constant 0 : index
    %35 = vector.load %arg8[%c0_23, %c0_24] : memref<144x24xbf16, #tpu.memory_space<vmem>>, vector<144x24xbf16>
    %36 = arith.truncf %34 : vector<24x256xf32> to vector<24x256xbf16>
    %cst_25 = arith.constant dense<0.000000e+00> : vector<144x256xf32>
    %37 = tpu.matmul %35, %36, %cst_25 {dimension_numbers = #tpu.dot_dimension_numbers<[1], [0], [0], [1], [0, 0, 1, 1], [], []>} : vector<144x24xbf16>, vector<24x256xbf16>, vector<144x256xf32> -> vector<144x256xf32>
    %38 = vector.extract_strided_slice %37 {offsets = [64, 0], sizes = [16, 256], strides = [1, 1]} : vector<144x256xf32> to vector<16x256xf32>
    %39 = vector.extract_strided_slice %37 {offsets = [0, 0], sizes = [16, 256], strides = [1, 1]} : vector<144x256xf32> to vector<16x256xf32>
    %c17_i32 = arith.constant 17 : i32
    %40 = tpu.dynamic_rotate %39 by %c17_i32 dim 1 : vector<16x256xf32>, i32 -> vector<16x256xf32>
    %c0_26 = arith.constant 0 : index
    %c0_27 = arith.constant 0 : index
    %41 = vector.load %arg4[%c0_26, %c0_27] : memref<8x256xf32, #tpu.memory_space<vmem>>, vector<1x256xf32>
    %42 = vector.broadcast %41 : vector<1x256xf32> to vector<16x256xf32>
    %43 = arith.mulf %40, %42 : vector<16x256xf32>
    %44 = arith.addf %38, %43 : vector<16x256xf32>
    %45 = vector.extract_strided_slice %37 {offsets = [16, 0], sizes = [16, 256], strides = [1, 1]} : vector<144x256xf32> to vector<16x256xf32>
    %c16_i32 = arith.constant 16 : i32
    %46 = tpu.dynamic_rotate %45 by %c16_i32 dim 1 : vector<16x256xf32>, i32 -> vector<16x256xf32>
    %c1 = arith.constant 1 : index
    %c0_28 = arith.constant 0 : index
    %47 = vector.load %arg4[%c1, %c0_28] : memref<8x256xf32, #tpu.memory_space<vmem>>, vector<1x256xf32>
    %48 = vector.broadcast %47 : vector<1x256xf32> to vector<16x256xf32>
    %49 = arith.mulf %46, %48 : vector<16x256xf32>
    %50 = arith.addf %44, %49 : vector<16x256xf32>
    %51 = vector.extract_strided_slice %37 {offsets = [32, 0], sizes = [16, 256], strides = [1, 1]} : vector<144x256xf32> to vector<16x256xf32>
    %c15_i32 = arith.constant 15 : i32
    %52 = tpu.dynamic_rotate %51 by %c15_i32 dim 1 : vector<16x256xf32>, i32 -> vector<16x256xf32>
    %c2 = arith.constant 2 : index
    %c0_29 = arith.constant 0 : index
    %53 = vector.load %arg4[%c2, %c0_29] : memref<8x256xf32, #tpu.memory_space<vmem>>, vector<1x256xf32>
    %54 = vector.broadcast %53 : vector<1x256xf32> to vector<16x256xf32>
    %55 = arith.mulf %52, %54 : vector<16x256xf32>
    %56 = arith.addf %50, %55 : vector<16x256xf32>
    %57 = vector.extract_strided_slice %37 {offsets = [48, 0], sizes = [16, 256], strides = [1, 1]} : vector<144x256xf32> to vector<16x256xf32>
    %c1_i32 = arith.constant 1 : i32
    %58 = tpu.dynamic_rotate %57 by %c1_i32 dim 1 : vector<16x256xf32>, i32 -> vector<16x256xf32>
    %c3 = arith.constant 3 : index
    %c0_30 = arith.constant 0 : index
    %59 = vector.load %arg4[%c3, %c0_30] : memref<8x256xf32, #tpu.memory_space<vmem>>, vector<1x256xf32>
    %60 = vector.broadcast %59 : vector<1x256xf32> to vector<16x256xf32>
    %61 = arith.mulf %58, %60 : vector<16x256xf32>
    %62 = arith.addf %56, %61 : vector<16x256xf32>
    %63 = vector.extract_strided_slice %37 {offsets = [80, 0], sizes = [16, 256], strides = [1, 1]} : vector<144x256xf32> to vector<16x256xf32>
    %c255_i32 = arith.constant 255 : i32
    %64 = tpu.dynamic_rotate %63 by %c255_i32 dim 1 : vector<16x256xf32>, i32 -> vector<16x256xf32>
    %c4 = arith.constant 4 : index
    %c0_31 = arith.constant 0 : index
    %65 = vector.load %arg4[%c4, %c0_31] : memref<8x256xf32, #tpu.memory_space<vmem>>, vector<1x256xf32>
    %66 = vector.broadcast %65 : vector<1x256xf32> to vector<16x256xf32>
    %67 = arith.mulf %64, %66 : vector<16x256xf32>
    %68 = arith.addf %62, %67 : vector<16x256xf32>
    %69 = vector.extract_strided_slice %37 {offsets = [96, 0], sizes = [16, 256], strides = [1, 1]} : vector<144x256xf32> to vector<16x256xf32>
    %c241_i32 = arith.constant 241 : i32
    %70 = tpu.dynamic_rotate %69 by %c241_i32 dim 1 : vector<16x256xf32>, i32 -> vector<16x256xf32>
    %c5 = arith.constant 5 : index
    %c0_32 = arith.constant 0 : index
    %71 = vector.load %arg4[%c5, %c0_32] : memref<8x256xf32, #tpu.memory_space<vmem>>, vector<1x256xf32>
    %72 = vector.broadcast %71 : vector<1x256xf32> to vector<16x256xf32>
    %73 = arith.mulf %70, %72 : vector<16x256xf32>
    %74 = arith.addf %68, %73 : vector<16x256xf32>
    %75 = vector.extract_strided_slice %37 {offsets = [112, 0], sizes = [16, 256], strides = [1, 1]} : vector<144x256xf32> to vector<16x256xf32>
    %c240_i32 = arith.constant 240 : i32
    %76 = tpu.dynamic_rotate %75 by %c240_i32 dim 1 : vector<16x256xf32>, i32 -> vector<16x256xf32>
    %c6 = arith.constant 6 : index
    %c0_33 = arith.constant 0 : index
    %77 = vector.load %arg4[%c6, %c0_33] : memref<8x256xf32, #tpu.memory_space<vmem>>, vector<1x256xf32>
    %78 = vector.broadcast %77 : vector<1x256xf32> to vector<16x256xf32>
    %79 = arith.mulf %76, %78 : vector<16x256xf32>
    %80 = arith.addf %74, %79 : vector<16x256xf32>
    %81 = vector.extract_strided_slice %37 {offsets = [128, 0], sizes = [16, 256], strides = [1, 1]} : vector<144x256xf32> to vector<16x256xf32>
    %c239_i32 = arith.constant 239 : i32
    %82 = tpu.dynamic_rotate %81 by %c239_i32 dim 1 : vector<16x256xf32>, i32 -> vector<16x256xf32>
    %c7 = arith.constant 7 : index
    %c0_34 = arith.constant 0 : index
    %83 = vector.load %arg4[%c7, %c0_34] : memref<8x256xf32, #tpu.memory_space<vmem>>, vector<1x256xf32>
    %84 = vector.broadcast %83 : vector<1x256xf32> to vector<16x256xf32>
    %85 = arith.mulf %82, %84 : vector<16x256xf32>
    %86 = arith.addf %80, %85 : vector<16x256xf32>
    %c0_35 = arith.constant 0 : index
    %c0_36 = arith.constant 0 : index
    %87 = vector.load %arg9[%c0_35, %c0_36] : memref<16x1xf32, #tpu.memory_space<vmem>>, vector<16x1xf32>
    %88 = vector.broadcast %87 : vector<16x1xf32> to vector<16x256xf32>
    %89 = arith.addf %86, %88 : vector<16x256xf32>
    %c0_37 = arith.constant 0 : index
    %c0_38 = arith.constant 0 : index
    %90 = vector.load %arg10[%c0_37, %c0_38] : memref<16x64xbf16, #tpu.memory_space<vmem>>, vector<16x64xbf16>
    %c0_39 = arith.constant 0 : index
    %c0_40 = arith.constant 0 : index
    %c0_41 = arith.constant 0 : index
    %91 = vector.load %arg3[%c0_39, %c0_40, %c0_41] : memref<1x64x1xf32, #tpu.memory_space<vmem>>, vector<1x64x1xf32>
    %92 = vector.shape_cast %91 : vector<1x64x1xf32> to vector<64x1xf32>
    %93 = arith.truncf %92 : vector<64x1xf32> to vector<64x1xbf16>
    %cst_42 = arith.constant dense<0.000000e+00> : vector<16x1xf32>
    %94 = tpu.matmul %90, %93, %cst_42 {dimension_numbers = #tpu.dot_dimension_numbers<[1], [0], [0], [1], [0, 0, 1, 1], [], []>} : vector<16x64xbf16>, vector<64x1xbf16>, vector<16x1xf32> -> vector<16x1xf32>
    %c0_43 = arith.constant 0 : index
    %c0_44 = arith.constant 0 : index
    %95 = vector.load %arg11[%c0_43, %c0_44] : memref<16x1xf32, #tpu.memory_space<vmem>>, vector<16x1xf32>
    %96 = arith.addf %94, %95 : vector<16x1xf32>
    %97 = vector.broadcast %96 : vector<16x1xf32> to vector<16x256xf32>
    %98 = arith.addf %89, %97 : vector<16x256xf32>
    %cst_45 = arith.constant dense<0.000000e+00> : vector<16xf32>
    %99 = vector.multi_reduction <add>, %98, %cst_45 [1] : vector<16x256xf32> to vector<16xf32>
    %100 = vector.shape_cast %99 : vector<16xf32> to vector<16x1xf32>
    %c0_46 = arith.constant 0 : index
    %c0_47 = arith.constant 0 : index
    %101 = vector.load %arg14[%c0_46, %c0_47] : memref<16x16xf32, #tpu.memory_space<vmem>>, vector<16x16xf32>
    %cst_48 = arith.constant dense<0.000000e+00> : vector<16x1xf32>
    %102 = tpu.matmul %101, %100, %cst_48 {dimension_numbers = #tpu.dot_dimension_numbers<[1], [0], [0], [1], [0, 0, 1, 1], [], []>} : vector<16x16xf32>, vector<16x1xf32>, vector<16x1xf32> -> vector<16x1xf32>
    %103 = vector.broadcast %102 : vector<16x1xf32> to vector<16x256xf32>
    %104 = arith.subf %98, %103 : vector<16x256xf32>
    %105 = arith.mulf %104, %104 : vector<16x256xf32>
    %cst_49 = arith.constant dense<0.000000e+00> : vector<16xf32>
    %106 = vector.multi_reduction <add>, %105, %cst_49 [1] : vector<16x256xf32> to vector<16xf32>
    %107 = vector.shape_cast %106 : vector<16xf32> to vector<16x1xf32>
    %c0_50 = arith.constant 0 : index
    %c0_51 = arith.constant 0 : index
    %108 = vector.load %arg14[%c0_50, %c0_51] : memref<16x16xf32, #tpu.memory_space<vmem>>, vector<16x16xf32>
    %cst_52 = arith.constant dense<0.000000e+00> : vector<16x1xf32>
    %109 = tpu.matmul %108, %107, %cst_52 {dimension_numbers = #tpu.dot_dimension_numbers<[1], [0], [0], [1], [0, 0, 1, 1], [], []>} : vector<16x16xf32>, vector<16x1xf32>, vector<16x1xf32> -> vector<16x1xf32>
    %cst_53 = arith.constant 9.99999974E-6 : f32
    %110 = vector.broadcast %cst_53 : f32 to vector<16x1xf32>
    %111 = arith.addf %109, %110 : vector<16x1xf32>
    %112 = math.rsqrt %111 : vector<16x1xf32>
    %c0_54 = arith.constant 0 : index
    %c0_55 = arith.constant 0 : index
    %113 = vector.load %arg12[%c0_54, %c0_55] : memref<16x1xf32, #tpu.memory_space<vmem>>, vector<16x1xf32>
    %114 = arith.mulf %112, %113 : vector<16x1xf32>
    %115 = vector.broadcast %114 : vector<16x1xf32> to vector<16x256xf32>
    %116 = arith.mulf %104, %115 : vector<16x256xf32>
    %c0_56 = arith.constant 0 : index
    %c0_57 = arith.constant 0 : index
    %117 = vector.load %arg13[%c0_56, %c0_57] : memref<16x1xf32, #tpu.memory_space<vmem>>, vector<16x1xf32>
    %118 = vector.broadcast %117 : vector<16x1xf32> to vector<16x256xf32>
    %119 = arith.addf %116, %118 : vector<16x256xf32>
    %120 = arith.negf %119 : vector<16x256xf32>
    %121 = math.exp %120 : vector<16x256xf32>
    %cst_58 = arith.constant 1.000000e+00 : f32
    %122 = vector.broadcast %cst_58 : f32 to vector<16x256xf32>
    %123 = arith.addf %122, %121 : vector<16x256xf32>
    %124 = arith.divf %122, %123 : vector<16x256xf32>
    %125 = arith.mulf %119, %124 : vector<16x256xf32>
    %c0_59 = arith.constant 0 : index
    %c0_60 = arith.constant 0 : index
    %126 = vector.load %arg15[%c0_59, %c0_60] : memref<144x16xbf16, #tpu.memory_space<vmem>>, vector<144x16xbf16>
    %127 = arith.truncf %125 : vector<16x256xf32> to vector<16x256xbf16>
    %cst_61 = arith.constant dense<0.000000e+00> : vector<144x256xf32>
    %128 = tpu.matmul %126, %127, %cst_61 {dimension_numbers = #tpu.dot_dimension_numbers<[1], [0], [0], [1], [0, 0, 1, 1], [], []>} : vector<144x16xbf16>, vector<16x256xbf16>, vector<144x256xf32> -> vector<144x256xf32>
    %129 = vector.extract_strided_slice %128 {offsets = [64, 0], sizes = [16, 256], strides = [1, 1]} : vector<144x256xf32> to vector<16x256xf32>
    %130 = vector.extract_strided_slice %128 {offsets = [0, 0], sizes = [16, 256], strides = [1, 1]} : vector<144x256xf32> to vector<16x256xf32>
    %c17_i32_62 = arith.constant 17 : i32
    %131 = tpu.dynamic_rotate %130 by %c17_i32_62 dim 1 : vector<16x256xf32>, i32 -> vector<16x256xf32>
    %c0_63 = arith.constant 0 : index
    %c0_64 = arith.constant 0 : index
    %132 = vector.load %arg4[%c0_63, %c0_64] : memref<8x256xf32, #tpu.memory_space<vmem>>, vector<1x256xf32>
    %133 = vector.broadcast %132 : vector<1x256xf32> to vector<16x256xf32>
    %134 = arith.mulf %131, %133 : vector<16x256xf32>
    %135 = arith.addf %129, %134 : vector<16x256xf32>
    %136 = vector.extract_strided_slice %128 {offsets = [16, 0], sizes = [16, 256], strides = [1, 1]} : vector<144x256xf32> to vector<16x256xf32>
    %c16_i32_65 = arith.constant 16 : i32
    %137 = tpu.dynamic_rotate %136 by %c16_i32_65 dim 1 : vector<16x256xf32>, i32 -> vector<16x256xf32>
    %c1_66 = arith.constant 1 : index
    %c0_67 = arith.constant 0 : index
    %138 = vector.load %arg4[%c1_66, %c0_67] : memref<8x256xf32, #tpu.memory_space<vmem>>, vector<1x256xf32>
    %139 = vector.broadcast %138 : vector<1x256xf32> to vector<16x256xf32>
    %140 = arith.mulf %137, %139 : vector<16x256xf32>
    %141 = arith.addf %135, %140 : vector<16x256xf32>
    %142 = vector.extract_strided_slice %128 {offsets = [32, 0], sizes = [16, 256], strides = [1, 1]} : vector<144x256xf32> to vector<16x256xf32>
    %c15_i32_68 = arith.constant 15 : i32
    %143 = tpu.dynamic_rotate %142 by %c15_i32_68 dim 1 : vector<16x256xf32>, i32 -> vector<16x256xf32>
    %c2_69 = arith.constant 2 : index
    %c0_70 = arith.constant 0 : index
    %144 = vector.load %arg4[%c2_69, %c0_70] : memref<8x256xf32, #tpu.memory_space<vmem>>, vector<1x256xf32>
    %145 = vector.broadcast %144 : vector<1x256xf32> to vector<16x256xf32>
    %146 = arith.mulf %143, %145 : vector<16x256xf32>
    %147 = arith.addf %141, %146 : vector<16x256xf32>
    %148 = vector.extract_strided_slice %128 {offsets = [48, 0], sizes = [16, 256], strides = [1, 1]} : vector<144x256xf32> to vector<16x256xf32>
    %c1_i32_71 = arith.constant 1 : i32
    %149 = tpu.dynamic_rotate %148 by %c1_i32_71 dim 1 : vector<16x256xf32>, i32 -> vector<16x256xf32>
    %c3_72 = arith.constant 3 : index
    %c0_73 = arith.constant 0 : index
    %150 = vector.load %arg4[%c3_72, %c0_73] : memref<8x256xf32, #tpu.memory_space<vmem>>, vector<1x256xf32>
    %151 = vector.broadcast %150 : vector<1x256xf32> to vector<16x256xf32>
    %152 = arith.mulf %149, %151 : vector<16x256xf32>
    %153 = arith.addf %147, %152 : vector<16x256xf32>
    %154 = vector.extract_strided_slice %128 {offsets = [80, 0], sizes = [16, 256], strides = [1, 1]} : vector<144x256xf32> to vector<16x256xf32>
    %c255_i32_74 = arith.constant 255 : i32
    %155 = tpu.dynamic_rotate %154 by %c255_i32_74 dim 1 : vector<16x256xf32>, i32 -> vector<16x256xf32>
    %c4_75 = arith.constant 4 : index
    %c0_76 = arith.constant 0 : index
    %156 = vector.load %arg4[%c4_75, %c0_76] : memref<8x256xf32, #tpu.memory_space<vmem>>, vector<1x256xf32>
    %157 = vector.broadcast %156 : vector<1x256xf32> to vector<16x256xf32>
    %158 = arith.mulf %155, %157 : vector<16x256xf32>
    %159 = arith.addf %153, %158 : vector<16x256xf32>
    %160 = vector.extract_strided_slice %128 {offsets = [96, 0], sizes = [16, 256], strides = [1, 1]} : vector<144x256xf32> to vector<16x256xf32>
    %c241_i32_77 = arith.constant 241 : i32
    %161 = tpu.dynamic_rotate %160 by %c241_i32_77 dim 1 : vector<16x256xf32>, i32 -> vector<16x256xf32>
    %c5_78 = arith.constant 5 : index
    %c0_79 = arith.constant 0 : index
    %162 = vector.load %arg4[%c5_78, %c0_79] : memref<8x256xf32, #tpu.memory_space<vmem>>, vector<1x256xf32>
    %163 = vector.broadcast %162 : vector<1x256xf32> to vector<16x256xf32>
    %164 = arith.mulf %161, %163 : vector<16x256xf32>
    %165 = arith.addf %159, %164 : vector<16x256xf32>
    %166 = vector.extract_strided_slice %128 {offsets = [112, 0], sizes = [16, 256], strides = [1, 1]} : vector<144x256xf32> to vector<16x256xf32>
    %c240_i32_80 = arith.constant 240 : i32
    %167 = tpu.dynamic_rotate %166 by %c240_i32_80 dim 1 : vector<16x256xf32>, i32 -> vector<16x256xf32>
    %c6_81 = arith.constant 6 : index
    %c0_82 = arith.constant 0 : index
    %168 = vector.load %arg4[%c6_81, %c0_82] : memref<8x256xf32, #tpu.memory_space<vmem>>, vector<1x256xf32>
    %169 = vector.broadcast %168 : vector<1x256xf32> to vector<16x256xf32>
    %170 = arith.mulf %167, %169 : vector<16x256xf32>
    %171 = arith.addf %165, %170 : vector<16x256xf32>
    %172 = vector.extract_strided_slice %128 {offsets = [128, 0], sizes = [16, 256], strides = [1, 1]} : vector<144x256xf32> to vector<16x256xf32>
    %c239_i32_83 = arith.constant 239 : i32
    %173 = tpu.dynamic_rotate %172 by %c239_i32_83 dim 1 : vector<16x256xf32>, i32 -> vector<16x256xf32>
    %c7_84 = arith.constant 7 : index
    %c0_85 = arith.constant 0 : index
    %174 = vector.load %arg4[%c7_84, %c0_85] : memref<8x256xf32, #tpu.memory_space<vmem>>, vector<1x256xf32>
    %175 = vector.broadcast %174 : vector<1x256xf32> to vector<16x256xf32>
    %176 = arith.mulf %173, %175 : vector<16x256xf32>
    %177 = arith.addf %171, %176 : vector<16x256xf32>
    %c0_86 = arith.constant 0 : index
    %c0_87 = arith.constant 0 : index
    %178 = vector.load %arg16[%c0_86, %c0_87] : memref<16x1xf32, #tpu.memory_space<vmem>>, vector<16x1xf32>
    %179 = vector.broadcast %178 : vector<16x1xf32> to vector<16x256xf32>
    %180 = arith.addf %177, %179 : vector<16x256xf32>
    %c0_88 = arith.constant 0 : index
    %c0_89 = arith.constant 0 : index
    %181 = vector.load %arg17[%c0_88, %c0_89] : memref<16x24xbf16, #tpu.memory_space<vmem>>, vector<16x24xbf16>
    %182 = arith.truncf %7 : vector<24x256xf32> to vector<24x256xbf16>
    %cst_90 = arith.constant dense<0.000000e+00> : vector<16x256xf32>
    %183 = tpu.matmul %181, %182, %cst_90 {dimension_numbers = #tpu.dot_dimension_numbers<[1], [0], [0], [1], [0, 0, 1, 1], [], []>} : vector<16x24xbf16>, vector<24x256xbf16>, vector<16x256xf32> -> vector<16x256xf32>
    %c0_91 = arith.constant 0 : index
    %c0_92 = arith.constant 0 : index
    %184 = vector.load %arg18[%c0_91, %c0_92] : memref<16x1xf32, #tpu.memory_space<vmem>>, vector<16x1xf32>
    %185 = vector.broadcast %184 : vector<16x1xf32> to vector<16x256xf32>
    %186 = arith.addf %183, %185 : vector<16x256xf32>
    %187 = arith.addf %180, %186 : vector<16x256xf32>
    %cst_93 = arith.constant dense<0.000000e+00> : vector<16xf32>
    %188 = vector.multi_reduction <add>, %187, %cst_93 [1] : vector<16x256xf32> to vector<16xf32>
    %189 = vector.shape_cast %188 : vector<16xf32> to vector<16x1xf32>
    %c0_94 = arith.constant 0 : index
    %c0_95 = arith.constant 0 : index
    %190 = vector.load %arg14[%c0_94, %c0_95] : memref<16x16xf32, #tpu.memory_space<vmem>>, vector<16x16xf32>
    %cst_96 = arith.constant dense<0.000000e+00> : vector<16x1xf32>
    %191 = tpu.matmul %190, %189, %cst_96 {dimension_numbers = #tpu.dot_dimension_numbers<[1], [0], [0], [1], [0, 0, 1, 1], [], []>} : vector<16x16xf32>, vector<16x1xf32>, vector<16x1xf32> -> vector<16x1xf32>
    %192 = vector.broadcast %191 : vector<16x1xf32> to vector<16x256xf32>
    %193 = arith.subf %187, %192 : vector<16x256xf32>
    %194 = arith.mulf %193, %193 : vector<16x256xf32>
    %cst_97 = arith.constant dense<0.000000e+00> : vector<16xf32>
    %195 = vector.multi_reduction <add>, %194, %cst_97 [1] : vector<16x256xf32> to vector<16xf32>
    %196 = vector.shape_cast %195 : vector<16xf32> to vector<16x1xf32>
    %c0_98 = arith.constant 0 : index
    %c0_99 = arith.constant 0 : index
    %197 = vector.load %arg14[%c0_98, %c0_99] : memref<16x16xf32, #tpu.memory_space<vmem>>, vector<16x16xf32>
    %cst_100 = arith.constant dense<0.000000e+00> : vector<16x1xf32>
    %198 = tpu.matmul %197, %196, %cst_100 {dimension_numbers = #tpu.dot_dimension_numbers<[1], [0], [0], [1], [0, 0, 1, 1], [], []>} : vector<16x16xf32>, vector<16x1xf32>, vector<16x1xf32> -> vector<16x1xf32>
    %cst_101 = arith.constant 9.99999974E-6 : f32
    %199 = vector.broadcast %cst_101 : f32 to vector<16x1xf32>
    %200 = arith.addf %198, %199 : vector<16x1xf32>
    %201 = math.rsqrt %200 : vector<16x1xf32>
    %c0_102 = arith.constant 0 : index
    %c0_103 = arith.constant 0 : index
    %202 = vector.load %arg19[%c0_102, %c0_103] : memref<16x1xf32, #tpu.memory_space<vmem>>, vector<16x1xf32>
    %203 = arith.mulf %201, %202 : vector<16x1xf32>
    %204 = vector.broadcast %203 : vector<16x1xf32> to vector<16x256xf32>
    %205 = arith.mulf %193, %204 : vector<16x256xf32>
    %c0_104 = arith.constant 0 : index
    %c0_105 = arith.constant 0 : index
    %206 = vector.load %arg20[%c0_104, %c0_105] : memref<16x1xf32, #tpu.memory_space<vmem>>, vector<16x1xf32>
    %207 = vector.broadcast %206 : vector<16x1xf32> to vector<16x256xf32>
    %208 = arith.addf %205, %207 : vector<16x256xf32>
    %c0_106 = arith.constant 0 : index
    %c0_107 = arith.constant 0 : index
    %209 = vector.load %arg21[%c0_106, %c0_107] : memref<48x16xbf16, #tpu.memory_space<vmem>>, vector<48x16xbf16>
    %210 = arith.truncf %208 : vector<16x256xf32> to vector<16x256xbf16>
    %cst_108 = arith.constant dense<0.000000e+00> : vector<48x256xf32>
    %211 = tpu.matmul %209, %210, %cst_108 {dimension_numbers = #tpu.dot_dimension_numbers<[1], [0], [0], [1], [0, 0, 1, 1], [], []>} : vector<48x16xbf16>, vector<16x256xbf16>, vector<48x256xf32> -> vector<48x256xf32>
    %c0_109 = arith.constant 0 : index
    %c0_110 = arith.constant 0 : index
    %212 = vector.load %arg22[%c0_109, %c0_110] : memref<48x1xf32, #tpu.memory_space<vmem>>, vector<48x1xf32>
    %213 = vector.broadcast %212 : vector<48x1xf32> to vector<48x256xf32>
    %214 = arith.addf %211, %213 : vector<48x256xf32>
    %215 = vector.extract_strided_slice %214 {offsets = [0, 0], sizes = [16, 256], strides = [1, 1]} : vector<48x256xf32> to vector<16x256xf32>
    %216 = vector.extract_strided_slice %214 {offsets = [16, 0], sizes = [16, 256], strides = [1, 1]} : vector<48x256xf32> to vector<16x256xf32>
    %217 = vector.extract_strided_slice %214 {offsets = [32, 0], sizes = [16, 256], strides = [1, 1]} : vector<48x256xf32> to vector<16x256xf32>
    %218 = arith.truncf %215 : vector<16x256xf32> to vector<16x256xbf16>
    %219 = arith.truncf %216 : vector<16x256xf32> to vector<16x256xbf16>
    %cst_111 = arith.constant dense<0.000000e+00> : vector<256x256xf32>
    %220 = tpu.matmul %218, %219, %cst_111 {dimension_numbers = #tpu.dot_dimension_numbers<[0], [0], [1], [1], [0, 1, 1, 1], [], []>} : vector<16x256xbf16>, vector<16x256xbf16>, vector<256x256xf32> -> vector<256x256xf32>
    %cst_112 = arith.constant dense<0xFF800000> : vector<256xf32>
    %221 = vector.multi_reduction <maximumf>, %220, %cst_112 [1] : vector<256x256xf32> to vector<256xf32>
    %222 = vector.shape_cast %221 : vector<256xf32> to vector<256x1xf32>
    %223 = vector.broadcast %222 : vector<256x1xf32> to vector<256x256xf32>
    %224 = arith.subf %220, %223 : vector<256x256xf32>
    %225 = math.exp %224 : vector<256x256xf32>
    %cst_113 = arith.constant dense<0.000000e+00> : vector<256xf32>
    %226 = vector.multi_reduction <add>, %225, %cst_113 [1] : vector<256x256xf32> to vector<256xf32>
    %227 = vector.shape_cast %226 : vector<256xf32> to vector<256x1xf32>
    %228 = tpu.reciprocal %227 {approx = true} : vector<256x1xf32> -> vector<256x1xf32>
    %229 = vector.broadcast %228 : vector<256x1xf32> to vector<256x256xf32>
    %230 = arith.mulf %225, %229 : vector<256x256xf32>
    %231 = arith.truncf %217 : vector<16x256xf32> to vector<16x256xbf16>
    %232 = arith.truncf %230 : vector<256x256xf32> to vector<256x256xbf16>
    %cst_114 = arith.constant dense<0.000000e+00> : vector<16x256xf32>
    %233 = tpu.matmul %231, %232, %cst_114 {dimension_numbers = #tpu.dot_dimension_numbers<[1], [1], [0], [0], [0, 0, 1, 0], [], []>} : vector<16x256xbf16>, vector<256x256xbf16>, vector<16x256xf32> -> vector<16x256xf32>
    %c0_115 = arith.constant 0 : index
    %c0_116 = arith.constant 0 : index
    %234 = vector.load %arg23[%c0_115, %c0_116] : memref<16x16xbf16, #tpu.memory_space<vmem>>, vector<16x16xbf16>
    %235 = arith.truncf %233 : vector<16x256xf32> to vector<16x256xbf16>
    %cst_117 = arith.constant dense<0.000000e+00> : vector<16x256xf32>
    %236 = tpu.matmul %234, %235, %cst_117 {dimension_numbers = #tpu.dot_dimension_numbers<[1], [0], [0], [1], [0, 0, 1, 1], [], []>} : vector<16x16xbf16>, vector<16x256xbf16>, vector<16x256xf32> -> vector<16x256xf32>
    %c0_118 = arith.constant 0 : index
    %c0_119 = arith.constant 0 : index
    %237 = vector.load %arg24[%c0_118, %c0_119] : memref<16x1xf32, #tpu.memory_space<vmem>>, vector<16x1xf32>
    %238 = vector.broadcast %237 : vector<16x1xf32> to vector<16x256xf32>
    %239 = arith.addf %236, %238 : vector<16x256xf32>
    %240 = arith.addf %187, %239 : vector<16x256xf32>
    %c0_120 = arith.constant 0 : index
    %c0_121 = arith.constant 0 : index
    %c0_122 = arith.constant 0 : index
    %241 = vector.load %arg25[%c0_120, %c0_121, %c0_122] : memref<1x16x256xf32, #tpu.memory_space<vmem>>, vector<1x16x256xf32>
    %242 = vector.shape_cast %241 : vector<1x16x256xf32> to vector<16x256xf32>
    %243 = vector.shape_cast %240 : vector<16x256xf32> to vector<1x16x256xf32>
    tpu.vector_store %arg25[%c0_120, %c0_121, %c0_122], %243 {strides = array<i32>} : memref<1x16x256xf32, #tpu.memory_space<vmem>>, vector<1x16x256xf32>,
    return
  }
  func.func @transform_0(%arg0: i32) -> (i32, i32, i32) {
    %c0_i32 = arith.constant 0 : i32
    %c0_i32_0 = arith.constant 0 : i32
    %c0_i32_1 = arith.constant 0 : i32
    return %arg0, %c0_i32, %c0_i32_0 : i32, i32, i32
  }
  func.func @transform_1(%arg0: i32) -> (i32, i32, i32) {
    %c0_i32 = arith.constant 0 : i32
    %c0_i32_0 = arith.constant 0 : i32
    %c0_i32_1 = arith.constant 0 : i32
    return %arg0, %c0_i32, %c0_i32_0 : i32, i32, i32
  }
  func.func @transform_2(%arg0: i32) -> (i32, i32, i32) {
    %c0_i32 = arith.constant 0 : i32
    %c0_i32_0 = arith.constant 0 : i32
    %c0_i32_1 = arith.constant 0 : i32
    return %arg0, %c0_i32, %c0_i32_0 : i32, i32, i32
  }
  func.func @transform_3(%arg0: i32) -> (i32, i32) {
    %c0_i32 = arith.constant 0 : i32
    %c0_i32_0 = arith.constant 0 : i32
    %c0_i32_1 = arith.constant 0 : i32
    return %c0_i32, %c0_i32_0 : i32, i32
  }
  func.func @transform_4(%arg0: i32) -> (i32, i32) {
    %c0_i32 = arith.constant 0 : i32
    %c0_i32_0 = arith.constant 0 : i32
    %c0_i32_1 = arith.constant 0 : i32
    return %c0_i32, %c0_i32_0 : i32, i32
  }
  func.func @transform_5(%arg0: i32) -> (i32, i32) {
    %c0_i32 = arith.constant 0 : i32
    %c0_i32_0 = arith.constant 0 : i32
    %c0_i32_1 = arith.constant 0 : i32
    return %c0_i32, %c0_i32_0 : i32, i32
  }
  func.func @transform_6(%arg0: i32) -> (i32, i32) {
    %c0_i32 = arith.constant 0 : i32
    %c0_i32_0 = arith.constant 0 : i32
    %c0_i32_1 = arith.constant 0 : i32
    return %c0_i32, %c0_i32_0 : i32, i32
  }
  func.func @transform_7(%arg0: i32) -> (i32, i32) {
    %c0_i32 = arith.constant 0 : i32
    %c0_i32_0 = arith.constant 0 : i32
    %c0_i32_1 = arith.constant 0 : i32
    return %c0_i32, %c0_i32_0 : i32, i32
  }
  func.func @transform_8(%arg0: i32) -> (i32, i32) {
    %c0_i32 = arith.constant 0 : i32
    %c0_i32_0 = arith.constant 0 : i32
    %c0_i32_1 = arith.constant 0 : i32
    return %c0_i32, %c0_i32_0 : i32, i32
  }
  func.func @transform_9(%arg0: i32) -> (i32, i32) {
    %c0_i32 = arith.constant 0 : i32
    %c0_i32_0 = arith.constant 0 : i32
    %c0_i32_1 = arith.constant 0 : i32
    return %c0_i32, %c0_i32_0 : i32, i32
  }
  func.func @transform_10(%arg0: i32) -> (i32, i32) {
    %c0_i32 = arith.constant 0 : i32
    %c0_i32_0 = arith.constant 0 : i32
    %c0_i32_1 = arith.constant 0 : i32
    return %c0_i32, %c0_i32_0 : i32, i32
  }
  func.func @transform_11(%arg0: i32) -> (i32, i32) {
    %c0_i32 = arith.constant 0 : i32
    %c0_i32_0 = arith.constant 0 : i32
    %c0_i32_1 = arith.constant 0 : i32
    return %c0_i32, %c0_i32_0 : i32, i32
  }
  func.func @transform_12(%arg0: i32) -> (i32, i32) {
    %c0_i32 = arith.constant 0 : i32
    %c0_i32_0 = arith.constant 0 : i32
    %c0_i32_1 = arith.constant 0 : i32
    return %c0_i32, %c0_i32_0 : i32, i32
  }
  func.func @transform_13(%arg0: i32) -> (i32, i32) {
    %c0_i32 = arith.constant 0 : i32
    %c0_i32_0 = arith.constant 0 : i32
    %c0_i32_1 = arith.constant 0 : i32
    return %c0_i32, %c0_i32_0 : i32, i32
  }
  func.func @transform_14(%arg0: i32) -> (i32, i32) {
    %c0_i32 = arith.constant 0 : i32
    %c0_i32_0 = arith.constant 0 : i32
    %c0_i32_1 = arith.constant 0 : i32
    return %c0_i32, %c0_i32_0 : i32, i32
  }
  func.func @transform_15(%arg0: i32) -> (i32, i32) {
    %c0_i32 = arith.constant 0 : i32
    %c0_i32_0 = arith.constant 0 : i32
    %c0_i32_1 = arith.constant 0 : i32
    return %c0_i32, %c0_i32_0 : i32, i32
  }
  func.func @transform_16(%arg0: i32) -> (i32, i32) {
    %c0_i32 = arith.constant 0 : i32
    %c0_i32_0 = arith.constant 0 : i32
    %c0_i32_1 = arith.constant 0 : i32
    return %c0_i32, %c0_i32_0 : i32, i32
  }
  func.func @transform_17(%arg0: i32) -> (i32, i32) {
    %c0_i32 = arith.constant 0 : i32
    %c0_i32_0 = arith.constant 0 : i32
    %c0_i32_1 = arith.constant 0 : i32
    return %c0_i32, %c0_i32_0 : i32, i32
  }
  func.func @transform_18(%arg0: i32) -> (i32, i32) {
    %c0_i32 = arith.constant 0 : i32
    %c0_i32_0 = arith.constant 0 : i32
    %c0_i32_1 = arith.constant 0 : i32
    return %c0_i32, %c0_i32_0 : i32, i32
  }
  func.func @transform_19(%arg0: i32) -> (i32, i32) {
    %c0_i32 = arith.constant 0 : i32
    %c0_i32_0 = arith.constant 0 : i32
    %c0_i32_1 = arith.constant 0 : i32
    return %c0_i32, %c0_i32_0 : i32, i32
  }
  func.func @transform_20(%arg0: i32) -> (i32, i32) {
    %c0_i32 = arith.constant 0 : i32
    %c0_i32_0 = arith.constant 0 : i32
    %c0_i32_1 = arith.constant 0 : i32
    return %c0_i32, %c0_i32_0 : i32, i32
  }
  func.func @transform_21(%arg0: i32) -> (i32, i32) {
    %c0_i32 = arith.constant 0 : i32
    %c0_i32_0 = arith.constant 0 : i32
    %c0_i32_1 = arith.constant 0 : i32
    return %c0_i32, %c0_i32_0 : i32, i32
  }
  func.func @transform_22(%arg0: i32) -> (i32, i32) {
    %c0_i32 = arith.constant 0 : i32
    %c0_i32_0 = arith.constant 0 : i32
    %c0_i32_1 = arith.constant 0 : i32
    return %c0_i32, %c0_i32_0 : i32, i32
  }
  func.func @transform_23(%arg0: i32) -> (i32, i32) {
    %c0_i32 = arith.constant 0 : i32
    %c0_i32_0 = arith.constant 0 : i32
    %c0_i32_1 = arith.constant 0 : i32
    return %c0_i32, %c0_i32_0 : i32, i32
  }
  func.func @transform_24(%arg0: i32) -> (i32, i32, i32) {
    %c0_i32 = arith.constant 0 : i32
    %c0_i32_0 = arith.constant 0 : i32
    %c0_i32_1 = arith.constant 0 : i32
    return %arg0, %c0_i32, %c0_i32_0 : i32, i32, i32
  }
}

</mosaic_0001>

<bundles_post_ra>
// kernel: up_forward.1
= control target key start
LH: loop header
LB: loop body
LE: loop exit
PB: predicated region body
PF: predicated region fallthrough
CT: control target
= control target key end

     0   :  { %s5801_s0 = inlined_call_operand.vmem [shape: bf16[2,16,256], index: 0, kind: input, shape index: {}]   ;;  %s5802_s1 = inlined_call_operand.vmem [shape: f32[2,8,256], index: 1, kind: input, shape index: {}]   ;;  %s5803_s2 = inlined_call_operand.vmem [shape: f32[2,64,1], index: 2, kind: input, shape index: {}]   ;;  %s5804_s3 = inlined_call_operand.vmem [shape: f32[8,256], index: 3, kind: input, shape index: {}]   ;;  %s5805_s4 = inlined_call_operand.vmem [shape: f32[24,1], index: 4, kind: input, shape index: {}]   ;;  %s5806_s5 = inlined_call_operand.vmem [shape: f32[24,1], index: 5, kind: input, shape index: {}]   ;;  %s5807_s6 = inlined_call_operand.vmem [shape: f32[24,24], index: 6, kind: input, shape index: {}]   ;;  %s5808_s7 = inlined_call_operand.vmem [shape: bf16[144,24], index: 7, kind: input, shape index: {}]   ;;  %s5809_s8 = inlined_call_operand.vmem [shape: f32[16,1], index: 8, kind: input, shape index: {}]   ;;  %s5810_s9 = inlined_call_operand.vmem [shape: bf16[16,64], index: 9, kind: input, shape index: {}]   ;;  %s5811_s10 = inlined_call_operand.vmem [shape: f32[16,1], index: 10, kind: input, shape index: {}]   ;;  %s5812_s11 = inlined_call_operand.vmem [shape: f32[16,1], index: 11, kind: input, shape index: {}]   ;;  %s5813_s12 = inlined_call_operand.vmem [shape: f32[16,1], index: 12, kind: input, shape index: {}]   ;;  %s5814_s13 = inlined_call_operand.vmem [shape: f32[16,16], index: 13, kind: input, shape index: {}]   ;;  %s5815_s14 = inlined_call_operand.vmem [shape: bf16[144,16], index: 14, kind: input, shape index: {}]   ;;  %s5816_s15 = inlined_call_operand.vmem [shape: f32[16,1], index: 15, kind: input, shape index: {}]   ;;  %s5817_s16 = inlined_call_operand.vmem [shape: bf16[16,24], index: 16, kind: input, shape index: {}]   ;;  %s5818_s17 = inlined_call_operand.vmem [shape: f32[16,1], index: 17, kind: input, shape index: {}]   ;;  %s5819_s18 = inlined_call_operand.vmem [shape: f32[16,1], index: 18, kind: input, shape index: {}]   ;;  %s5820_s19 = inlined_call_operand.vmem [shape: f32[16,1], index: 19, kind: input, shape index: {}]   ;;  %s5821_s20 = inlined_call_operand.vmem [shape: bf16[48,16], index: 20, kind: input, shape index: {}]   ;;  %s5822_s21 = inlined_call_operand.vmem [shape: f32[48,1], index: 21, kind: input, shape index: {}]   ;;  %s5823_s22 = inlined_call_operand.vmem [shape: bf16[16,16], index: 22, kind: input, shape index: {}]   ;;  %s5824_s23 = inlined_call_operand.vmem [shape: f32[16,1], index: 23, kind: input, shape index: {}]   ;;  %s5825_s24 = inlined_call_operand.vmem [shape: f32[2,16,256], index: 24, kind: output, shape index: {}]  }
   0x1   :  { %5882 = sst [smem:[#allocation24_spill]] %s5801_s0 }
   0x2   :  { %5883 = sst [smem:[#allocation25_spill]] %s5802_s1 }
   0x3   :  { %5884 = sst [smem:[#allocation26_spill]] %s5803_s2 }
   0x4   :  { %5885 = sst [smem:[#allocation27_spill]] %s5804_s3 }
   0x5   :  { %5886 = sst [smem:[#allocation28_spill]] %s5805_s4 }
   0x6   :  { %5887 = sst [smem:[#allocation29_spill]] %s5806_s5  ;;  %s4425_s5 = smov 0  }
   0x7   :  { %5888 = sst [smem:[#allocation30_spill]] %s5807_s6 }
   0x8   :  { %5889 = sst [smem:[#allocation31_spill]] %s5808_s7 }
   0x9   :  { %5890 = sst [smem:[#allocation32_spill]] %s5809_s8 }
   0xa   :  { %5891 = sst [smem:[#allocation33_spill]] %s5825_s24 }
   0xb LB: > { %5892 = sst [smem:[#allocation3_spill]] %s4287_s5  ;;  %s3764_s26 = sadd.s32 4294967295, %s4287_s5   ;;  %s4287_s5 = sphi %s4425_s5, %s34_s5  }
   0xc   : > { %p3768_p0 = scmp.ge.s32.totalorder %s4287_s5, 1  ;;  %p682_p1 = scmp.lt.s32.totalorder %s4287_s5, 3 }
   0xe   : > { %p683_p2 = pnand %p3768_p0, %p682_p1 }
  0x10   : > { %686 = sbr.rel (%p683_p2) target bundleno = 5259 (0x148b), region = 116 }
  0x15   : > { %p758_p3 = scmp.lt.s32.totalorder %s3764_s26, 1  ;;  %v4289_v0 = vmov 0.0   ;;  %s5893_s2 = sld [smem:[#allocation25_spill]]  ;;  %vm4290_vm0 = vmmov 0   ;;  %vm811_vm1 = vcmask 195584   ;;  %v4291_v18 = vmov 0  }
  0x16   : > { %3915 = vmatprep.subr.mxu0 %v4289_v0  ;;  %3930 = vmatprep.subr.mxu1 %v4289_v0  ;;  %s5894_s30 = sld [smem:[#allocation24_spill]]  ;;  %vm1647_vm2 = vcmask 523264   ;;  %vm1207_vm3 = vcmask 1043456   ;;  %s5837_s1 = smov 127   ;;  %vm1714_vm12 = vcmask 130048  }
  0x17   : > { %s5978_s26 = smov (!%p758_p3, %s3764_s26), 1  ;;  %3921 = vmatprep.mubr.msk.f32.mxu0 %vm4290_vm0, %v4289_v0  ;;  %3936 = vmatprep.mubr.msk.f32.mxu1 %vm4290_vm0, %v4289_v0  ;;  %s5895_s4 = sld [smem:[#allocation30_spill]] }
  0x18   : > { %s3876_s27 = sshll.u32 %s5978_s26, 4  ;;  %4004 = vset.pattern.permute.xlu0 %v4291_v18  ;;  %4005 = vset.pattern.permute.xlu1 %v4291_v18  ;;  %s5896_s7 = sld [smem:[#allocation29_spill]] }
  0x19   : > { %s5897_s8 = sld [smem:[#allocation28_spill]]  ;;  %s5841_s28 = smov 112  }
  0x1a   : > { %s5899_s5 = sld [smem:[#allocation26_spill]]  ;;  %s5839_s6 = smov 111  }
  0x1b   : > { %s4441_s29 = scalar_lea.vmem %s5893_s2, %s3876_s27  ;;  %s5898_s2 = sld [smem:[#allocation32_spill]] }
  0x1c   : > { %v789_v1 = vld [vmem:[%s4441_s29] sm:$0xff]  ;;  %v4445_v2 = vld [vmem:[%s4441_s29 + $0x8] sm:$0xff]  ;;  %s4450_s3 = scalar_lea.vmem %s5894_s30, %s3876_s27  ;;  %s5900_s25 = sld [smem:[#allocation31_spill]] }
  0x1d   : > { %v805_v3 = vadd.f32 %v4445_v2, %v789_v1  ;;  %v780_v4 = vld [vmem:[%s4450_s3 + $0x8] sm:$0xff]  ;;  %v779_v5 = vld [vmem:[%s4450_s3] sm:$0xff]  ;;  %v810_v17 = vld [vmem:[%s5895_s4 + $0x10] sm:$0xff]  ;;  %s5843_s30 = smov 1   ;;  %s5835_s27 = smov 113  }
  0x1e   : > { %v783_v6 = vunpack.c.l.bf16 %v780_v4  ;;  %v784_v7 = vunpack.c.h.bf16 %v780_v4  ;;  %v781_v8 = vunpack.c.l.bf16 %v779_v5  ;;  %v782_v9 = vunpack.c.h.bf16 %v779_v5  ;;  %v808_v15 = vld [vmem:[%s5895_s4] sm:$0xff]  ;;  %v809_v16 = vld [vmem:[%s5895_s4 + $0x8] sm:$0xff]  ;;  %v1049_v43 = vld [vmem:[%s5896_s7 + $0x10] sm:$0xff]  ;;  %s3878_s4 = sshll.u32 %s5978_s26, 6  ;;  %s5906_s0 = smov 113  }
  0x1f   : > { %806 = vadd.xlane.f32.xlu0 %v805_v3  ;;  %v1020_v56 = vld [vmem:[%s5897_s8] sm:$0xff]  ;;  %v1021_v59 = vld [vmem:[%s5897_s8 + $0x8] sm:$0xff]  ;;  %v1022_v63 = vld [vmem:[%s5897_s8 + $0x10] sm:$0xff]  ;;  %s5847_s8 = smov 16  }
  0x20   : > { %v802_v10 = vadd.f32 %v784_v7, %v783_v6  ;;  %v799_v11 = vadd.f32 %v782_v9, %v781_v8  ;;  %v1047_v4 = vld [vmem:[%s5896_s7] sm:$0xff]  ;;  %v1048_v5 = vld [vmem:[%s5896_s7 + $0x8] sm:$0xff]  ;;  %s772_s24 = scalar_lea.vmem %s5899_s5, %s3878_s4  ;;  %s4292_s5 = smov 17  }
  0x21   : > { %v1611_v61 = vld [vmem:[%s5898_s2 + $0x8] sm:$0xff]  ;;  %s5901_s4 = sld [smem:[#allocation27_spill]] }
  0x22   : > { %800 = vadd.xlane.f32.xlu1 %v799_v11  ;;  %v1633_v11 = vld [vmem:[%s772_s24 + $0x28] sm:$0xff] }
  0x23   : > { %803 = vadd.xlane.f32.xlu0 %v802_v10  ;;  %v1632_v10 = vld [vmem:[%s772_s24 + $0x20] sm:$0xff] }
  0xa8   : > { %v807_v12 = vpop.xlane.xlu0 %806 }
  0xa9   : > { %3916 = vmatpush3.msra.mxu0 %v807_v12  ;;  %v1638_v12 = vpack.c.bf16 %v1633_v11, %v1632_v10  ;;  %v2355_v10 = vpack.c.bf16 %v4445_v2, %v4445_v2 }
  0xaa   : > { %3917 = vmatprep.subr.mxu0 %v4289_v0 }
  0xab   : > { %v801_v14 = vpop.xlane.xlu1 %800 }
  0xac   : > { %v804_v13 = vpop.xlane.xlu0 %803 }
  0xad   : > { %3918 = vmatpush3.msra.mxu0 %v804_v13  ;;  %v1630_v13 = vld [vmem:[%s772_s24 + $0x10] sm:$0xff] }
  0xae   : > { %3919 = vmatprep.subr.mxu0 %v4289_v0 }
  0xaf   : > { %3920 = vmatpush3.msra.mxu0 %v801_v14  ;;  %v1631_v14 = vld [vmem:[%s772_s24 + $0x18] sm:$0xff] }
  0xb0   : > { %3922 = vmatmul.mubr.msk.f32.vlgmr.msra.gmra.mxu0 %vm811_vm1, %v808_v15 }
  0xb1   : > { %3924 = vmatprep.mubr.msk.f32.mxu0 %vm4290_vm0, %v4289_v0 }
  0xb4   : > { %3925 = vmatmul.mubr.msk.f32.gmra.mxu0 %vm811_vm1, %v809_v16 }
  0xb5   : > { %3927 = vmatprep.mubr.msk.f32.mxu0 %vm4290_vm0, %v4289_v0 }
  0xb8   : > { %3928 = vmatmul.mubr.msk.f32.gmra.mxu0 %vm811_vm1, %v810_v17 }
  0xb9   : > { %1246 = vmatprep.mubr.bf16.mxu0 %v4291_v18 }
 0x170   : > { %v887_v19 = vpop.f32.mrf.mxu0 }
 0x172   : > { %v3923_v20 = vpop.f32.mrf.mxu0 }
 0x173   : > { %v4014_v20 = vld [vmem:[%s5810_s9] sm:$0xff]  }
 0x174   : > { %v892_v21 = vpop.f32.mrf.mxu0 }
 0x175   : > { %908 = vperm.xlu0 %4004, %v892_v21  }
 0x176   : > { %v3926_v22 = vpop.f32.mrf.mxu0 }
 0x178   : > { %v897_v23 = vpop.f32.mrf.mxu0 }
 0x179   : > { %913 = vperm.xlu1 %4005, %v897_v23  }
 0x17a   : > { %v3929_v24 = vpop.f32.mrf.mxu0 }
 0x17d   : > { %903 = vperm.xlu1 %4005, %v887_v19  }
 0x1f0   : > { %v909_v25 = vpop.permute.xlu0 %908 }
 0x1f1   : > { %v4480_v26 = vsub.f32 %v783_v6, %v909_v25  ;;  %v4482_v27 = vsub.f32 %v784_v7, %v909_v25  ;;  %v1610_v6 = vld [vmem:[%s5898_s2] sm:$0xff]  ;;  %v1634_v7 = vld [vmem:[%s772_s24 + $0x30] sm:$0xff] }
 0x1f3   : > { %v924_v28 = vmul.f32 %v4480_v26, %v4480_v26  ;;  %v925_v29 = vmul.f32 %v4482_v27, %v4482_v27 }
 0x1f4   : > { %v914_v30 = vpop.permute.xlu1 %913 }
 0x1f5   : > { %v4488_v31 = vsub.f32 %v789_v1, %v914_v30  ;;  %v4491_v32 = vsub.f32 %v4445_v2, %v914_v30  ;;  %v931_v33 = vadd.f32 %v925_v29, %v924_v28  ;;  %v4008_v2 = vld [vmem:[%s5900_s25 + $0x10] sm:$0xff]  }
 0x1f7   : > { %932 = vadd.xlane.f32.xlu0 %v931_v33  ;;  %v926_v34 = vmul.f32 %v4488_v31, %v4488_v31  ;;  %v927_v35 = vmul.f32 %v4491_v32, %v4491_v32 }
 0x1f8   : > { %v904_v36 = vpop.permute.xlu1 %903 }
 0x1f9   : > { %v4497_v37 = vsub.f32 %v781_v8, %v904_v36  ;;  %v4499_v38 = vsub.f32 %v782_v9, %v904_v36  ;;  %v934_v39 = vadd.f32 %v927_v35, %v926_v34  ;;  %v1635_v8 = vld [vmem:[%s772_s24 + $0x38] sm:$0xff] }
 0x1fa   : > { %v1639_v9 = vpack.c.bf16 %v1635_v8, %v1634_v7 }
 0x1fb   : > { %935 = vadd.xlane.f32.xlu1 %v934_v39  ;;  %v922_v40 = vmul.f32 %v4497_v37, %v4497_v37  ;;  %v923_v41 = vmul.f32 %v4499_v38, %v4499_v38 }
 0x1fd   : > { %v928_v42 = vadd.f32 %v923_v41, %v922_v40 }
 0x1ff   : > { %929 = vadd.xlane.f32.xlu1 %v928_v42 }
 0x210   : > { %1062 = vperm.xlu1 %4005, %v1049_v43  }
 0x280   : > { %v933_v45 = vpop.xlane.xlu0 %932 }
 0x284   : > { %v936_v44 = vpop.xlane.xlu1 %935 }
 0x285   : > { %3931 = vmatpush3.msra.mxu1 %v936_v44 }
 0x286   : > { %3932 = vmatprep.subr.mxu1 %v4289_v0 }
 0x287   : > { %3933 = vmatpush3.msra.mxu1 %v933_v45 }
 0x288   : > { %3934 = vmatprep.subr.mxu1 %v4289_v0  ;;  %v930_v46 = vpop.xlane.xlu1 %929 }
 0x289   : > { %3935 = vmatpush3.msra.mxu1 %v930_v46 }
 0x28a   : > { %3937 = vmatmul.mubr.msk.f32.vlgmr.msra.gmra.mxu1 %vm811_vm1, %v808_v15  ;;  %3945 = vmatprep.subr.bf16.mxu1 %v4289_v0  ;;  %v1637_v15 = vpack.c.bf16 %v1631_v14, %v1630_v13  ;;  %v4007_v13 = vld [vmem:[%s5900_s25 + $0x8] sm:$0xff]   ;;  %v4009_v14 = vld [vmem:[%s5900_s25 + $0x18] sm:$0xff]  }
 0x28b   : > { %3939 = vmatprep.mubr.msk.f32.mxu1 %vm4290_vm0, %v4289_v0  ;;  %3946 = vmatpush3.bf16.msra.mxu1 %v1639_v9 }
 0x28c   : > { %3947 = vmatprep.subr.bf16.mxu1 %v4289_v0  ;;  %v1063_v21 = vpop.permute.xlu1 %1062 }
 0x28e   : > { %3940 = vmatmul.mubr.msk.f32.gmra.mxu1 %vm811_vm1, %v809_v16  ;;  %v1628_v16 = vld [vmem:[%s772_s24] sm:$0xff] }
 0x28f   : > { %3942 = vmatprep.mubr.msk.f32.mxu1 %vm4290_vm0, %v4289_v0  ;;  %3948 = vmatpush3.bf16.msra.mxu1 %v1638_v12  ;;  %v4006_v12 = vld [vmem:[%s5900_s25] sm:$0xff]  }
 0x290   : > { %3949 = vmatprep.subr.bf16.mxu1 %v4289_v0 }
 0x292   : > { %3943 = vmatmul.mubr.msk.f32.gmra.mxu1 %vm811_vm1, %v810_v17  ;;  %v1629_v17 = vld [vmem:[%s772_s24 + $0x8] sm:$0xff]  ;;  %s5845_s24 = smov 15  }
 0x293   : > { %3953 = vmatprep.mubr.msk.bf16.mxu1 %vm4290_vm0, %v4289_v0  ;;  %3950 = vmatpush3.bf16.msra.mxu1 %v1637_v15  ;;  %v1636_v19 = vpack.c.bf16 %v1629_v17, %v1628_v16  ;;  %v4010_v15 = vld [vmem:[%s5900_s25 + $0x20] sm:$0xff]   ;;  %v4011_v16 = vld [vmem:[%s5900_s25 + $0x28] sm:$0xff]   ;;  %v4012_v17 = vld [vmem:[%s5900_s25 + $0x30] sm:$0xff]  }
 0x294   : > { %3951 = vmatprep.subr.bf16.mxu1 %v4289_v0 }
 0x297   : > { %3952 = vmatpush3.bf16.msra.mxu1 %v1636_v19  ;;  %v4013_v19 = vld [vmem:[%s5900_s25 + $0x38] sm:$0xff]  }
 0x29a   : > { %3954 = vmatmul.mubr.msk.bf16.vlgmr.msra.gmra.mxu1 %vm1647_vm2, %v4014_v20  ;;  %v4015_v20 = vld [vmem:[%s5900_s25 + $0x40] sm:$0xff]  }
 0x34a   : > { %v1003_v47 = vpop.f32.mrf.mxu1 }
 0x34b   : > { %v1004_v48 = vadd.f32 1e-05, %v1003_v47 }
 0x34c   : > { %v3938_v49 = vpop.f32.mrf.mxu1 }
 0x34d   : > { %4032 = vrsqrt.f32 %v1004_v48 }
 0x34e   : > { %v1008_v50 = vpop.f32.mrf.mxu1 }
 0x34f   : > { %v1009_v51 = vadd.f32 1e-05, %v1008_v50 }
 0x350   : > { %v3941_v52 = vpop.f32.mrf.mxu1 }
 0x351   : > { %4034 = vrsqrt.f32 %v1009_v51 }
 0x352   : > { %v1013_v53 = vpop.f32.mrf.mxu1 }
 0x353   : > { %v1014_v54 = vadd.f32 1e-05, %v1013_v53 }
 0x354   : > { %v3944_v55 = vpop.f32.mrf.mxu1 }
 0x355   : > { %4036 = vrsqrt.f32 %v1014_v54 }
 0x35a   : > { %v4033_v57 = vpop.eup %4032 }
 0x35b   : > { %v1023_v58 = vmul.f32 %v4033_v57, %v1020_v56 }
 0x35d   : > { %1028 = vperm.xlu0 %4004, %v1023_v58  }
 0x35e   : > { %v4035_v60 = vpop.eup %4034 }
 0x35f   : > { %v1024_v62 = vmul.f32 %v4035_v60, %v1021_v59 }
 0x361   : > { %1619 = vperm.xlu0 %4004, %v1611_v61   ;;  %1033 = vperm.xlu1 %4005, %v1024_v62  }
 0x362   : > { %v4037_v1 = vpop.eup %4036 }
 0x363   : > { %v1025_v3 = vmul.f32 %v4037_v1, %v1022_v63 }
 0x365   : > { %1038 = vperm.xlu1 %4005, %v1025_v3  }
 0x369   : > { %1052 = vperm.xlu1 %4005, %v1047_v4  }
 0x36d   : > { %1057 = vperm.xlu1 %4005, %v1048_v5  }
 0x371   : > { %1614 = vperm.xlu1 %4005, %v1610_v6  }
 0x3d8   : > { %v1029_v23 = vpop.permute.xlu0 %1028 }
 0x3d9   : > { %v1041_v0 = vmul.f32 %v1029_v23, %v4497_v37  ;;  %v1042_v29 = vmul.f32 %v1029_v23, %v4499_v38 }
 0x3dc   : > { %v1034_v22 = vpop.permute.xlu1 %1033 }
 0x3dd   : > { %v1043_v41 = vmul.f32 %v1034_v22, %v4480_v26  ;;  %v1044_v42 = vmul.f32 %v1034_v22, %v4482_v27 }
 0x3e0   : > { %v1039_v24 = vpop.permute.xlu1 %1038 }
 0x3e1   : > { %v1045_v25 = vmul.f32 %v1039_v24, %v4488_v31  ;;  %v1046_v28 = vmul.f32 %v1039_v24, %v4491_v32 }
 0x3e3   : > { %v1069_v30 = vadd.f32 %v1063_v21, %v1045_v25  ;;  %v1070_v33 = vadd.f32 %v1063_v21, %v1046_v28  ;;  %v4607_v21 = vpop.f32.mrf.mxu1 }
 0x3e4   : > { %v1053_v34 = vpop.permute.xlu1 %1052 }
 0x3e5   : > { %v3787_v35 = vmul.f32 -1.442695, %v1069_v30  ;;  %v3788_v36 = vmul.f32 -1.442695, %v1070_v33  ;;  %v1065_v39 = vadd.f32 %v1053_v34, %v1041_v0  ;;  %v1066_v40 = vadd.f32 %v1053_v34, %v1042_v29  ;;  %v3955_v22 = vpop.f32.mrf.mxu1 }
 0x3e7   : > { %4038 = vpow2.f32 %v3787_v35  ;;  %v3783_v43 = vmul.f32 -1.442695, %v1065_v39  ;;  %v3784_v31 = vmul.f32 -1.442695, %v1066_v40  ;;  %v4609_v23 = vpop.f32.mrf.mxu1 }
 0x3e8   : > { %4040 = vpow2.f32 %v3788_v36  ;;  %v1058_v32 = vpop.permute.xlu1 %1057 }
 0x3e9   : > { %4042 = vpow2.f32 %v3783_v43  ;;  %v1067_v37 = vadd.f32 %v1058_v32, %v1043_v41  ;;  %v1068_v44 = vadd.f32 %v1058_v32, %v1044_v42  ;;  %v3956_v24 = vpop.f32.mrf.mxu1 }
 0x3ea   : > { %4044 = vpow2.f32 %v3784_v31 }
 0x3eb   : > { %v3785_v38 = vmul.f32 -1.442695, %v1067_v37  ;;  %v3786_v45 = vmul.f32 -1.442695, %v1068_v44 }
 0x3ed   : > { %4046 = vpow2.f32 %v3785_v38 }
 0x3ee   : > { %4048 = vpow2.f32 %v3786_v45 }
 0x3f4   : > { %v4039_v46 = vpop.eup %4038 }
 0x3f5   : > { %v4041_v47 = vpop.eup %4040  ;;  %v1093_v48 = vadd.f32 1.0, %v4039_v46 }
 0x3f6   : > { %v4043_v49 = vpop.eup %4042  ;;  %v1094_v26 = vadd.f32 1.0, %v4041_v47 }
 0x3f7   : > { %v4045_v50 = vpop.eup %4044  ;;  %4050 = vrcp.f32 %v1093_v48  ;;  %v1089_v27 = vadd.f32 1.0, %v4043_v49 }
 0x3f8   : > { %4052 = vrcp.f32 %v1094_v26  ;;  %v1090_v51 = vadd.f32 1.0, %v4045_v50 }
 0x3f9   : > { %4054 = vrcp.f32 %v1089_v27 }
 0x3fa   : > { %v4047_v52 = vpop.eup %4046  ;;  %4056 = vrcp.f32 %v1090_v51 }
 0x3fb   : > { %v4049_v53 = vpop.eup %4048  ;;  %v1091_v54 = vadd.f32 1.0, %v4047_v52 }
 0x3fc   : > { %v1092_v55 = vadd.f32 1.0, %v4049_v53 }
 0x3fd   : > { %4058 = vrcp.f32 %v1091_v54 }
 0x3fe   : > { %4060 = vrcp.f32 %v1092_v55 }
 0x404   : > { %v4051_v56 = vpop.eup %4050 }
 0x405   : > { %v4053_v57 = vpop.eup %4052  ;;  %v1111_v58 = vmul.f32 %v4051_v56, %v1069_v30 }
 0x406   : > { %v1112_v59 = vmul.f32 %v4053_v57, %v1070_v33  ;;  %v4055_v61 = vpop.eup %4054 }
 0x407   : > { %v1133_v60 = vpack.c.bf16 %v1111_v58, %v1111_v58  ;;  %v4057_v63 = vpop.eup %4056  ;;  %v1107_v5 = vmul.f32 %v4055_v61, %v1065_v39 }
 0x408   : > { %v1134_v62 = vpack.c.bf16 %v1112_v59, %v1112_v59  ;;  %v1108_v7 = vmul.f32 %v4057_v63, %v1066_v40  ;;  %v1640_v59 = vld [vmem:[%s5811_s10] sm:$0xff] }
 0x409   : > { %v1209_v1 = vsel %vm1207_vm3, %v1133_v60, 0  ;;  %v1641_v60 = vld [vmem:[%s5811_s10 + $0x8] sm:$0xff] }
 0x40a   : > { %v4059_v3 = vpop.eup %4058  ;;  %3798 = vmatprep.subr.msk.bf16.mxu0 %vm1207_vm3, %v1134_v62  ;;  %v1686_v62 = vadd.f32 %v4607_v21, %v1640_v59  ;;  %v1689_v63 = vadd.f32 %v4609_v23, %v1641_v60 }
 0x40b   : > { %v4061_v4 = vpop.eup %4060  ;;  %v1109_v6 = vmul.f32 %v4059_v3, %v1067_v37  ;;  %1227 = vmatpush1.bf16.msra.mxu0 %v1209_v1  ;;  %v4659_v1 = vpop.permute.xlu1 %1614 }
 0x40c   : > { %v1110_v8 = vmul.f32 %v4061_v4, %v1068_v44  ;;  %v4661_v3 = vpop.permute.xlu0 %1619 }
 0x40d   : > { %v1131_v9 = vpack.c.bf16 %v1109_v6, %v1107_v5 }
 0x40e   : > { %v1132_v11 = vpack.c.bf16 %v1110_v8, %v1108_v7 }
 0x410   : > { %1228 = vmatprep.subr.bf16.mxu0 %v1132_v11 }
 0x411   : > { %1229 = vmatpush1.bf16.msra.mxu0 %v1131_v9 }
 0x412   : > { %3844 = vmatprep.subr.msk.bf16.mxu0 %vm1207_vm3, %v2355_v10 }
 0x414   : > { %3799 = vmatmul.mubr.msk.bf16.vlgmr.msra.gmra.mxu0 %vm811_vm1, %v4006_v12 }
 0x415   : > { %1256 = vmatprep.mubr.bf16.mxu0 %v4291_v18 }
 0x41c   : > { %3800 = vmatmul.mubr.msk.bf16.gmra.mxu0 %vm811_vm1, %v4007_v13 }
 0x41d   : > { %1266 = vmatprep.mubr.bf16.mxu0 %v4291_v18 }
 0x424   : > { %3801 = vmatmul.mubr.msk.bf16.gmra.mxu0 %vm811_vm1, %v4008_v2 }
 0x425   : > { %1276 = vmatprep.mubr.bf16.mxu0 %v4291_v18 }
 0x42c   : > { %3802 = vmatmul.mubr.msk.bf16.gmra.mxu0 %vm811_vm1, %v4009_v14 }
 0x42d   : > { %1286 = vmatprep.mubr.bf16.mxu0 %v4291_v18 }
 0x434   : > { %3803 = vmatmul.mubr.msk.bf16.gmra.mxu0 %vm811_vm1, %v4010_v15 }
 0x435   : > { %1296 = vmatprep.mubr.bf16.mxu0 %v4291_v18 }
 0x43c   : > { %3804 = vmatmul.mubr.msk.bf16.gmra.mxu0 %vm811_vm1, %v4011_v16 }
 0x43d   : > { %1306 = vmatprep.mubr.bf16.mxu0 %v4291_v18 }
 0x444   : > { %3805 = vmatmul.mubr.msk.bf16.gmra.mxu0 %vm811_vm1, %v4012_v17  ;;  %v1345_v17 = vlaneseq }
 0x445   : > { %1316 = vmatprep.mubr.bf16.mxu0 %v4291_v18 }
 0x446   : > { %v1355_v21 = vshrl.u32 %v1345_v17, 7  ;;  %v4683_v24 = vand.u32 127, %v1345_v17 }
 0x448   : > { %vm1347_vm4 = vcmp.lt.s32.totalorder %v4683_v24, 17  ;;  %vm1380_vm5 = vcmp.lt.s32.totalorder %v4683_v24, 16  ;;  %vm1414_vm6 = vcmp.lt.s32.totalorder %v4683_v24, 15  ;;  %vm1448_vm7 = vcmp.lt.s32.totalorder %v4683_v24, 1 }
 0x449   : > { %vm1482_vm8 = vcmp.lt.s32.totalorder %v4683_v24, 127  ;;  %vm1516_vm9 = vcmp.lt.s32.totalorder %v4683_v24, 113  ;;  %vm1550_vm10 = vcmp.lt.s32.totalorder %v4683_v24, 112  ;;  %vm1584_vm11 = vcmp.lt.s32.totalorder %v4683_v24, 111 }
 0x44c   : > { %3806 = vmatmul.mubr.msk.bf16.gmra.mxu0 %vm811_vm1, %v4013_v19 }
 0x44d   : > { %1326 = vmatprep.mubr.bf16.mxu0 %v4291_v18 }
 0x454   : > { %3807 = vmatmul.mubr.msk.bf16.gmra.mxu0 %vm811_vm1, %v4015_v20 }
 0x455   : > { %2414 = vmatprep.mubr.bf16.mxu0 %v4291_v18 }
 0x4d4   : > { %v1248_v25 = vpop.f32.mrf.mxu0 }
 0x4d5   : > { %1337 = vrot.lane.b32.xlu0 %v1248_v25, %s4292_s5  ;;  %v1356_v25 = vsub.s32 0, %v1355_v21 }
 0x4d6   : > { %v1250_v28 = vpop.f32.mrf.mxu0 }
 0x4d7   : > { %1341 = vrot.lane.b32.xlu1 %v1250_v28, %s4292_s5 }
 0x4d8   : > { %v1252_v0 = vpop.f32.mrf.mxu0 }
 0x4da   : > { %v1254_v29 = vpop.f32.mrf.mxu0 }
 0x4db   : > { %1339 = vrot.lane.b32.xlu1 %v1252_v0, %s4292_s5  ;;  %v1352_v0 = vld [vmem:[%s5901_s4] ss:$8 sm:$0x3] }
 0x4dc   : > { %v1258_v30 = vpop.f32.mrf.mxu0 }
 0x4dd   : > { %1372 = vrot.lane.b32.xlu0 %v1258_v30, %s5847_s8  ;;  %v3808_v30 = vld [vmem:[%s5901_s4 + $0x1] ss:$8 sm:$0x3] }
 0x4de   : > { %v1260_v33 = vpop.f32.mrf.mxu0 }
 0x4df   : > { %1343 = vrot.lane.b32.xlu1 %v1254_v29, %s4292_s5  ;;  %v1360_v29 = vsub.s32 1, %v1355_v21 }
 0x4e0   : > { %v1262_v34 = vpop.f32.mrf.mxu0 }
 0x4e1   : > { %1374 = vrot.lane.b32.xlu0 %v1262_v34, %s5847_s8 }
 0x4e2   : > { %v1264_v35 = vpop.f32.mrf.mxu0 }
 0x4e3   : > { %1376 = vrot.lane.b32.xlu1 %v1260_v33, %s5847_s8  ;;  %v3809_v33 = vld [vmem:[%s5901_s4 + $0x2] ss:$8 sm:$0x3] }
 0x4e4   : > { %v1268_v36 = vpop.f32.mrf.mxu0 }
 0x4e5   : > { %1406 = vrot.lane.b32.xlu0 %v1268_v36, %s5845_s24  ;;  %v4702_v36 = vrot.slane %v1352_v0, %v1356_v25 }
 0x4e6   : > { %v1270_v39 = vpop.f32.mrf.mxu0 }
 0x4e7   : > { %1378 = vrot.lane.b32.xlu1 %v1264_v35, %s5847_s8  ;;  %v3810_v35 = vld [vmem:[%s5901_s4 + $0x3] ss:$8 sm:$0x3]  ;;  %s5907_s8 = smov 112  }
 0x4e8   : > { %v1272_v40 = vpop.f32.mrf.mxu0 }
 0x4e9   : > { %1408 = vrot.lane.b32.xlu0 %v1272_v40, %s5845_s24  ;;  %v4708_v40 = vrot.slane %v1352_v0, %v1360_v29 }
 0x4ea   : > { %v1274_v41 = vpop.f32.mrf.mxu0 }
 0x4eb   : > { %1410 = vrot.lane.b32.xlu1 %v1270_v39, %s5845_s24 }
 0x4ec   : > { %v1278_v42 = vpop.f32.mrf.mxu0 }
 0x4ed   : > { %1440 = vrot.lane.b32.xlu0 %v1278_v42, %s5843_s30  ;;  %v4712_v42 = vrot.slane %v3808_v30, %v1360_v29 }
 0x4ee   : > { %v1280_v43 = vpop.f32.mrf.mxu0 }
 0x4ef   : > { %1412 = vrot.lane.b32.xlu1 %v1274_v41, %s5845_s24  ;;  %v4710_v41 = vrot.slane %v3808_v30, %v1356_v25  ;;  %s5908_s24 = smov 111  }
 0x4f0   : > { %v1282_v31 = vpop.f32.mrf.mxu0 }
 0x4f1   : > { %1442 = vrot.lane.b32.xlu0 %v1282_v31, %s5843_s30  ;;  %v3811_v31 = vld [vmem:[%s5901_s4 + $0x4] ss:$8 sm:$0x3] }
 0x4f2   : > { %v1284_v32 = vpop.f32.mrf.mxu0 }
 0x4f3   : > { %1444 = vrot.lane.b32.xlu1 %v1280_v43, %s5843_s30  ;;  %v4714_v43 = vrot.slane %v3809_v33, %v1356_v25 }
 0x4f4   : > { %v4626_v37 = vpop.f32.mrf.mxu0 }
 0x4f6   : > { %v4628_v44 = vpop.f32.mrf.mxu0 }
 0x4f7   : > { %1446 = vrot.lane.b32.xlu1 %v1284_v32, %s5843_s30  ;;  %v3812_v32 = vld [vmem:[%s5901_s4 + $0x5] ss:$8 sm:$0x3] }
 0x4f8   : > { %v4631_v38 = vpop.f32.mrf.mxu0 }
 0x4fa   : > { %v4633_v45 = vpop.f32.mrf.mxu0 }
 0x4fc   : > { %v1298_v46 = vpop.f32.mrf.mxu0 }
 0x4fd   : > { %1474 = vrot.lane.b32.xlu0 %v1298_v46, %s5837_s1  ;;  %v4722_v46 = vrot.slane %v3809_v33, %v1360_v29 }
 0x4fe   : > { %v1300_v47 = vpop.f32.mrf.mxu0 }
 0x4ff   : > { %1478 = vrot.lane.b32.xlu1 %v1300_v47, %s5837_s1  ;;  %v4725_v47 = vrot.slane %v3810_v35, %v1356_v25 }
 0x500   : > { %v1302_v48 = vpop.f32.mrf.mxu0 }
 0x501   : > { %1476 = vrot.lane.b32.xlu0 %v1302_v48, %s5837_s1  ;;  %v4727_v48 = vrot.slane %v3810_v35, %v1360_v29 }
 0x502   : > { %v1304_v49 = vpop.f32.mrf.mxu0 }
 0x503   : > { %1480 = vrot.lane.b32.xlu1 %v1304_v49, %s5837_s1  ;;  %s3879_s1 = sshll.u32 %s5978_s26, 5 }
 0x504   : > { %v1308_v26 = vpop.f32.mrf.mxu0 }
 0x505   : > { %1508 = vrot.lane.b32.xlu0 %v1308_v26, %s5835_s27 }
 0x506   : > { %v1310_v50 = vpop.f32.mrf.mxu0 }
 0x507   : > { %1512 = vrot.lane.b32.xlu1 %v1310_v50, %s5835_s27 }
 0x508   : > { %v1312_v27 = vpop.f32.mrf.mxu0 }
 0x509   : > { %1510 = vrot.lane.b32.xlu0 %v1312_v27, %s5835_s27 }
 0x50a   : > { %v1314_v51 = vpop.f32.mrf.mxu0 }
 0x50b   : > { %1514 = vrot.lane.b32.xlu1 %v1314_v51, %s5835_s27  ;;  %s5905_s27 = smov 127  }
 0x50c   : > { %v1318_v52 = vpop.f32.mrf.mxu0 }
 0x50d   : > { %1542 = vrot.lane.b32.xlu0 %v1318_v52, %s5841_s28  ;;  %v4740_v52 = vrot.slane %v3811_v31, %v1356_v25 }
 0x50e   : > { %v1320_v53 = vpop.f32.mrf.mxu0 }
 0x50f   : > { %1546 = vrot.lane.b32.xlu1 %v1320_v53, %s5841_s28  ;;  %v4742_v53 = vrot.slane %v3811_v31, %v1360_v29 }
 0x510   : > { %v1322_v54 = vpop.f32.mrf.mxu0 }
 0x511   : > { %1544 = vrot.lane.b32.xlu0 %v1322_v54, %s5841_s28  ;;  %v4744_v54 = vrot.slane %v3812_v32, %v1356_v25 }
 0x512   : > { %v1324_v55 = vpop.f32.mrf.mxu0 }
 0x513   : > { %1548 = vrot.lane.b32.xlu1 %v1324_v55, %s5841_s28  ;;  %v4746_v55 = vrot.slane %v3812_v32, %v1360_v29 }
 0x514   : > { %v1328_v56 = vpop.f32.mrf.mxu0 }
 0x516   : > { %v1330_v57 = vpop.f32.mrf.mxu0 }
 0x517   : > { %1576 = vrot.lane.b32.xlu1 %v1328_v56, %s5839_s6  ;;  %1580 = vrot.lane.b32.xlu0 %v1330_v57, %s5839_s6  ;;  %v3813_v57 = vld [vmem:[%s5901_s4 + $0x6] ss:$8 sm:$0x3] }
 0x518   : > { %v1332_v58 = vpop.f32.mrf.mxu0  ;;  %v4769_v17 = vrot.slane %v3813_v57, %v1356_v25 }
 0x51a   : > { %v1334_v61 = vpop.f32.mrf.mxu0 }
 0x51b   : > { %1578 = vrot.lane.b32.xlu0 %v1332_v58, %s5839_s6  ;;  %1582 = vrot.lane.b32.xlu1 %v1334_v61, %s5839_s6  ;;  %v3814_v58 = vld [vmem:[%s5901_s4 + $0x7] ss:$8 sm:$0x3] }
 0x51c   : > { %v4775_v21 = vrot.slane %v3814_v58, %v1360_v29 }
 0x51f   : > { %1699 = vperm.xlu0 %4004, %v1689_v63   ;;  %1694 = vperm.xlu1 %4005, %v1686_v62  }
 0x547   : > { %v1338_v5 = vpop.permute.xlu0 %1337 }
 0x549   : > { %v1342_v4 = vpop.permute.xlu1 %1341 }
 0x54a   : > { %v1348_v26 = vsel %vm1347_vm4, %v1338_v5, %v1342_v4  ;;  %v1350_v50 = vsel %vm1347_vm4, %v1342_v4, %v1338_v5 }
 0x54b   : > { %v1364_v63 = vmul.f32 %v4702_v36, %v1350_v50  ;;  %v1365_v4 = vmul.f32 %v4708_v40, %v1348_v26 }
 0x54d   : > { %v1340_v6 = vpop.permute.xlu1 %1339  ;;  %v1368_v32 = vadd.f32 %v1364_v63, %v4626_v37  ;;  %v1369_v26 = vadd.f32 %v1365_v4, %v4628_v44 }
 0x54f   : > { %v1373_v7 = vpop.permute.xlu0 %1372 }
 0x551   : > { %v1344_v8 = vpop.permute.xlu1 %1343 }
 0x552   : > { %v1349_v27 = vsel %vm1347_vm4, %v1340_v6, %v1344_v8  ;;  %v1351_v51 = vsel %vm1347_vm4, %v1344_v8, %v1340_v6 }
 0x553   : > { %v1375_v9 = vpop.permute.xlu0 %1374  ;;  %v1366_v5 = vmul.f32 %v4702_v36, %v1351_v51  ;;  %v1367_v6 = vmul.f32 %v4708_v40, %v1349_v27 }
 0x555   : > { %v1377_v10 = vpop.permute.xlu1 %1376  ;;  %v1370_v50 = vadd.f32 %v1366_v5, %v4631_v38  ;;  %v1371_v27 = vadd.f32 %v1367_v6, %v4633_v45 }
 0x556   : > { %v1381_v59 = vsel %vm1380_vm5, %v1373_v7, %v1377_v10  ;;  %v1383_v60 = vsel %vm1380_vm5, %v1377_v10, %v1373_v7  ;;  %v4771_v7 = vrot.slane %v3813_v57, %v1360_v29  ;;  %v4773_v10 = vrot.slane %v3814_v58, %v1356_v25 }
 0x557   : > { %v4663_v11 = vpop.permute.xlu0 %1406 }
 0x559   : > { %v1379_v12 = vpop.permute.xlu1 %1378 }
 0x55a   : > { %v1382_v61 = vsel %vm1380_vm5, %v1375_v9, %v1379_v12  ;;  %v1384_v62 = vsel %vm1380_vm5, %v1379_v12, %v1375_v9  ;;  %v1398_v9 = vmul.f32 %v4710_v41, %v1383_v60  ;;  %v1399_v12 = vmul.f32 %v4712_v42, %v1381_v59 }
 0x55b   : > { %v4667_v2 = vpop.permute.xlu0 %1408  ;;  %v1400_v0 = vmul.f32 %v4710_v41, %v1384_v62  ;;  %v1401_v30 = vmul.f32 %v4712_v42, %v1382_v61 }
 0x55d   : > { %v4665_v13 = vpop.permute.xlu1 %1410  ;;  %v1404_v57 = vadd.f32 %v1400_v0, %v1370_v50  ;;  %v1405_v58 = vadd.f32 %v1401_v30, %v1371_v27 }
 0x55e   : > { %v1415_v35 = vsel %vm1414_vm6, %v4663_v11, %v4665_v13  ;;  %v1417_v25 = vsel %vm1414_vm6, %v4665_v13, %v4663_v11 }
 0x55f   : > { %v4671_v15 = vpop.permute.xlu0 %1440  ;;  %v1432_v38 = vmul.f32 %v4714_v43, %v1417_v25  ;;  %v1433_v45 = vmul.f32 %v4722_v46, %v1415_v35 }
 0x561   : > { %v4669_v14 = vpop.permute.xlu1 %1412 }
 0x562   : > { %v1416_v29 = vsel %vm1414_vm6, %v4667_v2, %v4669_v14  ;;  %v1418_v31 = vsel %vm1414_vm6, %v4669_v14, %v4667_v2 }
 0x563   : > { %v4675_v19 = vpop.permute.xlu0 %1442  ;;  %v1434_v14 = vmul.f32 %v4714_v43, %v1418_v31  ;;  %v1435_v51 = vmul.f32 %v4722_v46, %v1416_v29 }
 0x565   : > { %v4673_v16 = vpop.permute.xlu1 %1444  ;;  %v1438_v0 = vadd.f32 %v1434_v14, %v1404_v57  ;;  %v1439_v30 = vadd.f32 %v1435_v51, %v1405_v58 }
 0x566   : > { %v1449_v13 = vsel %vm1448_vm7, %v4671_v15, %v4673_v16  ;;  %v1451_v2 = vsel %vm1448_vm7, %v4673_v16, %v4671_v15  ;;  %v1402_v15 = vadd.f32 %v1398_v9, %v1368_v32  ;;  %v1403_v16 = vadd.f32 %v1399_v12, %v1369_v26 }
 0x567   : > { %v1466_v59 = vmul.f32 %v4725_v47, %v1451_v2  ;;  %v1467_v60 = vmul.f32 %v4727_v48, %v1449_v13 }
 0x568   : > { %v1436_v9 = vadd.f32 %v1432_v38, %v1402_v15  ;;  %v1437_v12 = vadd.f32 %v1433_v45, %v1403_v16 }
 0x569   : > { %v4677_v20 = vpop.permute.xlu1 %1446 }
 0x56a   : > { %v1450_v37 = vsel %vm1448_vm7, %v4675_v19, %v4677_v20  ;;  %v1452_v44 = vsel %vm1448_vm7, %v4677_v20, %v4675_v19  ;;  %v1470_v50 = vadd.f32 %v1466_v59, %v1436_v9 }
 0x56b   : > { %v1468_v19 = vmul.f32 %v4725_v47, %v1452_v44  ;;  %v1469_v20 = vmul.f32 %v4727_v48, %v1450_v37 }
 0x56d   : > { %v1473_v27 = vadd.f32 %v1469_v20, %v1439_v30 }
 0x56f   : > { %v4679_v22 = vpop.permute.xlu0 %1474 }
 0x571   : > { %v4681_v23 = vpop.permute.xlu1 %1478 }
 0x572   : > { %v1483_v63 = vsel %vm1482_vm8, %v4679_v22, %v4681_v23  ;;  %v1485_v4 = vsel %vm1482_vm8, %v4681_v23, %v4679_v22 }
 0x573   : > { %v4685_v28 = vpop.permute.xlu0 %1476  ;;  %v1501_v25 = vmul.f32 %v4742_v53, %v1485_v4 }
 0x575   : > { %v4696_v34 = vpop.permute.xlu1 %1480 }
 0x576   : > { %v1484_v5 = vsel %vm1482_vm8, %v4685_v28, %v4696_v34  ;;  %v1486_v6 = vsel %vm1482_vm8, %v4696_v34, %v4685_v28  ;;  %v1500_v34 = vmul.f32 %v4740_v52, %v1483_v63 }
 0x577   : > { %v4706_v39 = vpop.permute.xlu0 %1508  ;;  %v1502_v29 = vmul.f32 %v4740_v52, %v1484_v5  ;;  %v1503_v31 = vmul.f32 %v4742_v53, %v1486_v6 }
 0x578   : > { %v1504_v14 = vadd.f32 %v1500_v34, %v1470_v50 }
 0x579   : > { %v4729_v49 = vpop.permute.xlu1 %1512  ;;  %v1507_v16 = vadd.f32 %v1503_v31, %v1473_v27 }
 0x57a   : > { %v1517_v35 = vsel %vm1516_vm9, %v4706_v39, %v4729_v49  ;;  %v1519_v22 = vsel %vm1516_vm9, %v4729_v49, %v4706_v39  ;;  %v1471_v39 = vadd.f32 %v1467_v60, %v1437_v12  ;;  %v1472_v49 = vadd.f32 %v1468_v19, %v1438_v0 }
 0x57b   : > { %v4748_v56 = vpop.permute.xlu0 %1510  ;;  %v1534_v13 = vmul.f32 %v4744_v54, %v1517_v35  ;;  %v1535_v2 = vmul.f32 %v4746_v55, %v1519_v22 }
 0x57c   : > { %v1505_v51 = vadd.f32 %v1501_v25, %v1471_v39  ;;  %v1506_v15 = vadd.f32 %v1502_v29, %v1472_v49 }
 0x57d   : > { %v1515_v8 = vpop.permute.xlu1 %1514  ;;  %v1538_v63 = vadd.f32 %v1534_v13, %v1504_v14 }
 0x57e   : > { %v1518_v23 = vsel %vm1516_vm9, %v4748_v56, %v1515_v8  ;;  %v1520_v28 = vsel %vm1516_vm9, %v1515_v8, %v4748_v56  ;;  %v1539_v4 = vadd.f32 %v1535_v2, %v1505_v51 }
 0x57f   : > { %v1543_v33 = vpop.permute.xlu0 %1542  ;;  %v1536_v56 = vmul.f32 %v4744_v54, %v1518_v23  ;;  %v1537_v8 = vmul.f32 %v4746_v55, %v1520_v28 }
 0x581   : > { %v1547_v11 = vpop.permute.xlu1 %1546  ;;  %v1540_v5 = vadd.f32 %v1536_v56, %v1506_v15  ;;  %v1541_v6 = vadd.f32 %v1537_v8, %v1507_v16 }
 0x582   : > { %v1551_v37 = vsel %vm1550_vm10, %v1543_v33, %v1547_v11  ;;  %v1553_v44 = vsel %vm1550_vm10, %v1547_v11, %v1543_v33 }
 0x583   : > { %v1545_v61 = vpop.permute.xlu0 %1544  ;;  %v1568_v19 = vmul.f32 %v4769_v17, %v1551_v37  ;;  %v1569_v20 = vmul.f32 %v4771_v7, %v1553_v44 }
 0x585   : > { %v1549_v62 = vpop.permute.xlu1 %1548  ;;  %v1572_v35 = vadd.f32 %v1568_v19, %v1538_v63  ;;  %v1573_v22 = vadd.f32 %v1569_v20, %v1539_v4  ;;  %v4278_v63 = vld [vmem:[%s4441_s29] sm:$0xff]  ;;  %s5902_s29 = smov 16  }
 0x586   : > { %v1552_v38 = vsel %vm1550_vm10, %v1545_v61, %v1549_v62  ;;  %v1554_v45 = vsel %vm1550_vm10, %v1549_v62, %v1545_v61  ;;  %v2354_v4 = vpack.c.bf16 %v4278_v63, %v4278_v63 }
 0x587   : > { %v1570_v61 = vmul.f32 %v4769_v17, %v1552_v38  ;;  %v1571_v62 = vmul.f32 %v4771_v7, %v1554_v45  ;;  %v4896_v38 = vld [vmem:[%s5814_s13] sm:$0xff]  ;;  %v4903_v45 = vld [vmem:[%s5814_s13 + $0x8] sm:$0xff] }
 0x588   : > { %3961 = vmatprep.mubr.msk.f32.mxu1 %vm1714_vm12, %v4896_v38 }
 0x589   : > { %v1577_v32 = vpop.permute.xlu1 %1576  ;;  %v1581_v26 = vpop.permute.xlu0 %1580  ;;  %v1574_v23 = vadd.f32 %v1570_v61, %v1540_v5  ;;  %v1575_v28 = vadd.f32 %v1571_v62, %v1541_v6  ;;  %v2377_v5 = vsel %vm1207_vm3, %v2354_v4, 0  ;;  %v4279_v6 = vld [vmem:[%s4450_s3 + $0x8] sm:$0xff] }
 0x58a   : > { %v1585_v59 = vsel %vm1584_vm11, %v1577_v32, %v1581_v26  ;;  %v1587_v60 = vsel %vm1584_vm11, %v1581_v26, %v1577_v32  ;;  %2395 = vmatpush1.bf16.msra.mxu0 %v2377_v5 }
 0x58b   : > { %v1602_v9 = vmul.f32 %v4773_v10, %v1585_v59  ;;  %v1603_v12 = vmul.f32 %v4775_v21, %v1587_v60 }
 0x58d   : > { %v1579_v57 = vpop.permute.xlu0 %1578  ;;  %v1583_v58 = vpop.permute.xlu1 %1582  ;;  %v1606_v34 = vadd.f32 %v1602_v9, %v1572_v35  ;;  %v1607_v25 = vadd.f32 %v1603_v12, %v1573_v22  ;;  %v4280_v9 = vld [vmem:[%s4450_s3] sm:$0xff]  ;;  %s5903_s3 = smov 15  }
 0x58e   : > { %v1586_v33 = vsel %vm1584_vm11, %v1579_v57, %v1583_v58  ;;  %v1588_v11 = vsel %vm1584_vm11, %v1583_v58, %v1579_v57  ;;  %v3881_v12 = vcombine.high %v4280_v9, %v4279_v6 }
 0x58f   : > { %v1604_v0 = vmul.f32 %v4773_v10, %v1586_v33  ;;  %v1605_v30 = vmul.f32 %v4775_v21, %v1588_v11  ;;  %v1622_v50 = vadd.f32 %v4659_v1, %v1606_v34  ;;  %v1623_v39 = vadd.f32 %v4659_v1, %v1607_v25 }
 0x590   : > { %2396 = vmatprep.subr.bf16.mxu0 %v3881_v12 }
 0x591   : > { %v1608_v29 = vadd.f32 %v1604_v0, %v1574_v23  ;;  %v1609_v31 = vadd.f32 %v1605_v30, %v1575_v28  ;;  %v3880_v0 = vcombine.low %v4280_v9, %v4279_v6  ;;  %v4018_v30 = vld [vmem:[%s5817_s16] sm:$0xff]  }
 0x593   : > { %v1624_v32 = vadd.f32 %v4661_v3, %v1608_v29  ;;  %v1625_v26 = vadd.f32 %v4661_v3, %v1609_v31  ;;  %2397 = vmatpush1.bf16.msra.mxu0 %v3880_v0  ;;  %v1898_v29 = vld [vmem:[%s5812_s11 + $0x8] sm:$0xff] }
 0x596   : > { %3845 = vmatmul.mubr.msk.bf16.vlgmr.msra.gmra.mxu0 %vm811_vm1, %v4018_v30 }
 0x597   : > { %3975 = vmatprep.mubr.msk.f32.mxu0 %vm1714_vm12, %v4896_v38 }
 0x59a   : > { %v1700_v49 = vpop.permute.xlu0 %1699  ;;  %v1695_v27 = vpop.permute.xlu1 %1694 }
 0x59b   : > { %v1704_v13 = vadd.f32 %v1700_v49, %v1624_v32  ;;  %v1705_v2 = vadd.f32 %v1700_v49, %v1625_v26  ;;  %v1702_v56 = vadd.f32 %v1695_v27, %v1622_v50  ;;  %v1703_v8 = vadd.f32 %v1695_v27, %v1623_v39  ;;  %v1897_v32 = vld [vmem:[%s5812_s11] sm:$0xff]  ;;  %v1916_v49 = vld [vmem:[%s5813_s12 + $0x8] sm:$0xff] }
 0x59c   : > { %v1915_v27 = vld [vmem:[%s5813_s12] sm:$0xff] }
 0x59d   : > { %v1709_v37 = vadd.f32 %v1705_v2, %v1704_v13  ;;  %v1706_v44 = vadd.f32 %v1703_v8, %v1702_v56 }
 0x59f   : > { %1710 = vadd.xlane.f32.xlu0 %v1709_v37  ;;  %1707 = vadd.xlane.f32.xlu1 %v1706_v44 }
 0x628   : > { %v1711_v1 = vpop.xlane.xlu0 %1710  ;;  %v1708_v3 = vpop.xlane.xlu1 %1707 }
 0x629   : > { %3957 = vmatprep.subr.mxu1 %v1711_v1 }
 0x62a   : > { %3958 = vmatpush3.msra.mxu1 %v1711_v1 }
 0x62b   : > { %3959 = vmatprep.subr.mxu1 %v1708_v3 }
 0x62c   : > { %3960 = vmatpush3.msra.mxu1 %v1708_v3 }
 0x62d   : > { %3962 = vmatmul.mubr.msk.f32.vlgmr.msra.gmra.mxu1 %vm1714_vm12, %v4903_v45 }
 0x62e   : > { %3968 = vmatprep.mubr.msk.f32.mxu1 %vm1714_vm12, %v4896_v38 }
 0x6ed   : > { %v3963_v14 = vpop.f32.mrf.mxu1 }
 0x6ee   : > { %1803 = vperm.xlu0 %4004, %v3963_v14  }
 0x6ef   : > { %v1787_v51 = vpop.f32.mrf.mxu1 }
 0x6f0   : > { %1798 = vperm.xlu1 %4005, %v1787_v51  }
 0x769   : > { %v1804_v15 = vpop.permute.xlu0 %1803 }
 0x76a   : > { %v1808_v16 = vsub.f32 %v1704_v13, %v1804_v15  ;;  %v1809_v57 = vsub.f32 %v1705_v2, %v1804_v15  ;;  %v2357_v13 = vld [vmem:[%s5818_s17 + $0x8] sm:$0xff] }
 0x76b   : > { %v1799_v58 = vpop.permute.xlu1 %1798  ;;  %v2335_v2 = vld [vmem:[%s5816_s15 + $0x8] sm:$0xff] }
 0x76c   : > { %v1806_v59 = vsub.f32 %v1702_v56, %v1799_v58  ;;  %v1807_v60 = vsub.f32 %v1703_v8, %v1799_v58  ;;  %v1812_v33 = vmul.f32 %v1808_v16, %v1808_v16  ;;  %v1813_v11 = vmul.f32 %v1809_v57, %v1809_v57 }
 0x76e   : > { %v1817_v19 = vadd.f32 %v1813_v11, %v1812_v33  ;;  %v1810_v20 = vmul.f32 %v1806_v59, %v1806_v59  ;;  %v1811_v61 = vmul.f32 %v1807_v60, %v1807_v60 }
 0x770   : > { %1818 = vadd.xlane.f32.xlu0 %v1817_v19  ;;  %v1814_v62 = vadd.f32 %v1811_v61, %v1810_v20 }
 0x772   : > { %1815 = vadd.xlane.f32.xlu1 %v1814_v62 }
 0x7f9   : > { %v1819_v35 = vpop.xlane.xlu0 %1818 }
 0x7fa   : > { %3964 = vmatprep.subr.mxu1 %v1819_v35 }
 0x7fb   : > { %3965 = vmatpush3.msra.mxu1 %v1819_v35  ;;  %v1816_v22 = vpop.xlane.xlu1 %1815 }
 0x7fc   : > { %3966 = vmatprep.subr.mxu1 %v1816_v22 }
 0x7fd   : > { %3967 = vmatpush3.msra.mxu1 %v1816_v22 }
 0x7fe   : > { %3969 = vmatmul.mubr.msk.f32.vlgmr.msra.gmra.mxu1 %vm1714_vm12, %v4903_v45 }
 0x7ff   : > { %2083 = vmatprep.mubr.bf16.mxu1 %v4291_v18 }
 0x8be   : > { %v3970_v23 = vpop.f32.mrf.mxu1 }
 0x8bf   : > { %v1892_v28 = vadd.f32 1e-05, %v3970_v23 }
 0x8c0   : > { %v1886_v34 = vpop.f32.mrf.mxu1 }
 0x8c1   : > { %4062 = vrsqrt.f32 %v1892_v28  ;;  %v1887_v25 = vadd.f32 1e-05, %v1886_v34 }
 0x8c3   : > { %4064 = vrsqrt.f32 %v1887_v25 }
 0x8ce   : > { %v4063_v31 = vpop.eup %4062 }
 0x8cf   : > { %v1900_v26 = vmul.f32 %v4063_v31, %v1898_v29  ;;  %v4019_v29 = vld [vmem:[%s5815_s14] sm:$0xff]   ;;  %v4020_v31 = vld [vmem:[%s5815_s14 + $0x8] sm:$0xff]  }
 0x8d0   : > { %v4065_v50 = vpop.eup %4064 }
 0x8d1   : > { %1908 = vperm.xlu1 %4005, %v1900_v26   ;;  %v1899_v39 = vmul.f32 %v4065_v50, %v1897_v32  ;;  %v4021_v32 = vld [vmem:[%s5815_s14 + $0x10] sm:$0xff]   ;;  %v4022_v26 = vld [vmem:[%s5815_s14 + $0x18] sm:$0xff]   ;;  %v4023_v50 = vld [vmem:[%s5815_s14 + $0x20] sm:$0xff]  }
 0x8d3   : > { %1903 = vperm.xlu0 %4004, %v1899_v39   ;;  %v4024_v39 = vld [vmem:[%s5815_s14 + $0x28] sm:$0xff]  }
 0x8d5   : > { %1924 = vperm.xlu1 %4005, %v1916_v49   ;;  %v4025_v49 = vld [vmem:[%s5815_s14 + $0x30] sm:$0xff]  }
 0x8d7   : > { %1919 = vperm.xlu0 %4004, %v1915_v27   ;;  %v4026_v27 = vld [vmem:[%s5815_s14 + $0x38] sm:$0xff]  }
 0x8d9   : > { %2365 = vperm.xlu1 %4005, %v2357_v13   ;;  %v4027_v13 = vld [vmem:[%s5815_s14 + $0x40] sm:$0xff]  }
 0x8db   : > { %2343 = vperm.xlu0 %4004, %v2335_v2  }
 0x94c   : > { %v1909_v56 = vpop.permute.xlu1 %1908 }
 0x94d   : > { %v1913_v37 = vmul.f32 %v1909_v56, %v1808_v16  ;;  %v1914_v44 = vmul.f32 %v1909_v56, %v1809_v57 }
 0x94e   : > { %v1904_v8 = vpop.permute.xlu0 %1903 }
 0x94f   : > { %v1911_v3 = vmul.f32 %v1904_v8, %v1806_v59  ;;  %v1912_v14 = vmul.f32 %v1904_v8, %v1807_v60 }
 0x950   : > { %v1925_v1 = vpop.permute.xlu1 %1924 }
 0x951   : > { %v1929_v51 = vadd.f32 %v1925_v1, %v1913_v37  ;;  %v1930_v15 = vadd.f32 %v1925_v1, %v1914_v44 }
 0x952   : > { %v1920_v58 = vpop.permute.xlu0 %1919 }
 0x953   : > { %v3823_v33 = vmul.f32 -1.442695, %v1929_v51  ;;  %v3824_v11 = vmul.f32 -1.442695, %v1930_v15  ;;  %v1927_v19 = vadd.f32 %v1920_v58, %v1911_v3  ;;  %v1928_v20 = vadd.f32 %v1920_v58, %v1912_v14 }
 0x955   : > { %4066 = vpow2.f32 %v3823_v33  ;;  %v3821_v61 = vmul.f32 -1.442695, %v1927_v19  ;;  %v3822_v62 = vmul.f32 -1.442695, %v1928_v20 }
 0x956   : > { %4068 = vpow2.f32 %v3824_v11 }
 0x957   : > { %4070 = vpow2.f32 %v3821_v61 }
 0x958   : > { %4072 = vpow2.f32 %v3822_v62 }
 0x962   : > { %v4067_v63 = vpop.eup %4066 }
 0x963   : > { %v4069_v4 = vpop.eup %4068  ;;  %v1945_v16 = vadd.f32 1.0, %v4067_v63 }
 0x964   : > { %v4071_v57 = vpop.eup %4070  ;;  %v1946_v5 = vadd.f32 1.0, %v4069_v4 }
 0x965   : > { %v4073_v59 = vpop.eup %4072  ;;  %4074 = vrcp.f32 %v1945_v16  ;;  %v1943_v60 = vadd.f32 1.0, %v4071_v57 }
 0x966   : > { %4076 = vrcp.f32 %v1946_v5  ;;  %v1944_v6 = vadd.f32 1.0, %v4073_v59 }
 0x967   : > { %4078 = vrcp.f32 %v1943_v60 }
 0x968   : > { %4080 = vrcp.f32 %v1944_v6 }
 0x972   : > { %v4075_v9 = vpop.eup %4074 }
 0x973   : > { %v4077_v12 = vpop.eup %4076  ;;  %v1957_v35 = vmul.f32 %v4075_v9, %v1929_v51 }
 0x974   : > { %v4079_v0 = vpop.eup %4078  ;;  %v1958_v23 = vmul.f32 %v4077_v12, %v1930_v15 }
 0x975   : > { %v4081_v30 = vpop.eup %4080  ;;  %v1955_v22 = vmul.f32 %v4079_v0, %v1927_v19 }
 0x976   : > { %v1956_v28 = vmul.f32 %v4081_v30, %v1928_v20 }
 0x977   : > { %v1977_v34 = vpack.c.bf16 %v1957_v35, %v1955_v22 }
 0x978   : > { %v1978_v25 = vpack.c.bf16 %v1958_v23, %v1956_v28 }
 0x97a   : > { %2065 = vmatprep.subr.bf16.mxu1 %v1978_v25 }
 0x97b   : > { %2066 = vmatpush1.bf16.msra.mxu1 %v1977_v34 }
 0x97e   : > { %3834 = vmatmul.mubr.msk.bf16.vlgmr.msra.gmra.mxu1 %vm1714_vm12, %v4019_v29 }
 0x97f   : > { %2093 = vmatprep.mubr.bf16.mxu1 %v4291_v18 }
 0x986   : > { %3835 = vmatmul.mubr.msk.bf16.gmra.mxu1 %vm1714_vm12, %v4020_v31  ;;  %v2334_v31 = vld [vmem:[%s5816_s15] sm:$0xff] }
 0x987   : > { %2103 = vmatprep.mubr.bf16.mxu1 %v4291_v18 }
 0x98e   : > { %3836 = vmatmul.mubr.msk.bf16.gmra.mxu1 %vm1714_vm12, %v4021_v32  ;;  %v2356_v32 = vld [vmem:[%s5818_s17] sm:$0xff] }
 0x98f   : > { %2113 = vmatprep.mubr.bf16.mxu1 %v4291_v18 }
 0x996   : > { %3837 = vmatmul.mubr.msk.bf16.gmra.mxu1 %vm1714_vm12, %v4022_v26  ;;  %v5031_v26 = vpop.permute.xlu0 %2343 }
 0x997   : > { %2123 = vmatprep.mubr.bf16.mxu1 %v4291_v18 }
 0x99e   : > { %3838 = vmatmul.mubr.msk.bf16.gmra.mxu1 %vm1714_vm12, %v4023_v50  ;;  %v5033_v50 = vpop.permute.xlu1 %2365 }
 0x99f   : > { %2133 = vmatprep.mubr.bf16.mxu1 %v4291_v18 }
 0x9a6   : > { %3839 = vmatmul.mubr.msk.bf16.gmra.mxu1 %vm1714_vm12, %v4024_v39 }
 0x9a7   : > { %2143 = vmatprep.mubr.bf16.mxu1 %v4291_v18 }
 0x9ae   : > { %3840 = vmatmul.mubr.msk.bf16.gmra.mxu1 %vm1714_vm12, %v4025_v49 }
 0x9af   : > { %2153 = vmatprep.mubr.bf16.mxu1 %v4291_v18 }
 0x9b6   : > { %3841 = vmatmul.mubr.msk.bf16.gmra.mxu1 %vm1714_vm12, %v4026_v27 }
 0x9b7   : > { %2163 = vmatprep.mubr.bf16.mxu1 %v4291_v18 }
 0x9be   : > { %3842 = vmatmul.mubr.msk.bf16.gmra.mxu1 %vm1714_vm12, %v4027_v13 }
 0x9bf   : > { %2892 = vmatprep.mubr.bf16.mxu1 %v4291_v18 }
 0xa3e   : > { %v2085_v2 = vpop.f32.mrf.mxu1 }
 0xa3f   : > { %2174 = vrot.lane.b32.xlu0 %v2085_v2, %s4292_s5 }
 0xa40   : > { %v2087_v56 = vpop.f32.mrf.mxu1 }
 0xa41   : > { %2178 = vrot.lane.b32.xlu1 %v2087_v56, %s4292_s5 }
 0xa42   : > { %v2089_v8 = vpop.f32.mrf.mxu1 }
 0xa43   : > { %2176 = vrot.lane.b32.xlu0 %v2089_v8, %s4292_s5 }
 0xa44   : > { %v2091_v37 = vpop.f32.mrf.mxu1 }
 0xa45   : > { %2180 = vrot.lane.b32.xlu1 %v2091_v37, %s4292_s5  ;;  %s5904_s5 = smov 1  }
 0xa46   : > { %v2095_v44 = vpop.f32.mrf.mxu1 }
 0xa47   : > { %2194 = vrot.lane.b32.xlu0 %v2095_v44, %s5902_s29 }
 0xa48   : > { %v2097_v1 = vpop.f32.mrf.mxu1 }
 0xa49   : > { %2198 = vrot.lane.b32.xlu1 %v2097_v1, %s5902_s29 }
 0xa4a   : > { %v2099_v3 = vpop.f32.mrf.mxu1 }
 0xa4b   : > { %2196 = vrot.lane.b32.xlu0 %v2099_v3, %s5902_s29 }
 0xa4c   : > { %v2101_v14 = vpop.f32.mrf.mxu1 }
 0xa4d   : > { %2200 = vrot.lane.b32.xlu1 %v2101_v14, %s5902_s29 }
 0xa4e   : > { %v2105_v51 = vpop.f32.mrf.mxu1 }
 0xa4f   : > { %2214 = vrot.lane.b32.xlu0 %v2105_v51, %s5903_s3 }
 0xa50   : > { %v2107_v15 = vpop.f32.mrf.mxu1 }
 0xa51   : > { %2218 = vrot.lane.b32.xlu1 %v2107_v15, %s5903_s3 }
 0xa52   : > { %v2109_v58 = vpop.f32.mrf.mxu1 }
 0xa53   : > { %2216 = vrot.lane.b32.xlu0 %v2109_v58, %s5903_s3 }
 0xa54   : > { %v2111_v33 = vpop.f32.mrf.mxu1 }
 0xa55   : > { %2220 = vrot.lane.b32.xlu1 %v2111_v33, %s5903_s3 }
 0xa56   : > { %v2115_v11 = vpop.f32.mrf.mxu1 }
 0xa57   : > { %2234 = vrot.lane.b32.xlu0 %v2115_v11, %s5904_s5 }
 0xa58   : > { %v2117_v19 = vpop.f32.mrf.mxu1 }
 0xa59   : > { %2238 = vrot.lane.b32.xlu1 %v2117_v19, %s5904_s5 }
 0xa5a   : > { %v2119_v20 = vpop.f32.mrf.mxu1 }
 0xa5b   : > { %2236 = vrot.lane.b32.xlu0 %v2119_v20, %s5904_s5 }
 0xa5c   : > { %v2121_v61 = vpop.f32.mrf.mxu1 }
 0xa5d   : > { %2240 = vrot.lane.b32.xlu1 %v2121_v61, %s5904_s5  ;;  %s5971_s5 = sld [smem:[#allocation33_spill]] }
 0xa5e   : > { %v5001_v62 = vpop.f32.mrf.mxu1 }
 0xa60   : > { %v5003_v63 = vpop.f32.mrf.mxu1 }
 0xa62   : > { %v5005_v4 = vpop.f32.mrf.mxu1 }
 0xa64   : > { %v5007_v16 = vpop.f32.mrf.mxu1 }
 0xa66   : > { %v2135_v57 = vpop.f32.mrf.mxu1 }
 0xa67   : > { %2254 = vrot.lane.b32.xlu0 %v2135_v57, %s5905_s27 }
 0xa68   : > { %v2137_v5 = vpop.f32.mrf.mxu1 }
 0xa69   : > { %2258 = vrot.lane.b32.xlu1 %v2137_v5, %s5905_s27 }
 0xa6a   : > { %v2139_v59 = vpop.f32.mrf.mxu1 }
 0xa6b   : > { %2256 = vrot.lane.b32.xlu0 %v2139_v59, %s5905_s27 }
 0xa6c   : > { %v2141_v60 = vpop.f32.mrf.mxu1 }
 0xa6d   : > { %2260 = vrot.lane.b32.xlu1 %v2141_v60, %s5905_s27  ;;  %s777_s27 = scalar_lea.vmem %s5971_s5, %s3879_s1 }
 0xa6e   : > { %v2145_v6 = vpop.f32.mrf.mxu1 }
 0xa6f   : > { %2274 = vrot.lane.b32.xlu0 %v2145_v6, %s5906_s0 }
 0xa70   : > { %v2147_v9 = vpop.f32.mrf.mxu1 }
 0xa71   : > { %2278 = vrot.lane.b32.xlu1 %v2147_v9, %s5906_s0 }
 0xa72   : > { %v2149_v12 = vpop.f32.mrf.mxu1 }
 0xa73   : > { %2276 = vrot.lane.b32.xlu0 %v2149_v12, %s5906_s0 }
 0xa74   : > { %v2151_v0 = vpop.f32.mrf.mxu1 }
 0xa75   : > { %2280 = vrot.lane.b32.xlu1 %v2151_v0, %s5906_s0 }
 0xa76   : > { %v2155_v30 = vpop.f32.mrf.mxu1 }
 0xa77   : > { %2294 = vrot.lane.b32.xlu0 %v2155_v30, %s5907_s8 }
 0xa78   : > { %v2157_v35 = vpop.f32.mrf.mxu1 }
 0xa79   : > { %2298 = vrot.lane.b32.xlu1 %v2157_v35, %s5907_s8 }
 0xa7a   : > { %v2159_v22 = vpop.f32.mrf.mxu1 }
 0xa7b   : > { %2296 = vrot.lane.b32.xlu0 %v2159_v22, %s5907_s8 }
 0xa7c   : > { %v2161_v23 = vpop.f32.mrf.mxu1 }
 0xa7d   : > { %2300 = vrot.lane.b32.xlu1 %v2161_v23, %s5907_s8 }
 0xa7e   : > { %v2165_v28 = vpop.f32.mrf.mxu1 }
 0xa7f   : > { %2314 = vrot.lane.b32.xlu0 %v2165_v28, %s5908_s24 }
 0xa80   : > { %v2167_v34 = vpop.f32.mrf.mxu1 }
 0xa81   : > { %2318 = vrot.lane.b32.xlu1 %v2167_v34, %s5908_s24 }
 0xa82   : > { %v2169_v25 = vpop.f32.mrf.mxu1 }
 0xa83   : > { %2316 = vrot.lane.b32.xlu0 %v2169_v25, %s5908_s24 }
 0xa84   : > { %v2171_v29 = vpop.f32.mrf.mxu1 }
 0xa85   : > { %2320 = vrot.lane.b32.xlu1 %v2171_v29, %s5908_s24 }
 0xa87   : > { %2338 = vperm.xlu0 %4004, %v2334_v31  }
 0xa89   : > { %2360 = vperm.xlu1 %4005, %v2356_v32  }
 0xab1   : > { %v2175_v39 = vpop.permute.xlu0 %2174 }
 0xab3   : > { %v2179_v49 = vpop.permute.xlu1 %2178 }
 0xab4   : > { %v2182_v5 = vsel %vm1347_vm4, %v2175_v39, %v2179_v49  ;;  %v2184_v59 = vsel %vm1347_vm4, %v2179_v49, %v2175_v39 }
 0xab5   : > { %v2177_v27 = vpop.permute.xlu0 %2176  ;;  %v2186_v12 = vmul.f32 %v2184_v59, %v4702_v36  ;;  %v2187_v0 = vmul.f32 %v2182_v5, %v4708_v40 }
 0xab7   : > { %v2181_v13 = vpop.permute.xlu1 %2180  ;;  %v2190_v39 = vadd.f32 %v2186_v12, %v5001_v62  ;;  %v2191_v49 = vadd.f32 %v2187_v0, %v5003_v63  ;;  %v5079_v62 = vpop.f32.mrf.mxu0 }
 0xab8   : > { %v2183_v6 = vsel %vm1347_vm4, %v2177_v27, %v2181_v13  ;;  %v2185_v9 = vsel %vm1347_vm4, %v2181_v13, %v2177_v27 }
 0xab9   : > { %v2195_v2 = vpop.permute.xlu0 %2194  ;;  %v2188_v23 = vmul.f32 %v2185_v9, %v4702_v36  ;;  %v2189_v28 = vmul.f32 %v2183_v6, %v4708_v40 }
 0xabb   : > { %v2199_v56 = vpop.permute.xlu1 %2198 }
 0xabc   : > { %v2202_v30 = vsel %vm1380_vm5, %v2195_v2, %v2199_v56  ;;  %v2204_v35 = vsel %vm1380_vm5, %v2199_v56, %v2195_v2  ;;  %v2192_v56 = vadd.f32 %v2188_v23, %v5005_v4 }
 0xabd   : > { %v2197_v8 = vpop.permute.xlu0 %2196  ;;  %v2206_v31 = vmul.f32 %v2204_v35, %v4710_v41  ;;  %v2207_v32 = vmul.f32 %v2202_v30, %v4712_v42  ;;  %v5101_v35 = vpop.f32.mrf.mxu0 }
 0xabf   : > { %v2201_v37 = vpop.permute.xlu1 %2200  ;;  %v2210_v63 = vadd.f32 %v2206_v31, %v2190_v39  ;;  %v2211_v5 = vadd.f32 %v2207_v32, %v2191_v49 }
 0xac0   : > { %v2203_v34 = vsel %vm1380_vm5, %v2197_v8, %v2201_v37  ;;  %v2205_v25 = vsel %vm1380_vm5, %v2201_v37, %v2197_v8  ;;  %v2193_v8 = vadd.f32 %v2189_v28, %v5007_v16 }
 0xac1   : > { %v2215_v44 = vpop.permute.xlu0 %2214  ;;  %v2208_v36 = vmul.f32 %v2205_v25, %v4710_v41  ;;  %v2209_v40 = vmul.f32 %v2203_v34, %v4712_v42 }
 0xac3   : > { %v2219_v1 = vpop.permute.xlu1 %2218  ;;  %v2212_v6 = vadd.f32 %v2208_v36, %v2192_v56  ;;  %v2213_v9 = vadd.f32 %v2209_v40, %v2193_v8 }
 0xac4   : > { %v2222_v59 = vsel %vm1414_vm6, %v2215_v44, %v2219_v1  ;;  %v2224_v4 = vsel %vm1414_vm6, %v2219_v1, %v2215_v44 }
 0xac5   : > { %v2217_v3 = vpop.permute.xlu0 %2216  ;;  %v2226_v23 = vmul.f32 %v2224_v4, %v4714_v43  ;;  %v2227_v28 = vmul.f32 %v2222_v59, %v4722_v46 }
 0xac7   : > { %v2221_v14 = vpop.permute.xlu1 %2220  ;;  %v2231_v56 = vadd.f32 %v2227_v28, %v2211_v5 }
 0xac8   : > { %v2223_v13 = vsel %vm1414_vm6, %v2217_v3, %v2221_v14  ;;  %v2225_v2 = vsel %vm1414_vm6, %v2221_v14, %v2217_v3 }
 0xac9   : > { %v2235_v51 = vpop.permute.xlu0 %2234  ;;  %v2228_v16 = vmul.f32 %v2225_v2, %v4714_v43  ;;  %v2229_v3 = vmul.f32 %v2223_v13, %v4722_v46  ;;  %v2420_v13 = vpop.f32.mrf.mxu0  ;;  %v2230_v2 = vadd.f32 %v2226_v23, %v2210_v63 }
 0xaca   : > { %v2421_v23 = vadd.f32 %v2420_v13, %v5033_v50 }
 0xacb   : > { %v2239_v15 = vpop.permute.xlu1 %2238  ;;  %v2232_v34 = vadd.f32 %v2228_v16, %v2212_v6  ;;  %v2233_v25 = vadd.f32 %v2229_v3, %v2213_v9  ;;  %v2422_v6 = vpop.f32.mrf.mxu0 }
 0xacc   : > { %v2423_v28 = vadd.f32 %v2422_v6, %v5033_v50 }
 0xacd   : > { %v2237_v58 = vpop.permute.xlu0 %2236 }
 0xacf   : > { %v2241_v33 = vpop.permute.xlu1 %2240 }
 0xad0   : > { %v2243_v41 = vsel %vm1448_vm7, %v2237_v58, %v2241_v33  ;;  %v2245_v42 = vsel %vm1448_vm7, %v2241_v33, %v2237_v58  ;;  %v2242_v58 = vsel %vm1448_vm7, %v2235_v51, %v2239_v15  ;;  %v2244_v33 = vsel %vm1448_vm7, %v2239_v15, %v2235_v51 }
 0xad1   : > { %v2248_v44 = vmul.f32 %v2245_v42, %v4725_v47  ;;  %v2249_v1 = vmul.f32 %v2243_v41, %v4727_v48  ;;  %v2246_v32 = vmul.f32 %v2244_v33, %v4725_v47  ;;  %v2247_v39 = vmul.f32 %v2242_v58, %v4727_v48 }
 0xad3   : > { %v2252_v49 = vadd.f32 %v2248_v44, %v2232_v34  ;;  %v2253_v36 = vadd.f32 %v2249_v1, %v2233_v25  ;;  %v2250_v4 = vadd.f32 %v2246_v32, %v2230_v2  ;;  %v2251_v16 = vadd.f32 %v2247_v39, %v2231_v56 }
 0xad9   : > { %v5035_v11 = vpop.permute.xlu0 %2254 }
 0xadb   : > { %v5037_v19 = vpop.permute.xlu1 %2258 }
 0xadc   : > { %v2262_v47 = vsel %vm1482_vm8, %v5035_v11, %v5037_v19  ;;  %v2264_v48 = vsel %vm1482_vm8, %v5037_v19, %v5035_v11 }
 0xadd   : > { %v2257_v20 = vpop.permute.xlu0 %2256  ;;  %v2266_v9 = vmul.f32 %v2262_v47, %v4740_v52 }
 0xadf   : > { %v2261_v61 = vpop.permute.xlu1 %2260  ;;  %v2270_v34 = vadd.f32 %v2266_v9, %v2250_v4 }
 0xae0   : > { %v2263_v12 = vsel %vm1482_vm8, %v2257_v20, %v2261_v61  ;;  %v2265_v0 = vsel %vm1482_vm8, %v2261_v61, %v2257_v20 }
 0xae1   : > { %v5039_v57 = vpop.permute.xlu0 %2274  ;;  %v2268_v51 = vmul.f32 %v2263_v12, %v4740_v52  ;;  %v2269_v15 = vmul.f32 %v2265_v0, %v4742_v53  ;;  %v2267_v12 = vmul.f32 %v2264_v48, %v4742_v53 }
 0xae3   : > { %v5045_v60 = vpop.permute.xlu1 %2278  ;;  %v2272_v8 = vadd.f32 %v2268_v51, %v2252_v49  ;;  %v2273_v41 = vadd.f32 %v2269_v15, %v2253_v36 }
 0xae4   : > { %v2282_v63 = vsel %vm1516_vm9, %v5039_v57, %v5045_v60  ;;  %v2284_v5 = vsel %vm1516_vm9, %v5045_v60, %v5039_v57 }
 0xae5   : > { %v2277_v22 = vpop.permute.xlu0 %2276  ;;  %v2286_v60 = vmul.f32 %v2282_v63, %v4744_v54 }
 0xae7   : > { %v2281_v29 = vpop.permute.xlu1 %2280  ;;  %v2290_v32 = vadd.f32 %v2286_v60, %v2270_v34 }
 0xae8   : > { %v2283_v20 = vsel %vm1516_vm9, %v2277_v22, %v2281_v29  ;;  %v2285_v61 = vsel %vm1516_vm9, %v2281_v29, %v2277_v22 }
 0xae9   : > { %v5067_v27 = vpop.permute.xlu0 %2294  ;;  %v2288_v22 = vmul.f32 %v2283_v20, %v4744_v54  ;;  %v2289_v29 = vmul.f32 %v2285_v61, %v4746_v55  ;;  %v2271_v54 = vadd.f32 %v2267_v12, %v2251_v16 }
 0xaeb   : > { %v5077_v37 = vpop.permute.xlu1 %2298  ;;  %v2292_v3 = vadd.f32 %v2288_v22, %v2272_v8  ;;  %v2293_v11 = vadd.f32 %v2289_v29, %v2273_v41 }
 0xaec   : > { %v2302_v52 = vsel %vm1550_vm10, %v5067_v27, %v5077_v37  ;;  %v2304_v53 = vsel %vm1550_vm10, %v5077_v37, %v5067_v27 }
 0xaed   : > { %v2297_v14 = vpop.permute.xlu0 %2296  ;;  %v2306_v51 = vmul.f32 %v2302_v52, %v4769_v17  ;;  %v2307_v15 = vmul.f32 %v2304_v53, %v4771_v7  ;;  %v2629_v52 = vld [vmem:[%s5820_s19] sm:$0xff]  ;;  %v2654_v53 = vld [vmem:[%s5822_s21 + $0x8] sm:$0xff] }
 0xaef   : > { %v2301_v30 = vpop.permute.xlu1 %2300  ;;  %v2310_v24 = vadd.f32 %v2306_v51, %v2290_v32 }
 0xaf0   : > { %v2303_v43 = vsel %vm1550_vm10, %v2297_v14, %v2301_v30  ;;  %v2305_v46 = vsel %vm1550_vm10, %v2301_v30, %v2297_v14  ;;  %v2287_v30 = vmul.f32 %v2284_v5, %v4746_v55 }
 0xaf1   : > { %v2315_v31 = vpop.permute.xlu0 %2314  ;;  %v2308_v42 = vmul.f32 %v2303_v43, %v4769_v17  ;;  %v2309_v59 = vmul.f32 %v2305_v46, %v4771_v7 }
 0xaf2   : > { %v2291_v50 = vadd.f32 %v2287_v30, %v2271_v54  ;;  %v2630_v30 = vld [vmem:[%s5820_s19 + $0x8] sm:$0xff] }
 0xaf3   : > { %v2319_v40 = vpop.permute.xlu1 %2318  ;;  %v2312_v33 = vadd.f32 %v2308_v42, %v2292_v3  ;;  %v2313_v44 = vadd.f32 %v2309_v59, %v2293_v11 }
 0xaf4   : > { %v2322_v55 = vsel %vm1584_vm11, %v2315_v31, %v2319_v40  ;;  %v2324_v25 = vsel %vm1584_vm11, %v2319_v40, %v2315_v31  ;;  %v2311_v31 = vadd.f32 %v2307_v15, %v2291_v50 }
 0xaf5   : > { %v2317_v19 = vpop.permute.xlu0 %2316  ;;  %v2326_v39 = vmul.f32 %v2322_v55, %v4773_v10  ;;  %v2327_v43 = vmul.f32 %v2324_v25, %v4775_v21 }
 0xaf7   : > { %v2321_v14 = vpop.permute.xlu1 %2320  ;;  %v2330_v36 = vadd.f32 %v2326_v39, %v2310_v24  ;;  %v2331_v22 = vadd.f32 %v2327_v43, %v2311_v31  ;;  %v4028_v31 = vld [vmem:[%s5821_s20] sm:$0xff]  }
 0xaf8   : > { %v2323_v0 = vsel %vm1584_vm11, %v2317_v19, %v2321_v14  ;;  %v2325_v58 = vsel %vm1584_vm11, %v2321_v14, %v2317_v19 }
 0xaf9   : > { %v2328_v1 = vmul.f32 %v2323_v0, %v4773_v10  ;;  %v2329_v57 = vmul.f32 %v2325_v58, %v4775_v21 }
 0xafb   : > { %v2332_v20 = vadd.f32 %v2328_v1, %v2312_v33  ;;  %v2333_v61 = vadd.f32 %v2329_v57, %v2313_v44  ;;  %v2612_v33 = vld [vmem:[%s5819_s18 + $0x8] sm:$0xff]  ;;  %v2611_v1 = vld [vmem:[%s5819_s18] sm:$0xff] }
 0xafd   : > { %v2348_v27 = vadd.f32 %v5031_v26, %v2332_v20  ;;  %v2349_v37 = vadd.f32 %v5031_v26, %v2333_v61  ;;  %v2655_v20 = vld [vmem:[%s5822_s21 + $0x10] sm:$0xff] }
 0xaff   : > { %v5167_v46 = vadd.f32 %v2421_v23, %v2348_v27  ;;  %v5169_v49 = vadd.f32 %v2423_v28, %v2349_v37  ;;  %v2653_v23 = vld [vmem:[%s5822_s21] sm:$0xff]  ;;  %v2656_v28 = vld [vmem:[%s5822_s21 + $0x18] sm:$0xff] }
 0xb01   : > { %5909 = vst [vmem:[#allocation4_spill] sm:$0xff] %v5167_v46  ;;  %5910 = vst [vmem:[#allocation5_spill] sm:$0xff] %v5169_v49  ;;  %v2432_v17 = vadd.f32 %v5169_v49, %v5167_v46 }
 0xb02   : > { %v2339_v7 = vpop.permute.xlu0 %2338 }
 0xb03   : > { %2433 = vadd.xlane.f32.xlu0 %v2432_v17  ;;  %v2346_v29 = vadd.f32 %v2339_v7, %v2330_v36  ;;  %v2347_v40 = vadd.f32 %v2339_v7, %v2331_v22  ;;  %v4029_v17 = vld [vmem:[%s5821_s20 + $0x8] sm:$0xff]  }
 0xb04   : > { %v2361_v26 = vpop.permute.xlu1 %2360 }
 0xb05   : > { %v2417_v10 = vadd.f32 %v5079_v62, %v2361_v26  ;;  %v2419_v21 = vadd.f32 %v5101_v35, %v2361_v26 }
 0xb07   : > { %v5175_v13 = vadd.f32 %v2417_v10, %v2346_v29  ;;  %v5177_v2 = vadd.f32 %v2419_v21, %v2347_v40 }
 0xb09   : > { %5911 = vst [vmem:[#allocation6_spill] sm:$0xff] %v5175_v13  ;;  %5912 = vst [vmem:[#allocation7_spill] sm:$0xff] %v5177_v2  ;;  %v2429_v56 = vadd.f32 %v5177_v2, %v5175_v13 }
 0xb0b   : > { %2430 = vadd.xlane.f32.xlu1 %v2429_v56 }
 0xb8c   : > { %v2434_v47 = vpop.xlane.xlu0 %2433 }
 0xb8d   : > { %3971 = vmatprep.subr.mxu0 %v2434_v47 }
 0xb8e   : > { %3972 = vmatpush3.msra.mxu0 %v2434_v47 }
 0xb94   : > { %v2431_v48 = vpop.xlane.xlu1 %2430 }
 0xb95   : > { %3973 = vmatprep.subr.mxu0 %v2431_v48 }
 0xb96   : > { %3974 = vmatpush3.msra.mxu0 %v2431_v48 }
 0xb97   : > { %3976 = vmatmul.mubr.msk.f32.vlgmr.msra.gmra.mxu0 %vm1714_vm12, %v4903_v45 }
 0xb98   : > { %3982 = vmatprep.mubr.msk.f32.mxu0 %vm1714_vm12, %v4896_v38 }
 0xc57   : > { %v3977_v62 = vpop.f32.mrf.mxu0 }
 0xc58   : > { %2517 = vperm.xlu0 %4004, %v3977_v62  }
 0xc59   : > { %v2501_v35 = vpop.f32.mrf.mxu0 }
 0xc5a   : > { %2512 = vperm.xlu1 %4005, %v2501_v35  }
 0xcd3   : > { %v2518_v8 = vpop.permute.xlu0 %2517 }
 0xcd4   : > { %v2522_v41 = vsub.f32 %v5167_v46, %v2518_v8  ;;  %v2523_v42 = vsub.f32 %v5169_v49, %v2518_v8 }
 0xcd5   : > { %v2513_v59 = vpop.permute.xlu1 %2512 }
 0xcd6   : > { %v2520_v4 = vsub.f32 %v5175_v13, %v2513_v59  ;;  %v2521_v16 = vsub.f32 %v5177_v2, %v2513_v59  ;;  %v2526_v63 = vmul.f32 %v2522_v41, %v2522_v41  ;;  %v2527_v5 = vmul.f32 %v2523_v42, %v2523_v42 }
 0xcd8   : > { %v2524_v3 = vmul.f32 %v2520_v4, %v2520_v4  ;;  %v2525_v11 = vmul.f32 %v2521_v16, %v2521_v16  ;;  %v2531_v19 = vadd.f32 %v2527_v5, %v2526_v63 }
 0xcda   : > { %2532 = vadd.xlane.f32.xlu0 %v2531_v19  ;;  %v2528_v38 = vadd.f32 %v2525_v11, %v2524_v3 }
 0xcdc   : > { %2529 = vadd.xlane.f32.xlu1 %v2528_v38 }
 0xd63   : > { %v2533_v14 = vpop.xlane.xlu0 %2532 }
 0xd64   : > { %3978 = vmatprep.subr.mxu0 %v2533_v14 }
 0xd65   : > { %3979 = vmatpush3.msra.mxu0 %v2533_v14  ;;  %v2530_v6 = vpop.xlane.xlu1 %2529 }
 0xd66   : > { %3980 = vmatprep.subr.mxu0 %v2530_v6 }
 0xd67   : > { %3981 = vmatpush3.msra.mxu0 %v2530_v6 }
 0xd68   : > { %3983 = vmatmul.mubr.msk.f32.vlgmr.msra.gmra.mxu0 %vm1714_vm12, %v4903_v45 }
 0xd69   : > { %2745 = vmatprep.mubr.bf16.mxu0 %v4291_v18 }
 0xe28   : > { %v3984_v9 = vpop.f32.mrf.mxu0 }
 0xe29   : > { %v2606_v12 = vadd.f32 1e-05, %v3984_v9 }
 0xe2a   : > { %v2600_v0 = vpop.f32.mrf.mxu0 }
 0xe2b   : > { %4082 = vrsqrt.f32 %v2606_v12  ;;  %v2601_v58 = vadd.f32 1e-05, %v2600_v0 }
 0xe2d   : > { %4084 = vrsqrt.f32 %v2601_v58 }
 0xe38   : > { %v4083_v44 = vpop.eup %4082 }
 0xe39   : > { %v2614_v57 = vmul.f32 %v4083_v44, %v2612_v33 }
 0xe3a   : > { %v4085_v60 = vpop.eup %4084 }
 0xe3b   : > { %2622 = vperm.xlu1 %4005, %v2614_v57   ;;  %v2613_v45 = vmul.f32 %v4085_v60, %v2611_v1 }
 0xe3d   : > { %2617 = vperm.xlu0 %4004, %v2613_v45  }
 0xe3f   : > { %2638 = vperm.xlu1 %4005, %v2630_v30  }
 0xe41   : > { %2633 = vperm.xlu0 %4004, %v2629_v52  }
 0xe43   : > { %2666 = vperm.xlu1 %4005, %v2654_v53  }
 0xe45   : > { %2661 = vperm.xlu0 %4004, %v2653_v23  }
 0xe47   : > { %2676 = vperm.xlu1 %4005, %v2656_v28  }
 0xe49   : > { %2671 = vperm.xlu0 %4004, %v2655_v20  }
 0xeb6   : > { %v2623_v61 = vpop.permute.xlu1 %2622 }
 0xeb7   : > { %v2627_v55 = vmul.f32 %v2623_v61, %v2522_v41  ;;  %v2628_v25 = vmul.f32 %v2623_v61, %v2523_v42 }
 0xeb8   : > { %v2618_v34 = vpop.permute.xlu0 %2617 }
 0xeb9   : > { %v2625_v51 = vmul.f32 %v2618_v34, %v2520_v4  ;;  %v2626_v15 = vmul.f32 %v2618_v34, %v2521_v16 }
 0xeba   : > { %v2639_v54 = vpop.permute.xlu1 %2638 }
 0xebb   : > { %v2643_v37 = vadd.f32 %v2639_v54, %v2627_v55  ;;  %v2644_v32 = vadd.f32 %v2639_v54, %v2628_v25 }
 0xebc   : > { %v2634_v27 = vpop.permute.xlu0 %2633 }
 0xebd   : > { %v2641_v50 = vadd.f32 %v2634_v27, %v2625_v51  ;;  %v2642_v39 = vadd.f32 %v2634_v27, %v2626_v15 }
 0xebe   : > { %v2667_v22 = vpop.permute.xlu1 %2666 }
 0xebf   : > { %v2651_v43 = vpack.c.bf16 %v2643_v37, %v2641_v50  ;;  %v2652_v24 = vpack.c.bf16 %v2644_v32, %v2642_v39 }
 0xec0   : > { %v2662_v26 = vpop.permute.xlu0 %2661 }
 0xec1   : > { %2727 = vmatprep.subr.bf16.mxu0 %v2652_v24 }
 0xec2   : > { %2728 = vmatpush1.bf16.msra.mxu0 %v2651_v43  ;;  %v2677_v42 = vpop.permute.xlu1 %2676 }
 0xec4   : > { %v2672_v59 = vpop.permute.xlu0 %2671 }
 0xec5   : > { %3853 = vmatmul.mubr.msk.bf16.vlgmr.msra.gmra.mxu0 %vm1714_vm12, %v4028_v31 }
 0xec6   : > { %2755 = vmatprep.mubr.bf16.mxu0 %v4291_v18 }
 0xecd   : > { %3854 = vmatmul.mubr.msk.bf16.gmra.mxu0 %vm1714_vm12, %v4029_v17 }
 0xece   : > { %2765 = vmatprep.mubr.bf16.mxu0 %v4291_v18 }
 0xf85   : > { %v2747_v7 = vpop.f32.mrf.mxu0 }
 0xf86   : > { %v2748_v40 = vadd.f32 %v2747_v7, %v2662_v26 }
 0xf87   : > { %v2749_v36 = vpop.f32.mrf.mxu0 }
 0xf88   : > { %v2750_v56 = vadd.f32 %v2749_v36, %v2662_v26 }
 0xf89   : > { %v2751_v29 = vpop.f32.mrf.mxu0 }
 0xf8a   : > { %v2752_v10 = vadd.f32 %v2751_v29, %v2667_v22 }
 0xf8b   : > { %v2753_v21 = vpop.f32.mrf.mxu0 }
 0xf8c   : > { %v2776_v47 = vpack.c.bf16 %v2752_v10, %v2748_v40  ;;  %v2754_v48 = vadd.f32 %v2753_v21, %v2667_v22 }
 0xf8d   : > { %v2757_v62 = vpop.f32.mrf.mxu0 }
 0xf8e   : > { %v2777_v35 = vpack.c.bf16 %v2754_v48, %v2750_v56  ;;  %2780 = vxpose.xlu0.c.b16.start.end [1/1] (short) %v2776_v47, 128  ;;  %v2758_v3 = vadd.f32 %v2757_v62, %v2672_v59 }
 0xf8f   : > { %v2759_v8 = vpop.f32.mrf.mxu0 }
 0xf90   : > { %2796 = vxpose.xlu1.c.b16.start.end [1/1] (short) %v2777_v35, 128  ;;  %v2760_v63 = vadd.f32 %v2759_v8, %v2672_v59 }
 0xf91   : > { %v2761_v41 = vpop.f32.mrf.mxu0 }
 0xf92   : > { %v2762_v4 = vadd.f32 %v2761_v41, %v2677_v42 }
 0xf93   : > { %v2763_v16 = vpop.f32.mrf.mxu0 }
 0xf94   : > { %v2764_v5 = vadd.f32 %v2763_v16, %v2677_v42  ;;  %v2778_v19 = vpack.c.bf16 %v2762_v4, %v2758_v3 }
 0xf96   : > { %v2779_v11 = vpack.c.bf16 %v2764_v5, %v2760_v63 }
 0xf98   : > { %2874 = vmatprep.subr.bf16.mxu1 %v2779_v11 }
 0xf99   : > { %2875 = vmatpush1.bf16.msra.mxu1 %v2778_v19 }
 0xff0   : > { %v2788_v38 = vpop.trf.xlu0 }
 0xff1   : > { %3856 = vmatmul.mubr.msk.bf16.vlgmr.msra.gmra.mxu1 %vm1714_vm12, %v2788_v38 }
 0xff2   : > { %2902 = vmatprep.mubr.bf16.mxu1 %v4291_v18  ;;  %v2804_v44 = vpop.trf.xlu1 }
 0xff4   : > { %v2789_v14 = vpop.trf.xlu0 }
 0xff6   : > { %v2805_v1 = vpop.trf.xlu1 }
 0xff8   : > { %v2790_v6 = vpop.trf.xlu0 }
 0xff9   : > { %3857 = vmatmul.mubr.msk.bf16.gmra.mxu1 %vm1714_vm12, %v2789_v14 }
 0xffa   : > { %2912 = vmatprep.mubr.bf16.mxu1 %v4291_v18  ;;  %v2806_v57 = vpop.trf.xlu1 }
 0xffc   : > { %v2791_v9 = vpop.trf.xlu0 }
 0xffe   : > { %v2807_v60 = vpop.trf.xlu1 }
0x1000   : > { %v2792_v12 = vpop.trf.xlu0 }
0x1001   : > { %3858 = vmatmul.mubr.msk.bf16.gmra.mxu1 %vm1714_vm12, %v2790_v6 }
0x1002   : > { %2922 = vmatprep.mubr.bf16.mxu1 %v4291_v18  ;;  %v2808_v45 = vpop.trf.xlu1 }
0x1004   : > { %v2793_v0 = vpop.trf.xlu0 }
0x1006   : > { %v2809_v30 = vpop.trf.xlu1 }
0x1008   : > { %v2794_v58 = vpop.trf.xlu0 }
0x1009   : > { %3859 = vmatmul.mubr.msk.bf16.gmra.mxu1 %vm1714_vm12, %v2791_v9 }
0x100a   : > { %2932 = vmatprep.mubr.bf16.mxu1 %v4291_v18  ;;  %v2810_v52 = vpop.trf.xlu1 }
0x100c   : > { %v2795_v33 = vpop.trf.xlu0 }
0x100e   : > { %v2811_v53 = vpop.trf.xlu1 }
0x1011   : > { %3860 = vmatmul.mubr.msk.bf16.gmra.mxu1 %vm1714_vm12, %v2792_v12 }
0x1012   : > { %2942 = vmatprep.mubr.bf16.mxu1 %v4291_v18 }
0x1019   : > { %3861 = vmatmul.mubr.msk.bf16.gmra.mxu1 %vm1714_vm12, %v2793_v0 }
0x101a   : > { %2952 = vmatprep.mubr.bf16.mxu1 %v4291_v18 }
0x1021   : > { %3862 = vmatmul.mubr.msk.bf16.gmra.mxu1 %vm1714_vm12, %v2794_v58 }
0x1022   : > { %2962 = vmatprep.mubr.bf16.mxu1 %v4291_v18 }
0x1029   : > { %3863 = vmatmul.mubr.msk.bf16.gmra.mxu1 %vm1714_vm12, %v2795_v33 }
0x102a   : > { %2972 = vmatprep.mubr.bf16.mxu1 %v4291_v18 }
0x1031   : > { %3864 = vmatmul.mubr.msk.bf16.gmra.mxu1 %vm1714_vm12, %v2804_v44 }
0x1032   : > { %2982 = vmatprep.mubr.bf16.mxu1 %v4291_v18 }
0x1039   : > { %3865 = vmatmul.mubr.msk.bf16.gmra.mxu1 %vm1714_vm12, %v2805_v1 }
0x103a   : > { %2992 = vmatprep.mubr.bf16.mxu1 %v4291_v18 }
0x1041   : > { %3866 = vmatmul.mubr.msk.bf16.gmra.mxu1 %vm1714_vm12, %v2806_v57 }
0x1042   : > { %3002 = vmatprep.mubr.bf16.mxu1 %v4291_v18 }
0x1049   : > { %3867 = vmatmul.mubr.msk.bf16.gmra.mxu1 %vm1714_vm12, %v2807_v60 }
0x104a   : > { %3012 = vmatprep.mubr.bf16.mxu1 %v4291_v18 }
0x1051   : > { %3868 = vmatmul.mubr.msk.bf16.gmra.mxu1 %vm1714_vm12, %v2808_v45 }
0x1052   : > { %3022 = vmatprep.mubr.bf16.mxu1 %v4291_v18 }
0x1059   : > { %3869 = vmatmul.mubr.msk.bf16.gmra.mxu1 %vm1714_vm12, %v2809_v30 }
0x105a   : > { %3032 = vmatprep.mubr.bf16.mxu1 %v4291_v18 }
0x1061   : > { %3870 = vmatmul.mubr.msk.bf16.gmra.mxu1 %vm1714_vm12, %v2810_v52 }
0x1062   : > { %3042 = vmatprep.mubr.bf16.mxu1 %v4291_v18 }
0x1069   : > { %3871 = vmatmul.mubr.msk.bf16.gmra.mxu1 %vm1714_vm12, %v2811_v53 }
0x106a   : > { %3666 = vmatprep.mubr.bf16.mxu1 %v4291_v18 }
0x10b1   : > { %v5258_v23 = vpop.f32.mrf.mxu1 }
0x10b3   : > { %v5260_v28 = vpop.f32.mrf.mxu1 }
0x10b4   : > { %v3053_v30 = vmax.f32 %v5258_v23, %v5260_v28 }
0x10b5   : > { %v5262_v20 = vpop.f32.mrf.mxu1 }
0x10b7   : > { %v5264_v61 = vpop.f32.mrf.mxu1 }
0x10b8   : > { %5913 = vst [vmem:[#allocation8_spill] sm:$0xff] %v5264_v61 }
0x10b9   : > { %v5266_v34 = vpop.f32.mrf.mxu1 }
0x10bb   : > { %v5268_v54 = vpop.f32.mrf.mxu1 }
0x10bc   : > { %v3059_v1 = vmax.f32 %v5266_v34, %v5268_v54 }
0x10bd   : > { %v5270_v55 = vpop.f32.mrf.mxu1 }
0x10bf   : > { %v5272_v25 = vpop.f32.mrf.mxu1 }
0x10c0   : > { %v3062_v52 = vmax.f32 %v5270_v55, %v5272_v25 }
0x10c1   : > { %v5274_v51 = vpop.f32.mrf.mxu1 }
0x10c3   : > { %v5276_v15 = vpop.f32.mrf.mxu1 }
0x10c4   : > { %v3065_v0 = vmax.f32 %v5274_v51, %v5276_v15 }
0x10c5   : > { %v5278_v18 = vpop.f32.mrf.mxu1 }
0x10c7   : > { %v5280_v27 = vpop.f32.mrf.mxu1 }
0x10c8   : > { %v3068_v57 = vmax.f32 %v5278_v18, %v5280_v27 }
0x10c9   : > { %v5282_v37 = vpop.f32.mrf.mxu1 }
0x10cb   : > { %v5284_v32 = vpop.f32.mrf.mxu1 }
0x10cc   : > { %v3071_v14 = vmax.f32 %v5282_v37, %v5284_v32 }
0x10cd   : > { %v5286_v50 = vpop.f32.mrf.mxu1 }
0x10cf   : > { %v5288_v39 = vpop.f32.mrf.mxu1 }
0x10d0   : > { %v3074_v58 = vmax.f32 %v5286_v50, %v5288_v39 }
0x10d1   : > { %v5290_v43 = vpop.f32.mrf.mxu1 }
0x10d3   : > { %v5292_v24 = vpop.f32.mrf.mxu1 }
0x10d4   : > { %v3077_v3 = vmax.f32 %v5290_v43, %v5292_v24 }
0x10d5   : > { %v5294_v31 = vpop.f32.mrf.mxu1 }
0x10d7   : > { %v5296_v17 = vpop.f32.mrf.mxu1 }
0x10d8   : > { %v3080_v6 = vmax.f32 %v5294_v31, %v5296_v17 }
0x10d9   : > { %v5298_v7 = vpop.f32.mrf.mxu1 }
0x10db   : > { %v5300_v36 = vpop.f32.mrf.mxu1 }
0x10dc   : > { %v3083_v4 = vmax.f32 %v5298_v7, %v5300_v36 }
0x10dd   : > { %v5302_v22 = vpop.f32.mrf.mxu1 }
0x10df   : > { %v5304_v26 = vpop.f32.mrf.mxu1 }
0x10e0   : > { %v3086_v11 = vmax.f32 %v5302_v22, %v5304_v26 }
0x10e1   : > { %v5306_v29 = vpop.f32.mrf.mxu1 }
0x10e3   : > { %v5308_v40 = vpop.f32.mrf.mxu1 }
0x10e4   : > { %v3089_v8 = vmax.f32 %v5306_v29, %v5308_v40 }
0x10e5   : > { %v5310_v10 = vpop.f32.mrf.mxu1 }
0x10e7   : > { %v5312_v21 = vpop.f32.mrf.mxu1 }
0x10e8   : > { %v3092_v16 = vmax.f32 %v5310_v10, %v5312_v21 }
0x10e9   : > { %v5314_v56 = vpop.f32.mrf.mxu1 }
0x10eb   : > { %v5316_v47 = vpop.f32.mrf.mxu1 }
0x10ec   : > { %v3095_v48 = vmax.f32 %v5314_v56, %v5316_v47 }
0x10ed   : > { %v5320_v62 = vpop.f32.mrf.mxu1 }
0x10ee   : > { %3096 = vmax.xlane.f32.xlu0 %v3095_v48 }
0x10ef   : > { %v5322_v35 = vpop.f32.mrf.mxu1 }
0x10f0   : > { %v3098_v41 = vmax.f32 %v5320_v62, %v5322_v35 }
0x10f1   : > { %v5328_v42 = vpop.f32.mrf.mxu1 }
0x10f2   : > { %5914 = vst [vmem:[#allocation9_spill] sm:$0xff] %v5328_v42  ;;  %3090 = vmax.xlane.f32.xlu0 %v3089_v8  ;;  %3099 = vmax.xlane.f32.xlu1 %v3098_v41  ;;  %v3056_v8 = vmax.f32 %v5262_v20, %v5264_v61 }
0x10f3   : > { %v5330_v59 = vpop.f32.mrf.mxu1 }
0x10f4   : > { %5915 = vst [vmem:[#allocation10_spill] sm:$0xff] %v5330_v59 }
0x10f5   : > { %v5336_v63 = vpop.f32.mrf.mxu1 }
0x10f6   : > { %5916 = vst [vmem:[#allocation11_spill] sm:$0xff] %v5336_v63  ;;  %3093 = vmax.xlane.f32.xlu0 %v3092_v16  ;;  %3084 = vmax.xlane.f32.xlu1 %v3083_v4 }
0x10f7   : > { %v5338_v5 = vpop.f32.mrf.mxu1 }
0x10f8   : > { %5917 = vst [vmem:[#allocation12_spill] sm:$0xff] %v5338_v5 }
0x10f9   : > { %v5344_v19 = vpop.f32.mrf.mxu1 }
0x10fa   : > { %3087 = vmax.xlane.f32.xlu0 %v3086_v11  ;;  %3078 = vmax.xlane.f32.xlu1 %v3077_v3 }
0x10fb   : > { %v5346_v38 = vpop.f32.mrf.mxu1 }
0x10fd   : > { %v5352_v9 = vpop.f32.mrf.mxu1 }
0x10fe   : > { %3081 = vmax.xlane.f32.xlu0 %v3080_v6  ;;  %3072 = vmax.xlane.f32.xlu1 %v3071_v14 }
0x10ff   : > { %v5354_v12 = vpop.f32.mrf.mxu1 }
0x1101   : > { %v5360_v33 = vpop.f32.mrf.mxu1 }
0x1102   : > { %3075 = vmax.xlane.f32.xlu0 %v3074_v58  ;;  %3066 = vmax.xlane.f32.xlu1 %v3065_v0 }
0x1103   : > { %v5362_v44 = vpop.f32.mrf.mxu1 }
0x1105   : > { %v5368_v60 = vpop.f32.mrf.mxu1 }
0x1106   : > { %3069 = vmax.xlane.f32.xlu0 %v3068_v57  ;;  %3060 = vmax.xlane.f32.xlu1 %v3059_v1 }
0x1107   : > { %v5370_v45 = vpop.f32.mrf.mxu1 }
0x1109   : > { %v5376_v53 = vpop.f32.mrf.mxu1 }
0x110a   : > { %3063 = vmax.xlane.f32.xlu0 %v3062_v52  ;;  %3054 = vmax.xlane.f32.xlu1 %v3053_v30 }
0x110b   : > { %v5378_v48 = vpop.f32.mrf.mxu1 }
0x110d   : > { %v5382_v41 = vpop.f32.mrf.mxu1 }
0x110e   : > { %3057 = vmax.xlane.f32.xlu0 %v3056_v8 }
0x110f   : > { %v5384_v4 = vpop.f32.mrf.mxu1 }
0x1111   : > { %v5386_v16 = vpop.f32.mrf.mxu1 }
0x1112   : > { %5918 = vst [vmem:[#allocation13_spill] sm:$0xff] %v5386_v16 }
0x1113   : > { %v5388_v3 = vpop.f32.mrf.mxu1 }
0x1114   : > { %5919 = vst [vmem:[#allocation14_spill] sm:$0xff] %v5388_v3 }
0x1115   : > { %v5390_v11 = vpop.f32.mrf.mxu1 }
0x1116   : > { %5920 = vst [vmem:[#allocation15_spill] sm:$0xff] %v5390_v11 }
0x1117   : > { %v5392_v14 = vpop.f32.mrf.mxu1 }
0x1118   : > { %5921 = vst [vmem:[#allocation16_spill] sm:$0xff] %v5392_v14 }
0x1119   : > { %v5394_v6 = vpop.f32.mrf.mxu1 }
0x111b   : > { %v5396_v0 = vpop.f32.mrf.mxu1 }
0x111c   : > { %v3131_v59 = vmax.f32 %v5394_v6, %v5396_v0 }
0x111d   : > { %v5398_v58 = vpop.f32.mrf.mxu1 }
0x111e   : > { %5922 = vst [vmem:[#allocation17_spill] sm:$0xff] %v5398_v58 }
0x111f   : > { %v5400_v1 = vpop.f32.mrf.mxu1 }
0x1120   : > { %5923 = vst [vmem:[#allocation18_spill] sm:$0xff] %v5400_v1 }
0x1121   : > { %v5402_v57 = vpop.f32.mrf.mxu1 }
0x1123   : > { %v5404_v30 = vpop.f32.mrf.mxu1 }
0x1124   : > { %5924 = vst [vmem:[#allocation19_spill] sm:$0xff] %v5404_v30  ;;  %v3137_v63 = vmax.f32 %v5402_v57, %v5404_v30  ;;  %v3134_v30 = vmax.f32 %v5398_v58, %v5400_v1 }
0x1125   : > { %v5406_v52 = vpop.f32.mrf.mxu1 }
0x1126   : > { %5925 = vst [vmem:[#allocation20_spill] sm:$0xff] %v5406_v52 }
0x1127   : > { %v5408_v8 = vpop.f32.mrf.mxu1 }
0x1128   : > { %5926 = vst [vmem:[#allocation21_spill] sm:$0xff] %v5408_v8  ;;  %v3140_v61 = vmax.f32 %v5406_v52, %v5408_v8  ;;  %v4030_v8 = vld [vmem:[%s5821_s20 + $0x10] sm:$0xff]  }
0x1129   : > { %v5410_v49 = vpop.f32.mrf.mxu1  ;;  %3855 = vmatmul.mubr.msk.bf16.gmra.mxu0 %vm1714_vm12, %v4030_v8 }
0x112b   : > { %v5412_v46 = vpop.f32.mrf.mxu1 }
0x112c   : > { %5927 = vst [vmem:[#allocation22_spill] sm:$0xff] %v5412_v46  ;;  %v3143_v2 = vmax.f32 %v5410_v49, %v5412_v46  ;;  %v3125_v46 = vmax.f32 %v5386_v16, %v5388_v3 }
0x112d   : > { %v5416_v13 = vpop.f32.mrf.mxu1 }
0x112e   : > { %3144 = vmax.xlane.f32.xlu1 %v3143_v2  ;;  %v3128_v2 = vmax.f32 %v5390_v11, %v5392_v14 }
0x112f   : > { %v5420_v5 = vpop.f32.mrf.mxu1 }
0x1130   : > { %v3146_v42 = vmax.f32 %v5416_v13, %v5420_v5 }
0x1132   : > { %3138 = vmax.xlane.f32.xlu1 %v3137_v63  ;;  %3147 = vmax.xlane.f32.xlu0 %v3146_v42 }
0x1136   : > { %3132 = vmax.xlane.f32.xlu1 %v3131_v59  ;;  %3141 = vmax.xlane.f32.xlu0 %v3140_v61 }
0x113a   : > { %3126 = vmax.xlane.f32.xlu1 %v3125_v46  ;;  %3135 = vmax.xlane.f32.xlu0 %v3134_v30 }
0x113e   : > { %3129 = vmax.xlane.f32.xlu0 %v3128_v2 }
0x1177   : > { %v3097_v42 = vpop.xlane.xlu0 %3096 }
0x1178   : > { %v3177_v63 = vsub.f32 %v5314_v56, %v3097_v42  ;;  %v3178_v3 = vsub.f32 %v5316_v47, %v3097_v42 }
0x117a   : > { %v3269_v1 = vmul.f32 1.442695, %v3177_v63  ;;  %v3271_v59 = vmul.f32 1.442695, %v3178_v3 }
0x117b   : > { %v3091_v61 = vpop.xlane.xlu0 %3090  ;;  %v3100_v58 = vpop.xlane.xlu1 %3099 }
0x117c   : > { %4086 = vpow2.f32 %v3269_v1  ;;  %v3173_v46 = vsub.f32 %v5306_v29, %v3091_v61  ;;  %v3174_v30 = vsub.f32 %v5308_v40, %v3091_v61  ;;  %v3179_v2 = vsub.f32 %v5320_v62, %v3100_v58 }
0x117d   : > { %4088 = vpow2.f32 %v3271_v59  ;;  %v3180_v14 = vsub.f32 %v5322_v35, %v3100_v58 }
0x117e   : > { %v3261_v8 = vmul.f32 1.442695, %v3173_v46  ;;  %v3263_v11 = vmul.f32 1.442695, %v3174_v30  ;;  %v3273_v16 = vmul.f32 1.442695, %v3179_v2 }
0x117f   : > { %v3275_v56 = vmul.f32 1.442695, %v3180_v14  ;;  %v3094_v52 = vpop.xlane.xlu0 %3093  ;;  %v3085_v47 = vpop.xlane.xlu1 %3084 }
0x1180   : > { %4090 = vpow2.f32 %v3261_v8  ;;  %v3175_v3 = vsub.f32 %v5310_v10, %v3094_v52  ;;  %v3176_v1 = vsub.f32 %v5312_v21, %v3094_v52  ;;  %v3169_v29 = vsub.f32 %v5298_v7, %v3085_v47 }
0x1181   : > { %4092 = vpow2.f32 %v3263_v11  ;;  %v3170_v40 = vsub.f32 %v5300_v36, %v3085_v47 }
0x1182   : > { %4094 = vpow2.f32 %v3273_v16  ;;  %v3265_v58 = vmul.f32 1.442695, %v3175_v3  ;;  %v3267_v42 = vmul.f32 1.442695, %v3176_v1  ;;  %v3253_v63 = vmul.f32 1.442695, %v3169_v29 }
0x1183   : > { %4096 = vpow2.f32 %v3275_v56  ;;  %v3088_v62 = vpop.xlane.xlu0 %3087  ;;  %v3079_v35 = vpop.xlane.xlu1 %3078  ;;  %v3255_v14 = vmul.f32 1.442695, %v3170_v40  ;;  %v3119_v56 = vmax.f32 %v5376_v53, %v5378_v48 }
0x1184   : > { %4098 = vpow2.f32 %v3265_v58  ;;  %v3171_v59 = vsub.f32 %v5302_v22, %v3088_v62  ;;  %v3172_v10 = vsub.f32 %v5304_v26, %v3088_v62  ;;  %v3165_v36 = vsub.f32 %v5290_v43, %v3079_v35 }
0x1185   : > { %4100 = vpow2.f32 %v3267_v42  ;;  %v3166_v11 = vsub.f32 %v5292_v24, %v3079_v35 }
0x1186   : > { %4102 = vpow2.f32 %v3253_v63  ;;  %v3257_v46 = vmul.f32 1.442695, %v3171_v59  ;;  %v3259_v30 = vmul.f32 1.442695, %v3172_v10  ;;  %v3245_v26 = vmul.f32 1.442695, %v3165_v36 }
0x1187   : > { %v3082_v21 = vpop.xlane.xlu0 %3081  ;;  %v3073_v16 = vpop.xlane.xlu1 %3072  ;;  %4104 = vpow2.f32 %v3255_v14  ;;  %v3247_v43 = vmul.f32 1.442695, %v3166_v11 }
0x1188   : > { %4106 = vpow2.f32 %v3257_v46  ;;  %v3167_v1 = vsub.f32 %v5294_v31, %v3082_v21  ;;  %v3168_v29 = vsub.f32 %v5296_v17, %v3082_v21  ;;  %v3161_v62 = vsub.f32 %v5282_v37, %v3073_v16 }
0x1189   : > { %v5449_v61 = vpop.eup %4086  ;;  %4108 = vpow2.f32 %v3259_v30  ;;  %v3162_v35 = vsub.f32 %v5284_v32, %v3073_v16  ;;  %v3122_v31 = vmax.f32 %v5382_v41, %v5384_v4  ;;  %v3113_v16 = vmax.f32 %v5360_v33, %v5362_v44 }
0x118a   : > { %v5452_v7 = vpop.eup %4088  ;;  %4110 = vpow2.f32 %v3245_v26  ;;  %v3249_v42 = vmul.f32 1.442695, %v3167_v1  ;;  %v3251_v17 = vmul.f32 1.442695, %v3168_v29  ;;  %v3237_v37 = vmul.f32 1.442695, %v3161_v62 }
0x118b   : > { %v3383_v52 = vadd.f32 %v5452_v7, %v5449_v61  ;;  %v3076_v47 = vpop.xlane.xlu0 %3075  ;;  %v3067_v3 = vpop.xlane.xlu1 %3066  ;;  %4112 = vpow2.f32 %v3247_v43  ;;  %v3239_v36 = vmul.f32 1.442695, %v3162_v35 }
0x118c   : > { %v3157_v21 = vsub.f32 %v5274_v51, %v3067_v3  ;;  %v3158_v11 = vsub.f32 %v5276_v15, %v3067_v3  ;;  %4114 = vpow2.f32 %v3249_v42  ;;  %v3163_v46 = vsub.f32 %v5286_v50, %v3076_v47 }
0x118d   : > { %v5458_v22 = vpop.eup %4090  ;;  %3384 = vadd.xlane.f32.xlu1 %v3383_v52  ;;  %4116 = vpow2.f32 %v3251_v17  ;;  %v3164_v30 = vsub.f32 %v5288_v39, %v3076_v47 }
0x118e   : > { %v5460_v2 = vpop.eup %4092  ;;  %4118 = vpow2.f32 %v3237_v37  ;;  %v3229_v26 = vmul.f32 1.442695, %v3157_v21  ;;  %v3231_v43 = vmul.f32 1.442695, %v3158_v11  ;;  %v3241_v29 = vmul.f32 1.442695, %v3163_v46 }
0x118f   : > { %v5462_v8 = vpop.eup %4094  ;;  %v3377_v58 = vadd.f32 %v5460_v2, %v5458_v22  ;;  %v3070_v14 = vpop.xlane.xlu0 %3069  ;;  %4120 = vpow2.f32 %v3239_v36  ;;  %v3243_v62 = vmul.f32 1.442695, %v3164_v30 }
0x1190   : > { %v5466_v24 = vpop.eup %4096  ;;  %v3061_v59 = vpop.xlane.xlu1 %3060  ;;  %v3159_v39 = vsub.f32 %v5278_v18, %v3070_v14  ;;  %4122 = vpow2.f32 %v3229_v26  ;;  %v3107_v18 = vmax.f32 %v5344_v19, %v5346_v38  ;;  %v5928_v26 = vld [vmem:[#allocation8_spill] sm:$0xff] }
0x1191   : > { %3120 = vmax.xlane.f32.xlu1 %v3119_v56  ;;  %v3386_v40 = vadd.f32 %v5466_v24, %v5462_v8  ;;  %v5476_v63 = vpop.eup %4098  ;;  %v3153_v56 = vsub.f32 %v5266_v34, %v3061_v59  ;;  %v3154_v15 = vsub.f32 %v5268_v54, %v3061_v59  ;;  %v3160_v34 = vsub.f32 %v5280_v27, %v3070_v14 }
0x1192   : > { %v5480_v10 = vpop.eup %4100  ;;  %4124 = vpow2.f32 %v3231_v43  ;;  %v3233_v27 = vmul.f32 1.442695, %v3159_v39 }
0x1193   : > { %3387 = vadd.xlane.f32.xlu0 %v3386_v40  ;;  %v5483_v32 = vpop.eup %4102  ;;  %v3380_v51 = vadd.f32 %v5480_v10, %v5476_v63  ;;  %v3064_v3 = vpop.xlane.xlu0 %3063  ;;  %v3116_v40 = vmax.f32 %v5368_v60, %v5370_v45  ;;  %v3221_v54 = vmul.f32 1.442695, %v3153_v56  ;;  %4126 = vpow2.f32 %v3241_v29 }
0x1194   : > { %v5488_v52 = vpop.eup %4104  ;;  %v3055_v1 = vpop.xlane.xlu1 %3054  ;;  %v3155_v14 = vsub.f32 %v5270_v55, %v3064_v3  ;;  %4128 = vpow2.f32 %v3243_v62  ;;  %v3235_v37 = vmul.f32 1.442695, %v3160_v34 }
0x1195   : > { %3378 = vadd.xlane.f32.xlu1 %v3377_v58  ;;  %v3371_v50 = vadd.f32 %v5488_v52, %v5483_v32  ;;  %v5499_v47 = vpop.eup %4106  ;;  %v3149_v58 = vsub.f32 %v5258_v23, %v3055_v1  ;;  %v3150_v17 = vsub.f32 %v5260_v28, %v3055_v1  ;;  %v3156_v23 = vsub.f32 %v5272_v25, %v3064_v3  ;;  %v5929_v3 = vld [vmem:[#allocation10_spill] sm:$0xff]  ;;  %v5930_v1 = vld [vmem:[#allocation9_spill] sm:$0xff] }
0x1196   : > { %v5504_v35 = vpop.eup %4108  ;;  %4130 = vpow2.f32 %v3221_v54  ;;  %v3225_v46 = vmul.f32 1.442695, %v3155_v14  ;;  %v3110_v25 = vmax.f32 %v5352_v9, %v5354_v12 }
0x1197   : > { %3123 = vmax.xlane.f32.xlu0 %v3122_v31  ;;  %v5507_v42 = vpop.eup %4110  ;;  %v3223_v31 = vmul.f32 1.442695, %v3154_v15  ;;  %v3058_v21 = vpop.xlane.xlu0 %3057  ;;  %v3213_v36 = vmul.f32 1.442695, %v3149_v58  ;;  %v3215_v28 = vmul.f32 1.442695, %v3150_v17 }
0x1198   : > { %v5512_v59 = vpop.eup %4112  ;;  %v3151_v55 = vsub.f32 %v5262_v20, %v3058_v21  ;;  %v3152_v56 = vsub.f32 %v5928_v26, %v3058_v21 }
0x1199   : > { %3114 = vmax.xlane.f32.xlu1 %v3113_v16  ;;  %v3374_v16 = vadd.f32 %v5504_v35, %v5499_v47  ;;  %4132 = vpow2.f32 %v3223_v31  ;;  %v3365_v11 = vadd.f32 %v5512_v59, %v5507_v42  ;;  %v5521_v30 = vpop.eup %4114  ;;  %v5932_v31 = vld [vmem:[#allocation11_spill] sm:$0xff] }
0x119a   : > { %4134 = vpow2.f32 %v3233_v27  ;;  %v5526_v43 = vpop.eup %4116  ;;  %v3217_v29 = vmul.f32 1.442695, %v3151_v55  ;;  %v3219_v39 = vmul.f32 1.442695, %v3152_v56 }
0x119b   : > { %3381 = vadd.xlane.f32.xlu0 %v3380_v51  ;;  %4136 = vpow2.f32 %v3235_v37  ;;  %v3227_v51 = vmul.f32 1.442695, %v3156_v23  ;;  %v5528_v15 = vpop.eup %4118 }
0x119c   : > { %4138 = vpow2.f32 %v3213_v36  ;;  %v5532_v20 = vpop.eup %4120 }
0x119d   : > { %3372 = vadd.xlane.f32.xlu1 %v3371_v50  ;;  %v3101_v50 = vmax.f32 %v5930_v1, %v5929_v3  ;;  %4140 = vpow2.f32 %v3215_v28  ;;  %v5536_v62 = vpop.eup %4122  ;;  %v3359_v34 = vadd.f32 %v5532_v20, %v5528_v15 }
0x119e   : > { %4142 = vpow2.f32 %v3225_v46 }
0x119f   : > { %3117 = vmax.xlane.f32.xlu0 %v3116_v40  ;;  %4144 = vpow2.f32 %v3227_v51  ;;  %v3368_v40 = vadd.f32 %v5526_v43, %v5521_v30  ;;  %v5540_v54 = vpop.eup %4124 }
0x11a0   : > { %4146 = vpow2.f32 %v3217_v29  ;;  %v5542_v58 = vpop.eup %4126  ;;  %v3353_v37 = vadd.f32 %v5540_v54, %v5536_v62  ;;  %v5938_v29 = vld [vmem:[#allocation22_spill] sm:$0xff] }
0x11a1   : > { %3108 = vmax.xlane.f32.xlu1 %v3107_v18  ;;  %v5931_v18 = vld [vmem:[#allocation12_spill] sm:$0xff]  ;;  %4148 = vpow2.f32 %v3219_v39  ;;  %v5546_v27 = vpop.eup %4128 }
0x11a2   : > { %v3104_v17 = vmax.f32 %v5932_v31, %v5931_v18 }
0x11a3   : > { %3375 = vadd.xlane.f32.xlu0 %v3374_v16  ;;  %v5548_v14 = vpop.eup %4130  ;;  %v3362_v16 = vadd.f32 %v5546_v27, %v5542_v58 }
0x11a4   : > { %5933 = vst [vmem:[#allocation8_spill] sm:$0xff] %v5548_v14 }
0x11a5   : > { %3366 = vadd.xlane.f32.xlu1 %v3365_v11 }
0x11a6   : > { %v5552_v23 = vpop.eup %4132 }
0x11a7   : > { %3111 = vmax.xlane.f32.xlu0 %v3110_v25  ;;  %5934 = vst [vmem:[#allocation10_spill] sm:$0xff] %v5552_v23  ;;  %v5554_v21 = vpop.eup %4134  ;;  %v3347_v11 = vadd.f32 %v5552_v23, %v5548_v14 }
0x11a8   : > { %v5558_v36 = vpop.eup %4136 }
0x11a9   : > { %3102 = vmax.xlane.f32.xlu1 %v3101_v50  ;;  %v5560_v28 = vpop.eup %4138  ;;  %v3356_v25 = vadd.f32 %v5558_v36, %v5554_v21 }
0x11aa   : > { %5935 = vst [vmem:[#allocation9_spill] sm:$0xff] %v5560_v28  ;;  %v5564_v46 = vpop.eup %4140 }
0x11ab   : > { %3369 = vadd.xlane.f32.xlu0 %v3368_v40  ;;  %5936 = vst [vmem:[#allocation12_spill] sm:$0xff] %v5564_v46  ;;  %v5566_v55 = vpop.eup %4142  ;;  %v3341_v56 = vadd.f32 %v5564_v46, %v5560_v28  ;;  %v5941_v46 = vld [vmem:[#allocation19_spill] sm:$0xff] }
0x11ac   : > { %5937 = vst [vmem:[#allocation11_spill] sm:$0xff] %v5566_v55  ;;  %v5570_v51 = vpop.eup %4144 }
0x11ad   : > { %3360 = vadd.xlane.f32.xlu1 %v3359_v34  ;;  %v5576_v40 = vpop.eup %4146  ;;  %v3350_v34 = vadd.f32 %v5570_v51, %v5566_v55 }
0x11ae   : > { %5939 = vst [vmem:[#allocation22_spill] sm:$0xff] %v5576_v40 }
0x11af   : > { %3105 = vmax.xlane.f32.xlu0 %v3104_v17  ;;  %v5580_v17 = vpop.eup %4148 }
0x11b0   : > { %5940 = vst [vmem:[#allocation23_spill] sm:$0xff] %v5580_v17 }
0x11b1   : > { %3354 = vadd.xlane.f32.xlu1 %v3353_v37 }
0x11b3   : > { %3363 = vadd.xlane.f32.xlu0 %v3362_v16 }
0x11b5   : > { %3348 = vadd.xlane.f32.xlu1 %v3347_v11 }
0x11b7   : > { %3357 = vadd.xlane.f32.xlu0 %v3356_v25  ;;  %v3145_v26 = vpop.xlane.xlu1 %3144 }
0x11b8   : > { %v3209_v50 = vsub.f32 %v5410_v49, %v3145_v26  ;;  %v3210_v39 = vsub.f32 %v5938_v29, %v3145_v26  ;;  %v3344_v29 = vadd.f32 %v5580_v17, %v5576_v40  ;;  %v5945_v40 = vld [vmem:[#allocation14_spill] sm:$0xff]  ;;  %v5946_v17 = vld [vmem:[#allocation17_spill] sm:$0xff] }
0x11b9   : > { %3342 = vadd.xlane.f32.xlu1 %v3341_v56 }
0x11ba   : > { %v3333_v37 = vmul.f32 1.442695, %v3209_v50  ;;  %v3335_v16 = vmul.f32 1.442695, %v3210_v39 }
0x11bb   : > { %3351 = vadd.xlane.f32.xlu0 %v3350_v34  ;;  %v3139_v11 = vpop.xlane.xlu1 %3138  ;;  %v3148_v25 = vpop.xlane.xlu0 %3147 }
0x11bc   : > { %4150 = vpow2.f32 %v3333_v37  ;;  %v3205_v28 = vsub.f32 %v5402_v57, %v3139_v11  ;;  %v3206_v49 = vsub.f32 %v5941_v46, %v3139_v11  ;;  %v3211_v26 = vsub.f32 %v5416_v13, %v3148_v25  ;;  %v5942_v37 = vld [vmem:[#allocation20_spill] sm:$0xff] }
0x11bd   : > { %4152 = vpow2.f32 %v3335_v16  ;;  %v3212_v56 = vsub.f32 %v5420_v5, %v3148_v25  ;;  %v5943_v16 = vld [vmem:[#allocation21_spill] sm:$0xff] }
0x11be   : > { %v3325_v14 = vmul.f32 1.442695, %v3205_v28  ;;  %v3327_v55 = vmul.f32 1.442695, %v3206_v49  ;;  %v3337_v50 = vmul.f32 1.442695, %v3211_v26 }
0x11bf   : > { %v3339_v39 = vmul.f32 1.442695, %v3212_v56  ;;  %3345 = vadd.xlane.f32.xlu0 %v3344_v29  ;;  %v3133_v34 = vpop.xlane.xlu1 %3132  ;;  %v3142_v23 = vpop.xlane.xlu0 %3141  ;;  %v5944_v29 = vld [vmem:[#allocation13_spill] sm:$0xff] }
0x11c0   : > { %4154 = vpow2.f32 %v3325_v14  ;;  %v3201_v57 = vsub.f32 %v5394_v6, %v3133_v34  ;;  %v3202_v46 = vsub.f32 %v5396_v0, %v3133_v34  ;;  %v3207_v13 = vsub.f32 %v5942_v37, %v3142_v23  ;;  %v5947_v34 = vld [vmem:[#allocation18_spill] sm:$0xff]  ;;  %v5948_v37 = vld [vmem:[#allocation15_spill] sm:$0xff] }
0x11c1   : > { %4156 = vpow2.f32 %v3327_v55  ;;  %v3208_v5 = vsub.f32 %v5943_v16, %v3142_v23  ;;  %v5949_v16 = vld [vmem:[#allocation16_spill] sm:$0xff] }
0x11c2   : > { %4158 = vpow2.f32 %v3337_v50  ;;  %v3317_v11 = vmul.f32 1.442695, %v3201_v57  ;;  %v3319_v25 = vmul.f32 1.442695, %v3202_v46  ;;  %v3329_v28 = vmul.f32 1.442695, %v3207_v13 }
0x11c3   : > { %4160 = vpow2.f32 %v3339_v39  ;;  %v3331_v49 = vmul.f32 1.442695, %v3208_v5  ;;  %v3127_v26 = vpop.xlane.xlu1 %3126  ;;  %v3136_v56 = vpop.xlane.xlu0 %3135 }
0x11c4   : > { %4162 = vpow2.f32 %v3317_v11  ;;  %v3197_v14 = vsub.f32 %v5944_v29, %v3127_v26  ;;  %v3198_v6 = vsub.f32 %v5945_v40, %v3127_v26  ;;  %v3203_v0 = vsub.f32 %v5946_v17, %v3136_v56 }
0x11c5   : > { %4164 = vpow2.f32 %v3319_v25  ;;  %v3204_v55 = vsub.f32 %v5947_v34, %v3136_v56 }
0x11c6   : > { %4166 = vpow2.f32 %v3329_v28  ;;  %v3309_v23 = vmul.f32 1.442695, %v3197_v14  ;;  %v3311_v50 = vmul.f32 1.442695, %v3198_v6  ;;  %v3321_v57 = vmul.f32 1.442695, %v3203_v0 }
0x11c7   : > { %4168 = vpow2.f32 %v3331_v49  ;;  %v3323_v46 = vmul.f32 1.442695, %v3204_v55  ;;  %v3130_v39 = vpop.xlane.xlu0 %3129 }
0x11c8   : > { %4170 = vpow2.f32 %v3309_v23  ;;  %v3199_v13 = vsub.f32 %v5948_v37, %v3130_v39  ;;  %v3200_v5 = vsub.f32 %v5949_v16, %v3130_v39 }
0x11c9   : > { %v5598_v11 = vpop.eup %4150  ;;  %4172 = vpow2.f32 %v3311_v50 }
0x11ca   : > { %v5600_v40 = vpop.eup %4152  ;;  %4174 = vpow2.f32 %v3321_v57  ;;  %v3313_v17 = vmul.f32 1.442695, %v3199_v13  ;;  %v3315_v25 = vmul.f32 1.442695, %v3200_v5 }
0x11cb   : > { %4176 = vpow2.f32 %v3323_v46  ;;  %v3431_v28 = vadd.f32 %v5600_v40, %v5598_v11 }
0x11cc   : > { %4178 = vpow2.f32 %v3313_v17 }
0x11cd   : > { %v5604_v49 = vpop.eup %4154  ;;  %4180 = vpow2.f32 %v3315_v25  ;;  %3432 = vadd.xlane.f32.xlu1 %v3431_v28 }
0x11ce   : > { %v5606_v26 = vpop.eup %4156 }
0x11cf   : > { %v5608_v56 = vpop.eup %4158  ;;  %v3425_v29 = vadd.f32 %v5606_v26, %v5604_v49 }
0x11d0   : > { %v5612_v14 = vpop.eup %4160 }
0x11d1   : > { %v5614_v6 = vpop.eup %4162  ;;  %3426 = vadd.xlane.f32.xlu1 %v3425_v29  ;;  %v3434_v0 = vadd.f32 %v5612_v14, %v5608_v56 }
0x11d2   : > { %5950 = vst [vmem:[#allocation19_spill] sm:$0xff] %v5614_v6  ;;  %v5618_v34 = vpop.eup %4164 }
0x11d3   : > { %5951 = vst [vmem:[#allocation20_spill] sm:$0xff] %v5618_v34  ;;  %v5620_v55 = vpop.eup %4166  ;;  %3435 = vadd.xlane.f32.xlu0 %v3434_v0  ;;  %v3419_v23 = vadd.f32 %v5618_v34, %v5614_v6 }
0x11d4   : > { %v5624_v50 = vpop.eup %4168 }
0x11d5   : > { %v5626_v57 = vpop.eup %4170  ;;  %3420 = vadd.xlane.f32.xlu1 %v3419_v23  ;;  %v3428_v46 = vadd.f32 %v5624_v50, %v5620_v55 }
0x11d6   : > { %5952 = vst [vmem:[#allocation21_spill] sm:$0xff] %v5626_v57  ;;  %v5630_v39 = vpop.eup %4172 }
0x11d7   : > { %5953 = vst [vmem:[#allocation13_spill] sm:$0xff] %v5630_v39  ;;  %v5632_v37 = vpop.eup %4174  ;;  %3429 = vadd.xlane.f32.xlu0 %v3428_v46  ;;  %v3413_v13 = vadd.f32 %v5630_v39, %v5626_v57 }
0x11d8   : > { %5954 = vst [vmem:[#allocation14_spill] sm:$0xff] %v5632_v37  ;;  %v5636_v16 = vpop.eup %4176 }
0x11d9   : > { %v5638_v5 = vpop.eup %4178  ;;  %3414 = vadd.xlane.f32.xlu1 %v3413_v13  ;;  %v3422_v17 = vadd.f32 %v5636_v16, %v5632_v37 }
0x11da   : > { %5955 = vst [vmem:[#allocation17_spill] sm:$0xff] %v5638_v5  ;;  %v5642_v25 = vpop.eup %4180 }
0x11db   : > { %5956 = vst [vmem:[#allocation18_spill] sm:$0xff] %v5642_v25  ;;  %3423 = vadd.xlane.f32.xlu0 %v3422_v17  ;;  %v3416_v28 = vadd.f32 %v5642_v25, %v5638_v5 }
0x11df   : > { %3417 = vadd.xlane.f32.xlu0 %v3416_v28 }
0x1216   : > { %v3385_v29 = vpop.xlane.xlu1 %3384 }
0x1217   : > { %4182 = vrcp.f32 %v3385_v29 }
0x121a   : > { %v3121_v0 = vpop.xlane.xlu1 %3120 }
0x121b   : > { %v3193_v23 = vsub.f32 %v5376_v53, %v3121_v0  ;;  %v3194_v46 = vsub.f32 %v5378_v48, %v3121_v0 }
0x121c   : > { %v3388_v57 = vpop.xlane.xlu0 %3387 }
0x121d   : > { %v3301_v39 = vmul.f32 1.442695, %v3193_v23  ;;  %v3303_v13 = vmul.f32 1.442695, %v3194_v46  ;;  %4184 = vrcp.f32 %v3388_v57 }
0x121e   : > { %v3379_v6 = vpop.xlane.xlu1 %3378 }
0x121f   : > { %4186 = vpow2.f32 %v3301_v39 }
0x1220   : > { %4188 = vpow2.f32 %v3303_v13  ;;  %v3124_v37 = vpop.xlane.xlu0 %3123 }
0x1221   : > { %v3195_v17 = vsub.f32 %v5382_v41, %v3124_v37  ;;  %v3196_v5 = vsub.f32 %v5384_v4, %v3124_v37  ;;  %4190 = vrcp.f32 %v3379_v6 }
0x1222   : > { %v3115_v28 = vpop.xlane.xlu1 %3114 }
0x1223   : > { %v3305_v25 = vmul.f32 1.442695, %v3195_v17  ;;  %v3307_v29 = vmul.f32 1.442695, %v3196_v5  ;;  %v3189_v34 = vsub.f32 %v5360_v33, %v3115_v28  ;;  %v3190_v53 = vsub.f32 %v5362_v44, %v3115_v28 }
0x1224   : > { %v3382_v48 = vpop.xlane.xlu0 %3381  ;;  %v4183_v23 = vpop.eup %4182 }
0x1225   : > { %4192 = vpow2.f32 %v3305_v25  ;;  %v3293_v0 = vmul.f32 1.442695, %v3189_v34  ;;  %v3295_v57 = vmul.f32 1.442695, %v3190_v53  ;;  %v3498_v44 = vmul.f32 %v4183_v23, %v5452_v7 }
0x1226   : > { %4194 = vpow2.f32 %v3307_v29  ;;  %v3373_v39 = vpop.xlane.xlu1 %3372 }
0x1227   : > { %4196 = vpow2.f32 %v3293_v0 }
0x1228   : > { %4198 = vpow2.f32 %v3295_v57  ;;  %v3118_v41 = vpop.xlane.xlu0 %3117 }
0x1229   : > { %4200 = vrcp.f32 %v3382_v48  ;;  %v3191_v4 = vsub.f32 %v5368_v60, %v3118_v41  ;;  %v3192_v37 = vsub.f32 %v5370_v45, %v3118_v41  ;;  %v3497_v60 = vmul.f32 %v4183_v23, %v5449_v61 }
0x122a   : > { %v4185_v5 = vpop.eup %4184  ;;  %v3109_v33 = vpop.xlane.xlu1 %3108  ;;  %4202 = vrcp.f32 %v3373_v39 }
0x122b   : > { %v3297_v6 = vmul.f32 1.442695, %v3191_v4  ;;  %v3299_v46 = vmul.f32 1.442695, %v3192_v37  ;;  %v3185_v34 = vsub.f32 %v5344_v19, %v3109_v33  ;;  %v3186_v25 = vsub.f32 %v5346_v38, %v3109_v33 }
0x122c   : > { %v5657_v13 = vpop.eup %4186  ;;  %v3376_v17 = vpop.xlane.xlu0 %3375  ;;  %v3500_v28 = vmul.f32 %v4185_v5, %v5466_v24  ;;  %v3499_v45 = vmul.f32 %v4185_v5, %v5462_v8 }
0x122d   : > { %v5662_v29 = vpop.eup %4188  ;;  %4204 = vpow2.f32 %v3297_v6  ;;  %v3285_v7 = vmul.f32 1.442695, %v3185_v34  ;;  %v3287_v53 = vmul.f32 1.442695, %v3186_v25 }
0x122e   : > { %4206 = vpow2.f32 %v3299_v46  ;;  %v3550_v48 = vpack.c.bf16 %v3500_v28, %v3498_v44  ;;  %v3367_v19 = vpop.xlane.xlu1 %3366  ;;  %v3549_v0 = vpack.c.bf16 %v3499_v45, %v3497_v60  ;;  %v3407_v38 = vadd.f32 %v5662_v29, %v5657_v13  ;;  %v4191_v61 = vpop.eup %4190 }
0x122f   : > { %4208 = vpow2.f32 %v3285_v7  ;;  %v3493_v60 = vmul.f32 %v4191_v61, %v5458_v22 }
0x1230   : > { %4210 = vpow2.f32 %v3287_v53  ;;  %3567 = vmatprep.subr.bf16.mxu0 %v3550_v48  ;;  %v3112_v24 = vpop.xlane.xlu0 %3111  ;;  %3408 = vadd.xlane.f32.xlu1 %v3407_v38 }
0x1231   : > { %4212 = vrcp.f32 %v3376_v17  ;;  %3568 = vmatpush1.bf16.xpose.msra.mxu0 %v3549_v0  ;;  %v3187_v8 = vsub.f32 %v5352_v9, %v3112_v24  ;;  %v3188_v57 = vsub.f32 %v5354_v12, %v3112_v24  ;;  %v3494_v17 = vmul.f32 %v4191_v61, %v5460_v2 }
0x1232   : > { %v5668_v39 = vpop.eup %4192  ;;  %v3103_v23 = vpop.xlane.xlu1 %3102  ;;  %4214 = vrcp.f32 %v3367_v19 }
0x1233   : > { %v5670_v41 = vpop.eup %4194  ;;  %v3289_v4 = vmul.f32 1.442695, %v3187_v8  ;;  %v3291_v37 = vmul.f32 1.442695, %v3188_v57  ;;  %v3181_v5 = vsub.f32 %v5930_v1, %v3103_v23  ;;  %v3182_v33 = vsub.f32 %v5929_v3, %v3103_v23 }
0x1234   : > { %v5674_v44 = vpop.eup %4196  ;;  %v3370_v6 = vpop.xlane.xlu0 %3369  ;;  %v3410_v9 = vadd.f32 %v5670_v41, %v5668_v39 }
0x1235   : > { %v5678_v46 = vpop.eup %4198  ;;  %4216 = vpow2.f32 %v3289_v4  ;;  %v3277_v12 = vmul.f32 1.442695, %v3181_v5  ;;  %v3279_v34 = vmul.f32 1.442695, %v3182_v33 }
0x1236   : > { %v4201_v25 = vpop.eup %4200  ;;  %4218 = vpow2.f32 %v3291_v37  ;;  %3411 = vadd.xlane.f32.xlu0 %v3410_v9  ;;  %v3361_v1 = vpop.xlane.xlu1 %3360  ;;  %v3401_v3 = vadd.f32 %v5678_v46, %v5674_v44 }
0x1237   : > { %4220 = vpow2.f32 %v3277_v12  ;;  %v3496_v28 = vmul.f32 %v4201_v25, %v5480_v10  ;;  %v3495_v45 = vmul.f32 %v4201_v25, %v5476_v63  ;;  %v4203_v53 = vpop.eup %4202 }
0x1238   : > { %4222 = vpow2.f32 %v3279_v34  ;;  %v3106_v7 = vpop.xlane.xlu0 %3105  ;;  %3402 = vadd.xlane.f32.xlu1 %v3401_v3  ;;  %v3489_v5 = vmul.f32 %v4203_v53, %v5483_v32 }
0x1239   : > { %4224 = vrcp.f32 %v3370_v6  ;;  %v3548_v48 = vpack.c.bf16 %v3496_v28, %v3494_v17  ;;  %v3547_v19 = vpack.c.bf16 %v3495_v45, %v3493_v60  ;;  %v3183_v2 = vsub.f32 %v5932_v31, %v3106_v7 }
0x123a   : > { %v5687_v0 = vpop.eup %4204  ;;  %v3184_v38 = vsub.f32 %v5931_v18, %v3106_v7  ;;  %v3355_v24 = vpop.xlane.xlu1 %3354  ;;  %4226 = vrcp.f32 %v3361_v1  ;;  %v3490_v18 = vmul.f32 %v4203_v53, %v5488_v52 }
0x123b   : > { %v5690_v8 = vpop.eup %4206  ;;  %3569 = vmatprep.subr.bf16.mxu0 %v3548_v48  ;;  %v3281_v22 = vmul.f32 1.442695, %v3183_v2  ;;  %4228 = vrcp.f32 %v3355_v24 }
0x123c   : > { %v5692_v63 = vpop.eup %4208  ;;  %3570 = vmatpush1.bf16.xpose.msra.mxu0 %v3547_v19  ;;  %v3283_v10 = vmul.f32 1.442695, %v3184_v38  ;;  %v3364_v61 = vpop.xlane.xlu0 %3363  ;;  %v3404_v57 = vadd.f32 %v5690_v8, %v5687_v0 }
0x123d   : > { %v5696_v31 = vpop.eup %4210  ;;  %4230 = vpow2.f32 %v3281_v22 }
0x123e   : > { %v4213_v23 = vpop.eup %4212  ;;  %4232 = vpow2.f32 %v3283_v10  ;;  %3405 = vadd.xlane.f32.xlu0 %v3404_v57  ;;  %v3395_v4 = vadd.f32 %v5696_v31, %v5692_v63  ;;  %v3349_v3 = vpop.xlane.xlu1 %3348 }
0x123f   : > { %4234 = vrcp.f32 %v3364_v61  ;;  %v3492_v37 = vmul.f32 %v4213_v23, %v5504_v35  ;;  %v3491_v33 = vmul.f32 %v4213_v23, %v5499_v47  ;;  %v4215_v9 = vpop.eup %4214 }
0x1240   : > { %v3358_v6 = vpop.xlane.xlu0 %3357  ;;  %3396 = vadd.xlane.f32.xlu1 %v3395_v4  ;;  %v3486_v28 = vmul.f32 %v4215_v9, %v5512_v59  ;;  %v3485_v7 = vmul.f32 %v4215_v9, %v5507_v42 }
0x1241   : > { %v3546_v12 = vpack.c.bf16 %v3492_v37, %v3490_v18  ;;  %v3545_v34 = vpack.c.bf16 %v3491_v33, %v3489_v5  ;;  %4236 = vrcp.f32 %v3358_v6 }
0x1242   : > { %v5704_v25 = vpop.eup %4216  ;;  %v3343_v23 = vpop.xlane.xlu1 %3342 }
0x1243   : > { %v5706_v17 = vpop.eup %4218  ;;  %3571 = vmatprep.subr.bf16.mxu0 %v3546_v12 }
0x1244   : > { %v5708_v52 = vpop.eup %4220  ;;  %3572 = vmatpush1.bf16.xpose.msra.mxu0 %v3545_v34  ;;  %v3352_v1 = vpop.xlane.xlu0 %3351  ;;  %v3398_v32 = vadd.f32 %v5706_v17, %v5704_v25 }
0x1245   : > { %v5712_v35 = vpop.eup %4222  ;;  %4238 = vrcp.f32 %v3352_v1 }
0x1246   : > { %v4225_v47 = vpop.eup %4224  ;;  %3399 = vadd.xlane.f32.xlu0 %v3398_v32  ;;  %v3389_v60 = vadd.f32 %v5712_v35, %v5708_v52  ;;  %4240 = vrcp.f32 %v3349_v3  ;;  %v3614_v32 = vld [vmem:[%s5824_s23] sm:$0xff] }
0x1247   : > { %v3488_v45 = vmul.f32 %v4225_v47, %v5526_v43  ;;  %v3487_v53 = vmul.f32 %v4225_v47, %v5521_v30  ;;  %v4227_v48 = vpop.eup %4226 }
0x1248   : > { %3390 = vadd.xlane.f32.xlu1 %v3389_v60  ;;  %v4229_v19 = vpop.eup %4228  ;;  %v3346_v10 = vpop.xlane.xlu0 %3345  ;;  %v3482_v42 = vmul.f32 %v4227_v48, %v5532_v20  ;;  %v3481_v18 = vmul.f32 %v4227_v48, %v5528_v15  ;;  %v2657_v15 = vld [vmem:[%s5822_s21 + $0x20] sm:$0xff]  ;;  %v5958_v60 = vld [vmem:[#allocation11_spill] sm:$0xff] }
0x1249   : > { %v3544_v2 = vpack.c.bf16 %v3488_v45, %v3486_v28  ;;  %v3543_v38 = vpack.c.bf16 %v3487_v53, %v3485_v7  ;;  %4242 = vrcp.f32 %v3346_v10  ;;  %v3478_v37 = vmul.f32 %v4229_v19, %v5540_v54  ;;  %v3615_v45 = vld [vmem:[%s5824_s23 + $0x8] sm:$0xff]  ;;  %v5959_v7 = vld [vmem:[#allocation23_spill] sm:$0xff]  ;;  %v5960_v48 = vld [vmem:[#allocation8_spill] sm:$0xff] }
0x124a   : > { %v5720_v24 = vpop.eup %4230  ;;  %4244 = vrcp.f32 %v3343_v23  ;;  %v3477_v54 = vmul.f32 %v4229_v19, %v5536_v62  ;;  %v2658_v10 = vld [vmem:[%s5822_s21 + $0x28] sm:$0xff] }
0x124b   : > { %v5722_v22 = vpop.eup %4232  ;;  %3573 = vmatprep.subr.bf16.mxu0 %v3544_v2 }
0x124c   : > { %v4235_v59 = vpop.eup %4234  ;;  %3574 = vmatpush1.bf16.xpose.msra.mxu0 %v3543_v38  ;;  %v3392_v43 = vadd.f32 %v5722_v22, %v5720_v24  ;;  %v5961_v38 = vld [vmem:[#allocation12_spill] sm:$0xff] }
0x124d   : > { %v3484_v30 = vmul.f32 %v4235_v59, %v5546_v27  ;;  %v3483_v61 = vmul.f32 %v4235_v59, %v5542_v58 }
0x124e   : > { %v4237_v57 = vpop.eup %4236  ;;  %3393 = vadd.xlane.f32.xlu0 %v3392_v43 }
0x124f   : > { %v3542_v4 = vpack.c.bf16 %v3484_v30, %v3482_v42  ;;  %v3480_v5 = vmul.f32 %v4237_v57, %v5558_v36  ;;  %v3541_v33 = vpack.c.bf16 %v3483_v61, %v3481_v18  ;;  %v3479_v9 = vmul.f32 %v4237_v57, %v5554_v21  ;;  %v5957_v36 = vld [vmem:[#allocation10_spill] sm:$0xff] }
0x1250   : > { %v5962_v57 = vld [vmem:[#allocation22_spill] sm:$0xff] }
0x1251   : > { %3575 = vmatprep.subr.bf16.mxu0 %v3542_v4  ;;  %v3540_v6 = vpack.c.bf16 %v3480_v5, %v3478_v37  ;;  %v3539_v1 = vpack.c.bf16 %v3479_v9, %v3477_v54  ;;  %v5963_v4 = vld [vmem:[#allocation9_spill] sm:$0xff] }
0x1252   : > { %v4239_v20 = vpop.eup %4238 }
0x1253   : > { %v4241_v27 = vpop.eup %4240  ;;  %v3476_v12 = vmul.f32 %v4239_v20, %v5570_v51  ;;  %v3475_v62 = vmul.f32 %v4239_v20, %v5958_v60 }
0x1254   : > { %3576 = vmatpush1.bf16.xpose.msra.mxu0 %v3541_v33  ;;  %v3474_v34 = vmul.f32 %v4241_v27, %v5957_v36  ;;  %v3473_v19 = vmul.f32 %v4241_v27, %v5960_v48  ;;  %v5967_v48 = vld [vmem:[#allocation19_spill] sm:$0xff] }
0x1255   : > { %3577 = vmatprep.subr.bf16.mxu0 %v3540_v6 }
0x1256   : > { %v3433_v58 = vpop.xlane.xlu1 %3432  ;;  %v3538_v47 = vpack.c.bf16 %v3476_v12, %v3474_v34  ;;  %v4243_v3 = vpop.eup %4242  ;;  %v3537_v43 = vpack.c.bf16 %v3475_v62, %v3473_v19  ;;  %v5965_v62 = vld [vmem:[#allocation14_spill] sm:$0xff] }
0x1257   : > { %4246 = vrcp.f32 %v3433_v58  ;;  %v4245_v51 = vpop.eup %4244  ;;  %v3472_v53 = vmul.f32 %v4243_v3, %v5959_v7  ;;  %v3471_v23 = vmul.f32 %v4243_v3, %v5962_v57  ;;  %v5966_v7 = vld [vmem:[#allocation18_spill] sm:$0xff] }
0x1258   : > { %v3470_v59 = vmul.f32 %v4245_v51, %v5961_v38  ;;  %v3469_v37 = vmul.f32 %v4245_v51, %v5963_v4 }
0x1259   : > { %2681 = vperm.xlu1 %4005, %v2657_v15  }
0x125a   : > { %v3427_v21 = vpop.xlane.xlu1 %3426  ;;  %v3536_v42 = vpack.c.bf16 %v3472_v53, %v3470_v59  ;;  %v3535_v33 = vpack.c.bf16 %v3471_v23, %v3469_v37 }
0x125c   : > { %3578 = vmatpush1.bf16.xpose.msra.mxu0 %v3539_v1  ;;  %v3436_v28 = vpop.xlane.xlu0 %3435 }
0x125d   : > { %3579 = vmatprep.subr.bf16.mxu0 %v3538_v47  ;;  %4248 = vrcp.f32 %v3436_v28  ;;  %3618 = vperm.xlu1 %4005, %v3614_v32  }
0x125e   : > { %4250 = vrcp.f32 %v3427_v21  ;;  %v3421_v61 = vpop.xlane.xlu1 %3420 }
0x1260   : > { %v3430_v2 = vpop.xlane.xlu0 %3429 }
0x1261   : > { %4252 = vrcp.f32 %v3430_v2  ;;  %3623 = vperm.xlu1 %4005, %v3615_v45   ;;  %v5968_v2 = vld [vmem:[#allocation13_spill] sm:$0xff] }
0x1262   : > { %v3415_v54 = vpop.xlane.xlu1 %3414 }
0x1264   : > { %3580 = vmatpush1.bf16.xpose.msra.mxu0 %v3537_v43  ;;  %2686 = vperm.xlu0 %4004, %v2658_v10   ;;  %v3424_v30 = vpop.xlane.xlu0 %3423  ;;  %v4247_v18 = vpop.eup %4246  ;;  %v5970_v10 = vld [vmem:[#allocation21_spill] sm:$0xff] }
0x1265   : > { %3581 = vmatprep.subr.bf16.mxu0 %v3536_v42  ;;  %4254 = vrcp.f32 %v3424_v30  ;;  %v3530_v6 = vmul.f32 %v4247_v18, %v5600_v40  ;;  %v3529_v36 = vmul.f32 %v4247_v18, %v5598_v11  ;;  %v5964_v11 = vld [vmem:[#allocation20_spill] sm:$0xff] }
0x1266   : > { %4256 = vrcp.f32 %v3421_v61 }
0x1268   : > { %v3418_v58 = vpop.xlane.xlu0 %3417 }
0x1269   : > { %4258 = vrcp.f32 %v3418_v58 }
0x126a   : > { %v4249_v5 = vpop.eup %4248  ;;  %4260 = vrcp.f32 %v3415_v54  ;;  %v2767_v54 = vpop.f32.mrf.mxu0 }
0x126b   : > { %v3532_v20 = vmul.f32 %v4249_v5, %v5612_v14  ;;  %v4251_v27 = vpop.eup %4250  ;;  %v3531_v9 = vmul.f32 %v4249_v5, %v5608_v56 }
0x126c   : > { %3582 = vmatpush1.bf16.xpose.msra.mxu0 %v3535_v33  ;;  %v3526_v34 = vmul.f32 %v4251_v27, %v5606_v26  ;;  %v3525_v21 = vmul.f32 %v4251_v27, %v5604_v49  ;;  %v5969_v49 = vld [vmem:[#allocation17_spill] sm:$0xff] }
0x126d   : > { %v3566_v15 = vpack.c.bf16 %v3532_v20, %v3530_v6  ;;  %v3565_v32 = vpack.c.bf16 %v3531_v9, %v3529_v36 }
0x126e   : > { %v4253_v12 = vpop.eup %4252 }
0x126f   : > { %3583 = vmatprep.subr.bf16.mxu0 %v3566_v15  ;;  %v3528_v1 = vmul.f32 %v4253_v12, %v5624_v50  ;;  %v3527_v56 = vmul.f32 %v4253_v12, %v5620_v55 }
0x1271   : > { %v3564_v40 = vpack.c.bf16 %v3528_v1, %v3526_v34  ;;  %v3563_v51 = vpack.c.bf16 %v3527_v56, %v3525_v21 }
0x1272   : > { %v4255_v14 = vpop.eup %4254 }
0x1273   : > { %v4257_v47 = vpop.eup %4256  ;;  %v3524_v3 = vmul.f32 %v4255_v14, %v5636_v16  ;;  %v3523_v45 = vmul.f32 %v4255_v14, %v5965_v62 }
0x1274   : > { %3584 = vmatpush2.bf16.xpose.msra.mxu0 %v3565_v32  ;;  %v3522_v28 = vmul.f32 %v4257_v47, %v5964_v11  ;;  %v3521_v19 = vmul.f32 %v4257_v47, %v5967_v48 }
0x1275   : > { %3585 = vmatprep.subr.bf16.mxu0 %v3564_v40 }
0x1276   : > { %v3562_v60 = vpack.c.bf16 %v3524_v3, %v3522_v28  ;;  %v4259_v26 = vpop.eup %4258  ;;  %v3561_v38 = vpack.c.bf16 %v3523_v45, %v3521_v19 }
0x1277   : > { %v4261_v50 = vpop.eup %4260  ;;  %v3520_v53 = vmul.f32 %v4259_v26, %v5966_v7  ;;  %v3519_v59 = vmul.f32 %v4259_v26, %v5969_v49 }
0x1278   : > { %v3518_v55 = vmul.f32 %v4261_v50, %v5968_v2  ;;  %v3517_v43 = vmul.f32 %v4261_v50, %v5970_v10 }
0x127a   : > { %v3560_v16 = vpack.c.bf16 %v3520_v53, %v3518_v55  ;;  %v3559_v42 = vpack.c.bf16 %v3519_v59, %v3517_v43 }
0x127c   : > { %3586 = vmatpush2.bf16.xpose.msra.mxu0 %v3563_v51 }
0x127d   : > { %3587 = vmatprep.subr.bf16.mxu0 %v3562_v60 }
0x1284   : > { %3588 = vmatpush2.bf16.xpose.msra.mxu0 %v3561_v38 }
0x1285   : > { %3589 = vmatprep.subr.bf16.mxu0 %v3560_v16 }
0x128c   : > { %3590 = vmatpush2.bf16.xpose.msra.mxu0 %v3559_v42  ;;  %v5972_v42 = vld [vmem:[#allocation6_spill] sm:$0xff] }
0x12b9   : > { %v3409_v30 = vpop.xlane.xlu1 %3408 }
0x12ba   : > { %4262 = vrcp.f32 %v3409_v30 }
0x12bf   : > { %v3412_v61 = vpop.xlane.xlu0 %3411 }
0x12c0   : > { %4264 = vrcp.f32 %v3412_v61 }
0x12c1   : > { %v3403_v57 = vpop.xlane.xlu1 %3402 }
0x12c2   : > { %4266 = vrcp.f32 %v3403_v57 }
0x12c7   : > { %v3406_v23 = vpop.xlane.xlu0 %3405  ;;  %v4263_v18 = vpop.eup %4262 }
0x12c8   : > { %4268 = vrcp.f32 %v3406_v23  ;;  %v3514_v5 = vmul.f32 %v4263_v18, %v5662_v29  ;;  %v3513_v6 = vmul.f32 %v4263_v18, %v5657_v13  ;;  %v5973_v18 = vld [vmem:[#allocation7_spill] sm:$0xff] }
0x12c9   : > { %v3397_v4 = vpop.xlane.xlu1 %3396 }
0x12ca   : > { %4270 = vrcp.f32 %v3397_v4 }
0x12cd   : > { %v4265_v37 = vpop.eup %4264 }
0x12ce   : > { %v3516_v33 = vmul.f32 %v4265_v37, %v5670_v41  ;;  %v3515_v20 = vmul.f32 %v4265_v37, %v5668_v39  ;;  %v2769_v39 = vpop.f32.mrf.mxu0 }
0x12cf   : > { %v3400_v27 = vpop.xlane.xlu0 %3399  ;;  %v4267_v15 = vpop.eup %4266 }
0x12d0   : > { %4272 = vrcp.f32 %v3400_v27  ;;  %v3558_v58 = vpack.c.bf16 %v3516_v33, %v3514_v5  ;;  %v3557_v9 = vpack.c.bf16 %v3515_v20, %v3513_v6  ;;  %v3510_v34 = vmul.f32 %v4267_v15, %v5678_v46  ;;  %v2771_v14 = vpop.f32.mrf.mxu0  ;;  %v5974_v33 = vld [vmem:[#allocation4_spill] sm:$0xff]  ;;  %v5975_v27 = vld [vmem:[#allocation5_spill] sm:$0xff] }
0x12d1   : > { %v3391_v12 = vpop.xlane.xlu1 %3390  ;;  %v3509_v41 = vmul.f32 %v4267_v15, %v5674_v44 }
0x12d2   : > { %3591 = vmatprep.subr.bf16.mxu0 %v3558_v58  ;;  %4274 = vrcp.f32 %v3391_v12  ;;  %v2773_v21 = vpop.f32.mrf.mxu0 }
0x12d3   : > { %3592 = vmatpush2.bf16.xpose.msra.mxu0 %v3557_v9 }
0x12d5   : > { %v4269_v36 = vpop.eup %4268  ;;  %v2682_v3 = vpop.permute.xlu1 %2681 }
0x12d6   : > { %v3512_v29 = vmul.f32 %v4269_v36, %v5690_v8  ;;  %v3511_v13 = vmul.f32 %v4269_v36, %v5687_v0  ;;  %v2770_v28 = vadd.f32 %v2769_v39, %v2682_v3  ;;  %v2768_v19 = vadd.f32 %v2767_v54, %v2682_v3 }
0x12d7   : > { %v3394_v1 = vpop.xlane.xlu0 %3393  ;;  %v4271_v47 = vpop.eup %4270 }
0x12d8   : > { %4276 = vrcp.f32 %v3394_v1  ;;  %v3556_v32 = vpack.c.bf16 %v3512_v29, %v3510_v34  ;;  %v3555_v40 = vpack.c.bf16 %v3511_v13, %v3509_v41  ;;  %v3506_v46 = vmul.f32 %v4271_v47, %v5696_v31 }
0x12d9   : > { %v3505_v44 = vmul.f32 %v4271_v47, %v5692_v63 }
0x12da   : > { %3593 = vmatprep.subr.bf16.mxu0 %v3556_v32 }
0x12db   : > { %3594 = vmatpush2.bf16.xpose.msra.mxu0 %v3555_v40 }
0x12dd   : > { %v4273_v56 = vpop.eup %4272 }
0x12de   : > { %v3508_v8 = vmul.f32 %v4273_v56, %v5706_v17  ;;  %v3507_v0 = vmul.f32 %v4273_v56, %v5704_v25 }
0x12df   : > { %v2687_v11 = vpop.permute.xlu0 %2686  ;;  %v4275_v62 = vpop.eup %4274 }
0x12e0   : > { %v2774_v51 = vadd.f32 %v2773_v21, %v2687_v11  ;;  %v3554_v60 = vpack.c.bf16 %v3508_v8, %v3506_v46  ;;  %v3553_v26 = vpack.c.bf16 %v3507_v0, %v3505_v44  ;;  %v3502_v7 = vmul.f32 %v4275_v62, %v5712_v35 }
0x12e1   : > { %v3501_v17 = vmul.f32 %v4275_v62, %v5708_v52  ;;  %v2772_v48 = vadd.f32 %v2771_v14, %v2687_v11  ;;  %v4031_v52 = vld [vmem:[%s5823_s22] sm:$0xff]  }
0x12e2   : > { %v3534_v50 = vpack.c.bf16 %v2774_v51, %v2770_v28  ;;  %3595 = vmatprep.subr.bf16.mxu0 %v3554_v60 }
0x12e3   : > { %3596 = vmatpush2.bf16.xpose.msra.mxu0 %v3553_v26  ;;  %v3533_v2 = vpack.c.bf16 %v2772_v48, %v2768_v19 }
0x12e4   : > { %3599 = vmatprep.mubr.bf16.mxu0 %v3534_v50 }
0x12e5   : > { %v4277_v45 = vpop.eup %4276 }
0x12e6   : > { %v3504_v31 = vmul.f32 %v4277_v45, %v5722_v22  ;;  %v3503_v63 = vmul.f32 %v4277_v45, %v5720_v24  ;;  %v3619_v24 = vpop.permute.xlu1 %3618 }
0x12e8   : > { %v3552_v25 = vpack.c.bf16 %v3504_v31, %v3502_v7  ;;  %v3551_v53 = vpack.c.bf16 %v3503_v63, %v3501_v17 }
0x12ea   : > { %3597 = vmatprep.subr.bf16.mxu0 %v3552_v25  ;;  %v3624_v57 = vpop.permute.xlu1 %3623 }
0x12eb   : > { %3598 = vmatpush2.bf16.xpose.msra.mxu0 %v3551_v53 }
0x12f2   : > { %3600 = vmatmul.mubr.bf16.vlgmr.msra.gmra.mxu0 %v3533_v2 }
0x13b2   : > { %v3601_v55 = vpop.f32.mrf.mxu0 }
0x13b4   : > { %v3603_v38 = vpop.f32.mrf.mxu0 }
0x13b6   : > { %v3605_v16 = vpop.f32.mrf.mxu0 }
0x13b7   : > { %v3612_v59 = vpack.c.bf16 %v3605_v16, %v3601_v55 }
0x13b8   : > { %v3607_v49 = vpop.f32.mrf.mxu0 }
0x13b9   : > { %v3613_v35 = vpack.c.bf16 %v3607_v49, %v3603_v38 }
0x13bb   : > { %3648 = vmatprep.subr.bf16.mxu1 %v3613_v35 }
0x13bc   : > { %3649 = vmatpush1.bf16.msra.mxu1 %v3612_v59 }
0x13bf   : > { %3873 = vmatmul.mubr.msk.bf16.vlgmr.msra.gmra.mxu1 %vm1714_vm12, %v4031_v52 }
0x147f   : > { %v3668_v22 = vpop.f32.mrf.mxu1 }
0x1480   : > { %v3669_v10 = vadd.f32 %v3668_v22, %v3619_v24 }
0x1481   : > { %v3670_v43 = vpop.f32.mrf.mxu1 }
0x1482   : > { %v3677_v30 = vadd.f32 %v3669_v10, %v5972_v42  ;;  %v3671_v61 = vadd.f32 %v3670_v43, %v3619_v24 }
0x1483   : > { %v3672_v23 = vpop.f32.mrf.mxu1 }
0x1484   : > { %3681 = vst [vmem:[%s777_s27] sm:$0xff] %v3677_v30  ;;  %v3678_v4 = vadd.f32 %v3671_v61, %v5973_v18  ;;  %v3673_v37 = vadd.f32 %v3672_v23, %v3624_v57 }
0x1485   : > { %v3674_v5 = vpop.f32.mrf.mxu1 }
0x1486   : > { %3682 = vst [vmem:[%s777_s27 + $0x8] sm:$0xff] %v3678_v4  ;;  %v3679_v6 = vadd.f32 %v3673_v37, %v5974_v33  ;;  %v3675_v20 = vadd.f32 %v3674_v5, %v3624_v57 }
0x1488   : > { %3683 = vst [vmem:[%s777_s27 + $0x10] sm:$0xff] %v3679_v6  ;;  %v3680_v58 = vadd.f32 %v3675_v20, %v5975_v27 }
0x148a   : > { %3684 = vst [vmem:[%s777_s27 + $0x18] sm:$0xff] %v3680_v58 }
0x148b PF: > { %s5976_s26 = sld [smem:[#allocation3_spill]] }
0x1491   : > { %s34_s5 = sadd.s32 1, %s5976_s26  }
0x1492   : > { %p31_p4 = scmp.ge.s32.totalorder %s34_s5, 4  }
0x1494   :  { %33 = sbr.rel (!%p31_p4) target bundleno = 11 (0xb), region = 159 }

</bundles_post_ra>
